<compile_context>
chip_gen: v7x
topology: tpu7x:2x2x1
jax: 0.10.0
libtpu: 0.0.40
codegen_flags: <defaults>
</compile_context>

<pallas_src>
from functools import partial

import jax
import jax.numpy as jnp
from jax.experimental import pallas as pl
from jax.experimental.pallas import tpu as pltpu


# ---------------------------------------------------------------------------
# helpers usable inside kernels
# ---------------------------------------------------------------------------
def _erf(x):
    # Abramowitz & Stegun 7.1.26 rational approximation, |err| <= 1.5e-7.
    a1, a2, a3, a4, a5 = (0.254829592, -0.284496736, 1.421413741,
                          -1.453152027, 1.061405429)
    p = 0.3275911
    sgn = jnp.where(x < 0.0, -1.0, 1.0)
    ax = jnp.abs(x)
    t = 1.0 / (1.0 + p * ax)
    poly = ((((a5 * t + a4) * t + a3) * t + a2) * t + a1) * t
    return sgn * (1.0 - poly * jnp.exp(-ax * ax))


def _gelu_exact(x):
    return 0.5 * x * (1.0 + _erf(x * 0.7071067811865476))


def _layernorm(x, gamma, beta, eps):
    mu = jnp.mean(x, axis=-1, keepdims=True)
    var = jnp.mean(jnp.square(x - mu), axis=-1, keepdims=True)
    return (x - mu) * jax.lax.rsqrt(var + eps) * gamma + beta


# ---------------------------------------------------------------------------
# Kernel 1: y = x + MultiHeadSelfAttention(x)   (one batch element per step)
# ---------------------------------------------------------------------------
def _attn_residual_kernel(x_ref, wqkv_ref, bqkv_ref, wo_ref, bo_ref, y_ref, *,
                          num_heads, head_dim, has_qkv_bias):
    # x_ref:(N,C)  wqkv_ref:(C,3C) bf16 (scale folded into q cols)
    # bqkv_ref:(1,3C) f32  wo_ref:(C,C) bf16  bo_ref:(1,C) f32  y_ref:(N,C) bf16
    C = num_heads * head_dim
    x = x_ref[...]

    # fused, lane-dense QKV projection on the MXU (bf16 in, f32 accumulate)
    qkv = jnp.dot(x.astype(jnp.bfloat16), wqkv_ref[...],
                  preferred_element_type=jnp.float32)          # (N, 3C) f32
    if has_qkv_bias:                                           # statically dropped when False
        qkv = qkv + bqkv_ref[...]

    # Static head loop (small H; static lane slices of the fused result).
    o_heads = []
    for h in range(num_heads):
        q = qkv[:, h * head_dim:(h + 1) * head_dim].astype(jnp.bfloat16)
        k = qkv[:, C + h * head_dim:C + (h + 1) * head_dim].astype(jnp.bfloat16)
        v = qkv[:, 2 * C + h * head_dim:2 * C + (h + 1) * head_dim].astype(jnp.bfloat16)
        # scores = q @ k^T  (scale already folded into q), softmax in f32
        s = jax.lax.dot_general(q, k, (((1,), (1,)), ((), ())),
                                preferred_element_type=jnp.float32)   # (N, N)
        s = s - jnp.max(s, axis=-1, keepdims=True)
        p = jnp.exp(s)
        p = p * pl.reciprocal(jnp.sum(p, axis=-1, keepdims=True), approx=True)
        o_heads.append(jnp.dot(p.astype(jnp.bfloat16), v,
                               preferred_element_type=jnp.float32))   # (N, hd)

    # single C-deep output projection for all heads
    o = jnp.concatenate(o_heads, axis=-1).astype(jnp.bfloat16)        # (N, C)
    proj = jnp.dot(o, wo_ref[...], preferred_element_type=jnp.float32) + bo_ref[...]
    y_ref[...] = (x.astype(jnp.float32) + proj).astype(y_ref.dtype)


# ---------------------------------------------------------------------------
# Kernel 2: out = LN2(LN1(y) + MLP(LN1(y))),  t = MLP(LN1(y))   (row tiles)
# ---------------------------------------------------------------------------
def _ln_mlp_ln_kernel(y_ref, g1_ref, be1_ref, w1_ref, b1_ref, w2_ref, b2_ref,
                      g2_ref, be2_ref, out_ref, t_ref, *, eps):
    y = y_ref[...].astype(jnp.float32)                                # (tm, C)
    r = _layernorm(y, g1_ref[...], be1_ref[...], eps)                 # f32
    h = jnp.dot(r.astype(jnp.bfloat16), w1_ref[...],
                preferred_element_type=jnp.float32) + b1_ref[...]     # (tm, Hm)
    h = _gelu_exact(h)
    t = jnp.dot(h.astype(jnp.bfloat16), w2_ref[...],
                preferred_element_type=jnp.float32) + b2_ref[...]     # (tm, C)
    out = _layernorm(r + t, g2_ref[...], be2_ref[...], eps)
    out_ref[...] = out.astype(out_ref.dtype)
    t_ref[...] = t.astype(t_ref.dtype)


# ---------------------------------------------------------------------------
# Wrapper: full AltBlock forward
# ---------------------------------------------------------------------------
def _device_kind():
    try:
        return jax.devices()[0].device_kind.lower()
    except Exception:
        return ""


def alt_block_forward(x, params, *, num_heads, eps=1e-5, row_tile=None,
                      single_buffer_weights=True):
    """AltBlock forward (layer_norm_first=False default path, eval mode)."""
    B, N, C = x.shape
    assert C % num_heads == 0
    hd = C // num_heads
    scale = hd ** -0.5

    kind = _device_kind()
    # v7x: 64 MiB VMEM per TC -> stay <= 48 MiB; v5e/v6e: 128 MiB -> 96 MiB.
    vmem_limit = (48 if "v7" in kind else 96) * 1024 * 1024
    if row_tile is None:
        row_tile = 256 if "v7" in kind else 512

    # -- host-side one-time weight prep (bf16 matmul weights, f32 bias/LN) --
    wqkv = jnp.asarray(params["qkv_w"]).T                    # (C, 3C), cols = (3,H,hd)
    wqkv = wqkv.at[:, :C].multiply(scale).astype(jnp.bfloat16)   # fold softmax scale into q
    qkv_b = params.get("qkv_b", None)
    has_qkv_bias = qkv_b is not None
    if has_qkv_bias:
        bqkv = jnp.asarray(qkv_b, jnp.float32).reshape(1, 3 * C)
        bqkv = bqkv.at[:, :C].multiply(scale)
    else:
        bqkv = jnp.zeros((1, 3 * C), jnp.float32)            # never read in-kernel
    wo = jnp.asarray(params["proj_w"]).T.astype(jnp.bfloat16)        # (C, C)
    bo = jnp.asarray(params["proj_b"], jnp.float32).reshape(1, C)
    g1 = jnp.asarray(params["ln1_g"], jnp.float32).reshape(1, C)
    be1 = jnp.asarray(params["ln1_b"], jnp.float32).reshape(1, C)
    w1 = jnp.asarray(params["fc1_w"]).T.astype(jnp.bfloat16)         # (C, Hm)
    Hm = w1.shape[1]
    b1 = jnp.asarray(params["fc1_b"], jnp.float32).reshape(1, Hm)
    w2 = jnp.asarray(params["fc2_w"]).T.astype(jnp.bfloat16)         # (Hm, C)
    b2 = jnp.asarray(params["fc2_b"], jnp.float32).reshape(1, C)
    g2 = jnp.asarray(params["ln2_g"], jnp.float32).reshape(1, C)
    be2 = jnp.asarray(params["ln2_b"], jnp.float32).reshape(1, C)

    def _wspec(shape):
        # grid-invariant weight: constant index_map, single-buffered
        imap = lambda *_: (0,) * len(shape)
        if single_buffer_weights:
            return pl.BlockSpec(shape, imap, pipeline_mode=pl.Buffered(1))
        return pl.BlockSpec(shape, imap)

    # ---- kernel 1: y = x + Attention(x), grid over batch, bf16 output ----
    attn_flops = int(B * (2 * N * C * 3 * C + 4 * N * N * C + 2 * N * C * C))
    y = pl.pallas_call(
        partial(_attn_residual_kernel, num_heads=num_heads, head_dim=hd,
                has_qkv_bias=has_qkv_bias),
        out_shape=jax.ShapeDtypeStruct((B, N, C), jnp.bfloat16),
        grid_spec=pltpu.PrefetchScalarGridSpec(
            num_scalar_prefetch=0,
            grid=(B,),
            in_specs=[
                pl.BlockSpec((None, N, C), lambda b: (b, 0, 0)),
                _wspec((C, 3 * C)),
                _wspec((1, 3 * C)),
                _wspec((C, C)),
                _wspec((1, C)),
            ],
            out_specs=pl.BlockSpec((None, N, C), lambda b: (b, 0, 0)),
        ),
        compiler_params=pltpu.CompilerParams(
            dimension_semantics=("parallel",),
            vmem_limit_bytes=vmem_limit,
        ),
        cost_estimate=pl.CostEstimate(
            flops=attn_flops,
            transcendentals=int(B * num_heads * N * N),
            bytes_accessed=int(B * N * C * (4 + 2) + 2 * (3 * C * C + C * C)),
        ),
    )(x, wqkv, bqkv, wo, bo)

    # ---- kernel 2: (out, t) over row tiles of the flattened (B*N, C) tokens ----
    M = B * N
    tm = min(row_tile, M)
    if tm != M:
        tm = max(8, (tm // 8) * 8)                    # sublane-aligned row tile
    y2 = y.reshape(M, C)                              # no pad; ragged last block is masked

    out_flat, t_flat = pl.pallas_call(
        partial(_ln_mlp_ln_kernel, eps=eps),
        out_shape=(jax.ShapeDtypeStruct((M, C), x.dtype),
                   jax.ShapeDtypeStruct((M, C), x.dtype)),
        grid_spec=pltpu.PrefetchScalarGridSpec(
            num_scalar_prefetch=0,
            grid=(pl.cdiv(M, tm),),
            in_specs=[
                pl.BlockSpec((tm, C), lambda i: (i, 0)),
                _wspec((1, C)), _wspec((1, C)),
                _wspec((C, Hm)), _wspec((1, Hm)),
                _wspec((Hm, C)), _wspec((1, C)),
                _wspec((1, C)), _wspec((1, C)),
            ],
            out_specs=(pl.BlockSpec((tm, C), lambda i: (i, 0)),
                       pl.BlockSpec((tm, C), lambda i: (i, 0))),
        ),
        compiler_params=pltpu.CompilerParams(
            dimension_semantics=("parallel",),
            vmem_limit_bytes=vmem_limit,
        ),
        cost_estimate=pl.CostEstimate(
            flops=int(4 * M * C * Hm),
            transcendentals=int(M * Hm),
            bytes_accessed=int(M * C * (2 + 4 + 4) + 4 * C * Hm),
        ),
    )(y2, g1, be1, w1, b1, w2, b2, g2, be2)

    return out_flat.reshape(B, N, C), t_flat.reshape(B, N, C)


if __name__ == "__main__":
    B, N, C = 2, 64, 128          # batch, tokens, embed dim (lane-dense: 128)
    num_heads = 4                 # head_dim = 32
    mlp_ratio = 4.0
    Hm = int(C * mlp_ratio)       # 512
    eps = 1e-5

    key = jax.random.PRNGKey(0)
    ks = jax.random.split(key, 12)
    x = jax.random.normal(ks[0], (B, N, C), dtype=jnp.float32)
    params = {
        # qkv_bias=False (AltBlock default) -> no "qkv_b" entry (bias add dropped)
        "qkv_w": 0.02 * jax.random.normal(ks[1], (3 * C, C), jnp.float32),
        "proj_w": 0.02 * jax.random.normal(ks[2], (C, C), jnp.float32),
        "proj_b": 0.01 * jax.random.normal(ks[3], (C,), jnp.float32),
        "ln1_g": 1.0 + 0.1 * jax.random.normal(ks[4], (C,), jnp.float32),
        "ln1_b": 0.1 * jax.random.normal(ks[5], (C,), jnp.float32),
        "fc1_w": 0.02 * jax.random.normal(ks[6], (Hm, C), jnp.float32),
        "fc1_b": 0.01 * jax.random.normal(ks[7], (Hm,), jnp.float32),
        "fc2_w": 0.02 * jax.random.normal(ks[8], (C, Hm), jnp.float32),
        "fc2_b": 0.01 * jax.random.normal(ks[9], (C,), jnp.float32),
        "ln2_g": 1.0 + 0.1 * jax.random.normal(ks[10], (C,), jnp.float32),
        "ln2_b": 0.1 * jax.random.normal(ks[11], (C,), jnp.float32),
    }

    def run(single_buffer):
        # row_tile=64 -> grid of 2 row tiles (exercises the pipelined/tiled path).
        o = alt_block_forward(x, params, num_heads=num_heads, eps=eps,
                              row_tile=64, single_buffer_weights=single_buffer)
        return jax.block_until_ready(o)

    try:
        x_out, t = run(True)
    except Exception:
        # Defensive fallback if this jax build rejects pl.Buffered(1) single-buffering.
        x_out, t = run(False)

    # ---- plain-JAX reference (PyTorch AltBlock semantics, eval mode, f32) ----
    def ref_ln(z, g, b):
        mu = z.mean(-1, keepdims=True)
        var = ((z - mu) ** 2).mean(-1, keepdims=True)
        return (z - mu) / jnp.sqrt(var + eps) * g + b

    with jax.default_matmul_precision("highest"):
        hd = C // num_heads
        scale = hd ** -0.5
        qkv = x @ params["qkv_w"].T                       # qkv_bias=False
        qkv = qkv.reshape(B, N, 3, num_heads, hd).transpose(2, 0, 3, 1, 4)
        q, k, v = qkv[0], qkv[1], qkv[2]
        attn = jax.nn.softmax((q * scale) @ jnp.swapaxes(k, -2, -1), axis=-1)
        o = (attn @ v).transpose(0, 2, 1, 3).reshape(B, N, C)
        o = o @ params["proj_w"].T + params["proj_b"]
        y_ref = x + o
        r_ref = ref_ln(y_ref, params["ln1_g"], params["ln1_b"])
        h_ref = jax.nn.gelu(r_ref @ params["fc1_w"].T + params["fc1_b"],
                            approximate=False)
        t_ref = h_ref @ params["fc2_w"].T + params["fc2_b"]
        xo_ref = ref_ln(r_ref + t_ref, params["ln2_g"], params["ln2_b"])

    assert x_out.shape == (B, N, C) and t.shape == (B, N, C)
    # bf16 matmul operands (f32 accumulate) -> tolerance widened accordingly.
    assert jnp.allclose(x_out, xo_ref, atol=2e-2, rtol=2e-2), \
        float(jnp.max(jnp.abs(x_out - xo_ref)))
    assert jnp.allclose(t, t_ref, atol=2e-2, rtol=2e-2), \
        float(jnp.max(jnp.abs(t - t_ref)))
    print("KERNEL_OK")
</pallas_src>

<mosaic_0001>
module attributes {stable_mosaic.version = 11 : i64} {
  func.func @_attn_residual_kernel(%arg0: i32, %arg1: memref<1x64x128xf32, #tpu.memory_space<vmem>>, %arg2: memref<128x384xbf16, #tpu.memory_space<vmem>>, %arg3: memref<1x384xf32, #tpu.memory_space<vmem>>, %arg4: memref<128x128xbf16, #tpu.memory_space<vmem>>, %arg5: memref<1x128xf32, #tpu.memory_space<vmem>>, %arg6: memref<1x64x128xbf16, #tpu.memory_space<vmem>>) attributes {dimension_semantics = [#tpu.dimension_semantics<parallel>], iteration_bounds = array<i64: 2>, scalar_prefetch = 0 : i64, scratch_operands = 0 : i64, tpu.core_type = #tpu.core_type<tc>, window_params = [{transform_indices = @transform_0, window_bounds = array<i64: 1, 64, 128>}, {pipeline_mode = #tpu.pipeline_mode<synchronous>, transform_indices = @transform_1, window_bounds = array<i64: 128, 384>}, {pipeline_mode = #tpu.pipeline_mode<synchronous>, transform_indices = @transform_2, window_bounds = array<i64: 1, 384>}, {pipeline_mode = #tpu.pipeline_mode<synchronous>, transform_indices = @transform_3, window_bounds = array<i64: 128, 128>}, {pipeline_mode = #tpu.pipeline_mode<synchronous>, transform_indices = @transform_4, window_bounds = array<i64: 1, 128>}, {transform_indices = @transform_5, window_bounds = array<i64: 1, 64, 128>}]} {
    %c0 = arith.constant 0 : index
    %c0_0 = arith.constant 0 : index
    %c0_1 = arith.constant 0 : index
    %0 = vector.load %arg1[%c0, %c0_0, %c0_1] : memref<1x64x128xf32, #tpu.memory_space<vmem>>, vector<1x64x128xf32>
    %1 = vector.shape_cast %0 : vector<1x64x128xf32> to vector<64x128xf32>
    %2 = arith.truncf %1 : vector<64x128xf32> to vector<64x128xbf16>
    %c0_2 = arith.constant 0 : index
    %c0_3 = arith.constant 0 : index
    %3 = vector.load %arg2[%c0_2, %c0_3] : memref<128x384xbf16, #tpu.memory_space<vmem>>, vector<128x384xbf16>
    %cst = arith.constant dense<0.000000e+00> : vector<64x384xf32>
    %4 = tpu.matmul %2, %3, %cst {dimension_numbers = #tpu.dot_dimension_numbers<[1], [0], [0], [1], [0, 0, 1, 1], [], []>} : vector<64x128xbf16>, vector<128x384xbf16>, vector<64x384xf32> -> vector<64x384xf32>
    %5 = vector.extract_strided_slice %4 {offsets = [0, 0], sizes = [64, 32], strides = [1, 1]} : vector<64x384xf32> to vector<64x32xf32>
    %6 = arith.truncf %5 : vector<64x32xf32> to vector<64x32xbf16>
    %7 = vector.extract_strided_slice %4 {offsets = [0, 128], sizes = [64, 32], strides = [1, 1]} : vector<64x384xf32> to vector<64x32xf32>
    %8 = arith.truncf %7 : vector<64x32xf32> to vector<64x32xbf16>
    %9 = vector.extract_strided_slice %4 {offsets = [0, 256], sizes = [64, 32], strides = [1, 1]} : vector<64x384xf32> to vector<64x32xf32>
    %10 = arith.truncf %9 : vector<64x32xf32> to vector<64x32xbf16>
    %cst_4 = arith.constant dense<0.000000e+00> : vector<64x64xf32>
    %11 = tpu.matmul %6, %8, %cst_4 {dimension_numbers = #tpu.dot_dimension_numbers<[1], [1], [0], [0], [0, 0, 1, 0], [], []>} : vector<64x32xbf16>, vector<64x32xbf16>, vector<64x64xf32> -> vector<64x64xf32>
    %cst_5 = arith.constant dense<0xFF800000> : vector<64xf32>
    %12 = vector.multi_reduction <maximumf>, %11, %cst_5 [1] : vector<64x64xf32> to vector<64xf32>
    %13 = vector.shape_cast %12 : vector<64xf32> to vector<64x1xf32>
    %14 = vector.broadcast %13 : vector<64x1xf32> to vector<64x64xf32>
    %15 = arith.subf %11, %14 : vector<64x64xf32>
    %16 = math.exp %15 : vector<64x64xf32>
    %cst_6 = arith.constant dense<0.000000e+00> : vector<64xf32>
    %17 = vector.multi_reduction <add>, %16, %cst_6 [1] : vector<64x64xf32> to vector<64xf32>
    %18 = vector.shape_cast %17 : vector<64xf32> to vector<64x1xf32>
    %19 = tpu.reciprocal %18 {approx = true} : vector<64x1xf32> -> vector<64x1xf32>
    %20 = vector.broadcast %19 : vector<64x1xf32> to vector<64x64xf32>
    %21 = arith.mulf %16, %20 : vector<64x64xf32>
    %22 = arith.truncf %21 : vector<64x64xf32> to vector<64x64xbf16>
    %cst_7 = arith.constant dense<0.000000e+00> : vector<64x32xf32>
    %23 = tpu.matmul %22, %10, %cst_7 {dimension_numbers = #tpu.dot_dimension_numbers<[1], [0], [0], [1], [0, 0, 1, 1], [], []>} : vector<64x64xbf16>, vector<64x32xbf16>, vector<64x32xf32> -> vector<64x32xf32>
    %24 = vector.extract_strided_slice %4 {offsets = [0, 32], sizes = [64, 32], strides = [1, 1]} : vector<64x384xf32> to vector<64x32xf32>
    %25 = arith.truncf %24 : vector<64x32xf32> to vector<64x32xbf16>
    %26 = vector.extract_strided_slice %4 {offsets = [0, 160], sizes = [64, 32], strides = [1, 1]} : vector<64x384xf32> to vector<64x32xf32>
    %27 = arith.truncf %26 : vector<64x32xf32> to vector<64x32xbf16>
    %28 = vector.extract_strided_slice %4 {offsets = [0, 288], sizes = [64, 32], strides = [1, 1]} : vector<64x384xf32> to vector<64x32xf32>
    %29 = arith.truncf %28 : vector<64x32xf32> to vector<64x32xbf16>
    %cst_8 = arith.constant dense<0.000000e+00> : vector<64x64xf32>
    %30 = tpu.matmul %25, %27, %cst_8 {dimension_numbers = #tpu.dot_dimension_numbers<[1], [1], [0], [0], [0, 0, 1, 0], [], []>} : vector<64x32xbf16>, vector<64x32xbf16>, vector<64x64xf32> -> vector<64x64xf32>
    %cst_9 = arith.constant dense<0xFF800000> : vector<64xf32>
    %31 = vector.multi_reduction <maximumf>, %30, %cst_9 [1] : vector<64x64xf32> to vector<64xf32>
    %32 = vector.shape_cast %31 : vector<64xf32> to vector<64x1xf32>
    %33 = vector.broadcast %32 : vector<64x1xf32> to vector<64x64xf32>
    %34 = arith.subf %30, %33 : vector<64x64xf32>
    %35 = math.exp %34 : vector<64x64xf32>
    %cst_10 = arith.constant dense<0.000000e+00> : vector<64xf32>
    %36 = vector.multi_reduction <add>, %35, %cst_10 [1] : vector<64x64xf32> to vector<64xf32>
    %37 = vector.shape_cast %36 : vector<64xf32> to vector<64x1xf32>
    %38 = tpu.reciprocal %37 {approx = true} : vector<64x1xf32> -> vector<64x1xf32>
    %39 = vector.broadcast %38 : vector<64x1xf32> to vector<64x64xf32>
    %40 = arith.mulf %35, %39 : vector<64x64xf32>
    %41 = arith.truncf %40 : vector<64x64xf32> to vector<64x64xbf16>
    %cst_11 = arith.constant dense<0.000000e+00> : vector<64x32xf32>
    %42 = tpu.matmul %41, %29, %cst_11 {dimension_numbers = #tpu.dot_dimension_numbers<[1], [0], [0], [1], [0, 0, 1, 1], [], []>} : vector<64x64xbf16>, vector<64x32xbf16>, vector<64x32xf32> -> vector<64x32xf32>
    %43 = vector.extract_strided_slice %4 {offsets = [0, 64], sizes = [64, 32], strides = [1, 1]} : vector<64x384xf32> to vector<64x32xf32>
    %44 = arith.truncf %43 : vector<64x32xf32> to vector<64x32xbf16>
    %45 = vector.extract_strided_slice %4 {offsets = [0, 192], sizes = [64, 32], strides = [1, 1]} : vector<64x384xf32> to vector<64x32xf32>
    %46 = arith.truncf %45 : vector<64x32xf32> to vector<64x32xbf16>
    %47 = vector.extract_strided_slice %4 {offsets = [0, 320], sizes = [64, 32], strides = [1, 1]} : vector<64x384xf32> to vector<64x32xf32>
    %48 = arith.truncf %47 : vector<64x32xf32> to vector<64x32xbf16>
    %cst_12 = arith.constant dense<0.000000e+00> : vector<64x64xf32>
    %49 = tpu.matmul %44, %46, %cst_12 {dimension_numbers = #tpu.dot_dimension_numbers<[1], [1], [0], [0], [0, 0, 1, 0], [], []>} : vector<64x32xbf16>, vector<64x32xbf16>, vector<64x64xf32> -> vector<64x64xf32>
    %cst_13 = arith.constant dense<0xFF800000> : vector<64xf32>
    %50 = vector.multi_reduction <maximumf>, %49, %cst_13 [1] : vector<64x64xf32> to vector<64xf32>
    %51 = vector.shape_cast %50 : vector<64xf32> to vector<64x1xf32>
    %52 = vector.broadcast %51 : vector<64x1xf32> to vector<64x64xf32>
    %53 = arith.subf %49, %52 : vector<64x64xf32>
    %54 = math.exp %53 : vector<64x64xf32>
    %cst_14 = arith.constant dense<0.000000e+00> : vector<64xf32>
    %55 = vector.multi_reduction <add>, %54, %cst_14 [1] : vector<64x64xf32> to vector<64xf32>
    %56 = vector.shape_cast %55 : vector<64xf32> to vector<64x1xf32>
    %57 = tpu.reciprocal %56 {approx = true} : vector<64x1xf32> -> vector<64x1xf32>
    %58 = vector.broadcast %57 : vector<64x1xf32> to vector<64x64xf32>
    %59 = arith.mulf %54, %58 : vector<64x64xf32>
    %60 = arith.truncf %59 : vector<64x64xf32> to vector<64x64xbf16>
    %cst_15 = arith.constant dense<0.000000e+00> : vector<64x32xf32>
    %61 = tpu.matmul %60, %48, %cst_15 {dimension_numbers = #tpu.dot_dimension_numbers<[1], [0], [0], [1], [0, 0, 1, 1], [], []>} : vector<64x64xbf16>, vector<64x32xbf16>, vector<64x32xf32> -> vector<64x32xf32>
    %62 = vector.extract_strided_slice %4 {offsets = [0, 96], sizes = [64, 32], strides = [1, 1]} : vector<64x384xf32> to vector<64x32xf32>
    %63 = arith.truncf %62 : vector<64x32xf32> to vector<64x32xbf16>
    %64 = vector.extract_strided_slice %4 {offsets = [0, 224], sizes = [64, 32], strides = [1, 1]} : vector<64x384xf32> to vector<64x32xf32>
    %65 = arith.truncf %64 : vector<64x32xf32> to vector<64x32xbf16>
    %66 = vector.extract_strided_slice %4 {offsets = [0, 352], sizes = [64, 32], strides = [1, 1]} : vector<64x384xf32> to vector<64x32xf32>
    %67 = arith.truncf %66 : vector<64x32xf32> to vector<64x32xbf16>
    %cst_16 = arith.constant dense<0.000000e+00> : vector<64x64xf32>
    %68 = tpu.matmul %63, %65, %cst_16 {dimension_numbers = #tpu.dot_dimension_numbers<[1], [1], [0], [0], [0, 0, 1, 0], [], []>} : vector<64x32xbf16>, vector<64x32xbf16>, vector<64x64xf32> -> vector<64x64xf32>
    %cst_17 = arith.constant dense<0xFF800000> : vector<64xf32>
    %69 = vector.multi_reduction <maximumf>, %68, %cst_17 [1] : vector<64x64xf32> to vector<64xf32>
    %70 = vector.shape_cast %69 : vector<64xf32> to vector<64x1xf32>
    %71 = vector.broadcast %70 : vector<64x1xf32> to vector<64x64xf32>
    %72 = arith.subf %68, %71 : vector<64x64xf32>
    %73 = math.exp %72 : vector<64x64xf32>
    %cst_18 = arith.constant dense<0.000000e+00> : vector<64xf32>
    %74 = vector.multi_reduction <add>, %73, %cst_18 [1] : vector<64x64xf32> to vector<64xf32>
    %75 = vector.shape_cast %74 : vector<64xf32> to vector<64x1xf32>
    %76 = tpu.reciprocal %75 {approx = true} : vector<64x1xf32> -> vector<64x1xf32>
    %77 = vector.broadcast %76 : vector<64x1xf32> to vector<64x64xf32>
    %78 = arith.mulf %73, %77 : vector<64x64xf32>
    %79 = arith.truncf %78 : vector<64x64xf32> to vector<64x64xbf16>
    %cst_19 = arith.constant dense<0.000000e+00> : vector<64x32xf32>
    %80 = tpu.matmul %79, %67, %cst_19 {dimension_numbers = #tpu.dot_dimension_numbers<[1], [0], [0], [1], [0, 0, 1, 1], [], []>} : vector<64x64xbf16>, vector<64x32xbf16>, vector<64x32xf32> -> vector<64x32xf32>
    %81 = tpu.concatenate %23, %42, %61, %80 in 1 : vector<64x32xf32>, vector<64x32xf32>, vector<64x32xf32>, vector<64x32xf32> -> vector<64x128xf32>
    %82 = arith.truncf %81 : vector<64x128xf32> to vector<64x128xbf16>
    %c0_20 = arith.constant 0 : index
    %c0_21 = arith.constant 0 : index
    %83 = vector.load %arg4[%c0_20, %c0_21] : memref<128x128xbf16, #tpu.memory_space<vmem>>, vector<128x128xbf16>
    %cst_22 = arith.constant dense<0.000000e+00> : vector<64x128xf32>
    %84 = tpu.matmul %82, %83, %cst_22 {dimension_numbers = #tpu.dot_dimension_numbers<[1], [0], [0], [1], [0, 0, 1, 1], [], []>} : vector<64x128xbf16>, vector<128x128xbf16>, vector<64x128xf32> -> vector<64x128xf32>
    %c0_23 = arith.constant 0 : index
    %c0_24 = arith.constant 0 : index
    %85 = vector.load %arg5[%c0_23, %c0_24] : memref<1x128xf32, #tpu.memory_space<vmem>>, vector<1x128xf32>
    %86 = vector.broadcast %85 : vector<1x128xf32> to vector<64x128xf32>
    %87 = arith.addf %84, %86 : vector<64x128xf32>
    %88 = arith.addf %1, %87 : vector<64x128xf32>
    %89 = arith.truncf %88 : vector<64x128xf32> to vector<64x128xbf16>
    %c0_25 = arith.constant 0 : index
    %c0_26 = arith.constant 0 : index
    %c0_27 = arith.constant 0 : index
    %90 = vector.load %arg6[%c0_25, %c0_26, %c0_27] : memref<1x64x128xbf16, #tpu.memory_space<vmem>>, vector<1x64x128xbf16>
    %91 = vector.shape_cast %90 : vector<1x64x128xbf16> to vector<64x128xbf16>
    %92 = vector.shape_cast %89 : vector<64x128xbf16> to vector<1x64x128xbf16>
    tpu.vector_store %arg6[%c0_25, %c0_26, %c0_27], %92 {strides = array<i32>} : memref<1x64x128xbf16, #tpu.memory_space<vmem>>, vector<1x64x128xbf16>,
    return
  }
  func.func @transform_0(%arg0: i32) -> (i32, i32, i32) {
    %c0_i32 = arith.constant 0 : i32
    %c0_i32_0 = arith.constant 0 : i32
    %c0_i32_1 = arith.constant 0 : i32
    return %arg0, %c0_i32, %c0_i32_0 : i32, i32, i32
  }
  func.func @transform_1(%arg0: i32) -> (i32, i32) {
    %c0_i32 = arith.constant 0 : i32
    %c0_i32_0 = arith.constant 0 : i32
    %c0_i32_1 = arith.constant 0 : i32
    return %c0_i32, %c0_i32_0 : i32, i32
  }
  func.func @transform_2(%arg0: i32) -> (i32, i32) {
    %c0_i32 = arith.constant 0 : i32
    %c0_i32_0 = arith.constant 0 : i32
    %c0_i32_1 = arith.constant 0 : i32
    return %c0_i32, %c0_i32_0 : i32, i32
  }
  func.func @transform_3(%arg0: i32) -> (i32, i32) {
    %c0_i32 = arith.constant 0 : i32
    %c0_i32_0 = arith.constant 0 : i32
    %c0_i32_1 = arith.constant 0 : i32
    return %c0_i32, %c0_i32_0 : i32, i32
  }
  func.func @transform_4(%arg0: i32) -> (i32, i32) {
    %c0_i32 = arith.constant 0 : i32
    %c0_i32_0 = arith.constant 0 : i32
    %c0_i32_1 = arith.constant 0 : i32
    return %c0_i32, %c0_i32_0 : i32, i32
  }
  func.func @transform_5(%arg0: i32) -> (i32, i32, i32) {
    %c0_i32 = arith.constant 0 : i32
    %c0_i32_0 = arith.constant 0 : i32
    %c0_i32_1 = arith.constant 0 : i32
    return %arg0, %c0_i32, %c0_i32_0 : i32, i32, i32
  }
}

module attributes {stable_mosaic.version = 11 : i64} {
  func.func @_attn_residual_kernel(%arg0: i32, %arg1: memref<1x64x128xf32, #tpu.memory_space<vmem>>, %arg2: memref<128x384xbf16, #tpu.memory_space<vmem>>, %arg3: memref<1x384xf32, #tpu.memory_space<vmem>>, %arg4: memref<128x128xbf16, #tpu.memory_space<vmem>>, %arg5: memref<1x128xf32, #tpu.memory_space<vmem>>, %arg6: memref<1x64x128xbf16, #tpu.memory_space<vmem>>) attributes {dimension_semantics = [#tpu.dimension_semantics<parallel>], iteration_bounds = array<i64: 2>, scalar_prefetch = 0 : i64, scratch_operands = 0 : i64, tpu.core_type = #tpu.core_type<tc>, window_params = [{transform_indices = @transform_0, window_bounds = array<i64: 1, 64, 128>}, {pipeline_mode = #tpu.pipeline_mode<synchronous>, transform_indices = @transform_1, window_bounds = array<i64: 128, 384>}, {pipeline_mode = #tpu.pipeline_mode<synchronous>, transform_indices = @transform_2, window_bounds = array<i64: 1, 384>}, {pipeline_mode = #tpu.pipeline_mode<synchronous>, transform_indices = @transform_3, window_bounds = array<i64: 128, 128>}, {pipeline_mode = #tpu.pipeline_mode<synchronous>, transform_indices = @transform_4, window_bounds = array<i64: 1, 128>}, {transform_indices = @transform_5, window_bounds = array<i64: 1, 64, 128>}]} {
    %c0 = arith.constant 0 : index
    %c0_0 = arith.constant 0 : index
    %c0_1 = arith.constant 0 : index
    %0 = vector.load %arg1[%c0, %c0_0, %c0_1] : memref<1x64x128xf32, #tpu.memory_space<vmem>>, vector<1x64x128xf32>
    %1 = vector.shape_cast %0 : vector<1x64x128xf32> to vector<64x128xf32>
    %2 = arith.truncf %1 : vector<64x128xf32> to vector<64x128xbf16>
    %c0_2 = arith.constant 0 : index
    %c0_3 = arith.constant 0 : index
    %3 = vector.load %arg2[%c0_2, %c0_3] : memref<128x384xbf16, #tpu.memory_space<vmem>>, vector<128x384xbf16>
    %cst = arith.constant dense<0.000000e+00> : vector<64x384xf32>
    %4 = tpu.matmul %2, %3, %cst {dimension_numbers = #tpu.dot_dimension_numbers<[1], [0], [0], [1], [0, 0, 1, 1], [], []>} : vector<64x128xbf16>, vector<128x384xbf16>, vector<64x384xf32> -> vector<64x384xf32>
    %5 = vector.extract_strided_slice %4 {offsets = [0, 0], sizes = [64, 32], strides = [1, 1]} : vector<64x384xf32> to vector<64x32xf32>
    %6 = arith.truncf %5 : vector<64x32xf32> to vector<64x32xbf16>
    %7 = vector.extract_strided_slice %4 {offsets = [0, 128], sizes = [64, 32], strides = [1, 1]} : vector<64x384xf32> to vector<64x32xf32>
    %8 = arith.truncf %7 : vector<64x32xf32> to vector<64x32xbf16>
    %9 = vector.extract_strided_slice %4 {offsets = [0, 256], sizes = [64, 32], strides = [1, 1]} : vector<64x384xf32> to vector<64x32xf32>
    %10 = arith.truncf %9 : vector<64x32xf32> to vector<64x32xbf16>
    %cst_4 = arith.constant dense<0.000000e+00> : vector<64x64xf32>
    %11 = tpu.matmul %6, %8, %cst_4 {dimension_numbers = #tpu.dot_dimension_numbers<[1], [1], [0], [0], [0, 0, 1, 0], [], []>} : vector<64x32xbf16>, vector<64x32xbf16>, vector<64x64xf32> -> vector<64x64xf32>
    %cst_5 = arith.constant dense<0xFF800000> : vector<64xf32>
    %12 = vector.multi_reduction <maximumf>, %11, %cst_5 [1] : vector<64x64xf32> to vector<64xf32>
    %13 = vector.shape_cast %12 : vector<64xf32> to vector<64x1xf32>
    %14 = vector.broadcast %13 : vector<64x1xf32> to vector<64x64xf32>
    %15 = arith.subf %11, %14 : vector<64x64xf32>
    %16 = math.exp %15 : vector<64x64xf32>
    %cst_6 = arith.constant dense<0.000000e+00> : vector<64xf32>
    %17 = vector.multi_reduction <add>, %16, %cst_6 [1] : vector<64x64xf32> to vector<64xf32>
    %18 = vector.shape_cast %17 : vector<64xf32> to vector<64x1xf32>
    %19 = tpu.reciprocal %18 {approx = true} : vector<64x1xf32> -> vector<64x1xf32>
    %20 = vector.broadcast %19 : vector<64x1xf32> to vector<64x64xf32>
    %21 = arith.mulf %16, %20 : vector<64x64xf32>
    %22 = arith.truncf %21 : vector<64x64xf32> to vector<64x64xbf16>
    %cst_7 = arith.constant dense<0.000000e+00> : vector<64x32xf32>
    %23 = tpu.matmul %22, %10, %cst_7 {dimension_numbers = #tpu.dot_dimension_numbers<[1], [0], [0], [1], [0, 0, 1, 1], [], []>} : vector<64x64xbf16>, vector<64x32xbf16>, vector<64x32xf32> -> vector<64x32xf32>
    %24 = vector.extract_strided_slice %4 {offsets = [0, 32], sizes = [64, 32], strides = [1, 1]} : vector<64x384xf32> to vector<64x32xf32>
    %25 = arith.truncf %24 : vector<64x32xf32> to vector<64x32xbf16>
    %26 = vector.extract_strided_slice %4 {offsets = [0, 160], sizes = [64, 32], strides = [1, 1]} : vector<64x384xf32> to vector<64x32xf32>
    %27 = arith.truncf %26 : vector<64x32xf32> to vector<64x32xbf16>
    %28 = vector.extract_strided_slice %4 {offsets = [0, 288], sizes = [64, 32], strides = [1, 1]} : vector<64x384xf32> to vector<64x32xf32>
    %29 = arith.truncf %28 : vector<64x32xf32> to vector<64x32xbf16>
    %cst_8 = arith.constant dense<0.000000e+00> : vector<64x64xf32>
    %30 = tpu.matmul %25, %27, %cst_8 {dimension_numbers = #tpu.dot_dimension_numbers<[1], [1], [0], [0], [0, 0, 1, 0], [], []>} : vector<64x32xbf16>, vector<64x32xbf16>, vector<64x64xf32> -> vector<64x64xf32>
    %cst_9 = arith.constant dense<0xFF800000> : vector<64xf32>
    %31 = vector.multi_reduction <maximumf>, %30, %cst_9 [1] : vector<64x64xf32> to vector<64xf32>
    %32 = vector.shape_cast %31 : vector<64xf32> to vector<64x1xf32>
    %33 = vector.broadcast %32 : vector<64x1xf32> to vector<64x64xf32>
    %34 = arith.subf %30, %33 : vector<64x64xf32>
    %35 = math.exp %34 : vector<64x64xf32>
    %cst_10 = arith.constant dense<0.000000e+00> : vector<64xf32>
    %36 = vector.multi_reduction <add>, %35, %cst_10 [1] : vector<64x64xf32> to vector<64xf32>
    %37 = vector.shape_cast %36 : vector<64xf32> to vector<64x1xf32>
    %38 = tpu.reciprocal %37 {approx = true} : vector<64x1xf32> -> vector<64x1xf32>
    %39 = vector.broadcast %38 : vector<64x1xf32> to vector<64x64xf32>
    %40 = arith.mulf %35, %39 : vector<64x64xf32>
    %41 = arith.truncf %40 : vector<64x64xf32> to vector<64x64xbf16>
    %cst_11 = arith.constant dense<0.000000e+00> : vector<64x32xf32>
    %42 = tpu.matmul %41, %29, %cst_11 {dimension_numbers = #tpu.dot_dimension_numbers<[1], [0], [0], [1], [0, 0, 1, 1], [], []>} : vector<64x64xbf16>, vector<64x32xbf16>, vector<64x32xf32> -> vector<64x32xf32>
    %43 = vector.extract_strided_slice %4 {offsets = [0, 64], sizes = [64, 32], strides = [1, 1]} : vector<64x384xf32> to vector<64x32xf32>
    %44 = arith.truncf %43 : vector<64x32xf32> to vector<64x32xbf16>
    %45 = vector.extract_strided_slice %4 {offsets = [0, 192], sizes = [64, 32], strides = [1, 1]} : vector<64x384xf32> to vector<64x32xf32>
    %46 = arith.truncf %45 : vector<64x32xf32> to vector<64x32xbf16>
    %47 = vector.extract_strided_slice %4 {offsets = [0, 320], sizes = [64, 32], strides = [1, 1]} : vector<64x384xf32> to vector<64x32xf32>
    %48 = arith.truncf %47 : vector<64x32xf32> to vector<64x32xbf16>
    %cst_12 = arith.constant dense<0.000000e+00> : vector<64x64xf32>
    %49 = tpu.matmul %44, %46, %cst_12 {dimension_numbers = #tpu.dot_dimension_numbers<[1], [1], [0], [0], [0, 0, 1, 0], [], []>} : vector<64x32xbf16>, vector<64x32xbf16>, vector<64x64xf32> -> vector<64x64xf32>
    %cst_13 = arith.constant dense<0xFF800000> : vector<64xf32>
    %50 = vector.multi_reduction <maximumf>, %49, %cst_13 [1] : vector<64x64xf32> to vector<64xf32>
    %51 = vector.shape_cast %50 : vector<64xf32> to vector<64x1xf32>
    %52 = vector.broadcast %51 : vector<64x1xf32> to vector<64x64xf32>
    %53 = arith.subf %49, %52 : vector<64x64xf32>
    %54 = math.exp %53 : vector<64x64xf32>
    %cst_14 = arith.constant dense<0.000000e+00> : vector<64xf32>
    %55 = vector.multi_reduction <add>, %54, %cst_14 [1] : vector<64x64xf32> to vector<64xf32>
    %56 = vector.shape_cast %55 : vector<64xf32> to vector<64x1xf32>
    %57 = tpu.reciprocal %56 {approx = true} : vector<64x1xf32> -> vector<64x1xf32>
    %58 = vector.broadcast %57 : vector<64x1xf32> to vector<64x64xf32>
    %59 = arith.mulf %54, %58 : vector<64x64xf32>
    %60 = arith.truncf %59 : vector<64x64xf32> to vector<64x64xbf16>
    %cst_15 = arith.constant dense<0.000000e+00> : vector<64x32xf32>
    %61 = tpu.matmul %60, %48, %cst_15 {dimension_numbers = #tpu.dot_dimension_numbers<[1], [0], [0], [1], [0, 0, 1, 1], [], []>} : vector<64x64xbf16>, vector<64x32xbf16>, vector<64x32xf32> -> vector<64x32xf32>
    %62 = vector.extract_strided_slice %4 {offsets = [0, 96], sizes = [64, 32], strides = [1, 1]} : vector<64x384xf32> to vector<64x32xf32>
    %63 = arith.truncf %62 : vector<64x32xf32> to vector<64x32xbf16>
    %64 = vector.extract_strided_slice %4 {offsets = [0, 224], sizes = [64, 32], strides = [1, 1]} : vector<64x384xf32> to vector<64x32xf32>
    %65 = arith.truncf %64 : vector<64x32xf32> to vector<64x32xbf16>
    %66 = vector.extract_strided_slice %4 {offsets = [0, 352], sizes = [64, 32], strides = [1, 1]} : vector<64x384xf32> to vector<64x32xf32>
    %67 = arith.truncf %66 : vector<64x32xf32> to vector<64x32xbf16>
    %cst_16 = arith.constant dense<0.000000e+00> : vector<64x64xf32>
    %68 = tpu.matmul %63, %65, %cst_16 {dimension_numbers = #tpu.dot_dimension_numbers<[1], [1], [0], [0], [0, 0, 1, 0], [], []>} : vector<64x32xbf16>, vector<64x32xbf16>, vector<64x64xf32> -> vector<64x64xf32>
    %cst_17 = arith.constant dense<0xFF800000> : vector<64xf32>
    %69 = vector.multi_reduction <maximumf>, %68, %cst_17 [1] : vector<64x64xf32> to vector<64xf32>
    %70 = vector.shape_cast %69 : vector<64xf32> to vector<64x1xf32>
    %71 = vector.broadcast %70 : vector<64x1xf32> to vector<64x64xf32>
    %72 = arith.subf %68, %71 : vector<64x64xf32>
    %73 = math.exp %72 : vector<64x64xf32>
    %cst_18 = arith.constant dense<0.000000e+00> : vector<64xf32>
    %74 = vector.multi_reduction <add>, %73, %cst_18 [1] : vector<64x64xf32> to vector<64xf32>
    %75 = vector.shape_cast %74 : vector<64xf32> to vector<64x1xf32>
    %76 = tpu.reciprocal %75 {approx = true} : vector<64x1xf32> -> vector<64x1xf32>
    %77 = vector.broadcast %76 : vector<64x1xf32> to vector<64x64xf32>
    %78 = arith.mulf %73, %77 : vector<64x64xf32>
    %79 = arith.truncf %78 : vector<64x64xf32> to vector<64x64xbf16>
    %cst_19 = arith.constant dense<0.000000e+00> : vector<64x32xf32>
    %80 = tpu.matmul %79, %67, %cst_19 {dimension_numbers = #tpu.dot_dimension_numbers<[1], [0], [0], [1], [0, 0, 1, 1], [], []>} : vector<64x64xbf16>, vector<64x32xbf16>, vector<64x32xf32> -> vector<64x32xf32>
    %81 = tpu.concatenate %23, %42, %61, %80 in 1 : vector<64x32xf32>, vector<64x32xf32>, vector<64x32xf32>, vector<64x32xf32> -> vector<64x128xf32>
    %82 = arith.truncf %81 : vector<64x128xf32> to vector<64x128xbf16>
    %c0_20 = arith.constant 0 : index
    %c0_21 = arith.constant 0 : index
    %83 = vector.load %arg4[%c0_20, %c0_21] : memref<128x128xbf16, #tpu.memory_space<vmem>>, vector<128x128xbf16>
    %cst_22 = arith.constant dense<0.000000e+00> : vector<64x128xf32>
    %84 = tpu.matmul %82, %83, %cst_22 {dimension_numbers = #tpu.dot_dimension_numbers<[1], [0], [0], [1], [0, 0, 1, 1], [], []>} : vector<64x128xbf16>, vector<128x128xbf16>, vector<64x128xf32> -> vector<64x128xf32>
    %c0_23 = arith.constant 0 : index
    %c0_24 = arith.constant 0 : index
    %85 = vector.load %arg5[%c0_23, %c0_24] : memref<1x128xf32, #tpu.memory_space<vmem>>, vector<1x128xf32>
    %86 = vector.broadcast %85 : vector<1x128xf32> to vector<64x128xf32>
    %87 = arith.addf %84, %86 : vector<64x128xf32>
    %88 = arith.addf %1, %87 : vector<64x128xf32>
    %89 = arith.truncf %88 : vector<64x128xf32> to vector<64x128xbf16>
    %c0_25 = arith.constant 0 : index
    %c0_26 = arith.constant 0 : index
    %c0_27 = arith.constant 0 : index
    %90 = vector.load %arg6[%c0_25, %c0_26, %c0_27] : memref<1x64x128xbf16, #tpu.memory_space<vmem>>, vector<1x64x128xbf16>
    %91 = vector.shape_cast %90 : vector<1x64x128xbf16> to vector<64x128xbf16>
    %92 = vector.shape_cast %89 : vector<64x128xbf16> to vector<1x64x128xbf16>
    tpu.vector_store %arg6[%c0_25, %c0_26, %c0_27], %92 {strides = array<i32>} : memref<1x64x128xbf16, #tpu.memory_space<vmem>>, vector<1x64x128xbf16>,
    return
  }
  func.func @transform_0(%arg0: i32) -> (i32, i32, i32) {
    %c0_i32 = arith.constant 0 : i32
    %c0_i32_0 = arith.constant 0 : i32
    %c0_i32_1 = arith.constant 0 : i32
    return %arg0, %c0_i32, %c0_i32_0 : i32, i32, i32
  }
  func.func @transform_1(%arg0: i32) -> (i32, i32) {
    %c0_i32 = arith.constant 0 : i32
    %c0_i32_0 = arith.constant 0 : i32
    %c0_i32_1 = arith.constant 0 : i32
    return %c0_i32, %c0_i32_0 : i32, i32
  }
  func.func @transform_2(%arg0: i32) -> (i32, i32) {
    %c0_i32 = arith.constant 0 : i32
    %c0_i32_0 = arith.constant 0 : i32
    %c0_i32_1 = arith.constant 0 : i32
    return %c0_i32, %c0_i32_0 : i32, i32
  }
  func.func @transform_3(%arg0: i32) -> (i32, i32) {
    %c0_i32 = arith.constant 0 : i32
    %c0_i32_0 = arith.constant 0 : i32
    %c0_i32_1 = arith.constant 0 : i32
    return %c0_i32, %c0_i32_0 : i32, i32
  }
  func.func @transform_4(%arg0: i32) -> (i32, i32) {
    %c0_i32 = arith.constant 0 : i32
    %c0_i32_0 = arith.constant 0 : i32
    %c0_i32_1 = arith.constant 0 : i32
    return %c0_i32, %c0_i32_0 : i32, i32
  }
  func.func @transform_5(%arg0: i32) -> (i32, i32, i32) {
    %c0_i32 = arith.constant 0 : i32
    %c0_i32_0 = arith.constant 0 : i32
    %c0_i32_1 = arith.constant 0 : i32
    return %arg0, %c0_i32, %c0_i32_0 : i32, i32, i32
  }
}

</mosaic_0001>

<bundles_post_ra>
// kernel: tpu_custom_call.1
= control target key start
LH: loop header
LB: loop body
LE: loop exit
PB: predicated region body
PF: predicated region fallthrough
CT: control target
= control target key end

     0   :  { %10 = vsyncpa [#allocation3], 0  ;;  %s4104_s0 = inlined_call_operand.hbm [shape: f32[2,64,128], index: 0, kind: input, shape index: {}]   ;;  %s4105_s1 = inlined_call_operand.hbm [shape: bf16[128,384], index: 1, kind: input, shape index: {}]   ;;  %s4106_s2 = inlined_call_operand.hbm [shape: f32[1,384], index: 2, kind: input, shape index: {}]   ;;  %s4107_s3 = inlined_call_operand.hbm [shape: bf16[128,128], index: 3, kind: input, shape index: {}]   ;;  %s4108_s4 = inlined_call_operand.hbm [shape: f32[1,128], index: 4, kind: input, shape index: {}]   ;;  %s4109_s5 = inlined_call_operand.hbm [shape: bf16[2,64,128], index: 5, kind: output, shape index: {}]  }
   0x1   :  { %12 = vsyncpa [#allocation3 + $0x1], 0 }
   0x2   :  { %13 = vsyncpa [#allocation6], 0 }
   0x3   :  { %14 = vsyncpa [#allocation9], 0 }
   0x4   :  { %15 = vsyncpa [#allocation4], 0 }
   0x5   :  { %17 = vsyncpa [#allocation4 + $0x1], 0  ;;  %s3191_s18 = smov 0   ;;  %s3193_s19 = smov 0  }
   0x6   :  { %s3195_s20 = smov 0   ;;  %s3197_s21 = smov 0  }
   0x7 LB: > { %s3212_s22 = sadd.s32 4294967295, %s3142_s21   ;;  %s2184_s23 = sadd.s32 4294967294, %s3142_s21   ;;  %s3142_s21 = sphi %s3197_s21, %s4132_s21   ;;  %s3138_s20 = sphi %s3195_s20, %s4131_s20   ;;  %s3134_s19 = sphi %s3193_s19, %s4130_s19   ;;  %s3130_s18 = sphi %s3191_s18, %s4129_s18  }
   0x8   : > { %p43_p0 = scmp.ne.s32.totalorder %s3134_s19, %s3130_s18  ;;  %p4110_p1 = scmp.eq.s32.totalorder %s3212_s22, 0 }
   0x9   : > { %p157_p3 = scmp.eq.s32.totalorder %s2184_s23, 1  ;;  %p2185_p5 = scmp.ge.s32.totalorder %s3142_s21, 1 }
   0xa   : > { %p3221_p4 = por %p4110_p1, %p43_p0  ;;  %p164_p7 = scmp.lt.s32.totalorder %s3142_s21, 3 }
   0xb   : > { %p3226_p6 = por %p157_p3, %p43_p0  ;;  %s3144_s27 = smov [#allocation5]  }
   0xc   : > { %s4113_s24 = scalar_select %p3221_p4, 1, 0 }
   0xd   : > { %s4114_s25 = scalar_select %p3226_p6, 1, 0 }
   0xe   : > { %p3231_p8 = pnand %p2185_p5, %p164_p7  ;;  %s176_s28 = sshll.u32 %s3144_s27, 4  ;;  %s3235_s28 = int_to_ptr.vmem [resolvable:$true] %s176_s28 }
   0xf   : > { %s3145_s30 = smov [#allocation8]   ;;  %s2926_s9 = scalar_lea.hbm %s4105_s1, 3072 }
  0x10   : > { %s4115_s26 = scalar_select %p3231_p8, 1, 0 }
  0x11   : > { %p2612_p9 = pneg %p3231_p8  ;;  %s200_s6 = sshll.u32 %s3145_s30, 4  ;;  %s3246_s6 = int_to_ptr.vmem [resolvable:$true] %s200_s6 }
  0x12   : > { %p2927_p12 = scmp.ne.s32.totalorder %s4105_s1, %s2926_s9  ;;  %p2933_p5 = scmp.lt.u32.totalorder %s2926_s9, %s4105_s1 }
  0x13   : > { %p3242_p11 = pnand %p2612_p9, %p4110_p1 }
  0x15   : > { %p3256_p13 = pneg %p3242_p11 }
  0x17   : > { %p2929_p0 = pnand %p3256_p13, %p2927_p12 }
  0x19   : > { %p2930_p3 = pneg %p2929_p0 }
  0x1b   : > { %p2935_p7 = pnand %p2933_p5, %p2930_p3 }
  0x1d   : > { %2938 = shalt.err (!%p2935_p7)
}
  0x1e   : > { %s2939_s15 = scalar_lea.vmem %s3235_s28, 3072  ;;  %p2947_p2 = scmp.lt.s32.totalorder %s3235_s28, %s3235_s28 }
  0x1f   : > { %p2940_p9 = scmp.ne.s32.totalorder %s3235_s28, %s2939_s15  ;;  %p2948_p6 = scmp.lt.s32.totalorder %s2939_s15, %s2939_s15 }
  0x21   : > { %p2942_p10 = pnand %p2940_p9, %p3256_p13  ;;  %p2949_p12 = por %p2948_p6, %p2947_p2 }
  0x23   : > { %p2943_p1 = pneg %p2942_p10 }
  0x25   : > { %p2950_p0 = pnand %p2949_p12, %p2943_p1 }
  0x27   : > { %2953 = shalt.err (!%p2950_p0)
}
  0x28   : > { %s3146_s16 = smov 192   ;;  %s3147_s17 = smov 12  }
  0x29   : > { %2615 = dma.hbm_to_vmem [thread:$0]  (!%p3242_p11), %s4105_s1, 3072, %s3235_s28, [#allocation6], %s3146_s16, %s3146_s16, %s3147_s17  }
  0x2a   : > { %s2954_s8 = scalar_lea.hbm %s4107_s3, 1024 }
  0x2b   : > { %p2955_p2 = scmp.ne.s32.totalorder %s4107_s3, %s2954_s8  ;;  %p2961_p10 = scmp.lt.u32.totalorder %s2954_s8, %s4107_s3 }
  0x2d   : > { %p2957_p1 = pnand %p2955_p2, %p3256_p13 }
  0x2f   : > { %p2958_p6 = pneg %p2957_p1 }
  0x31   : > { %p2963_p3 = pnand %p2961_p10, %p2958_p6 }
  0x33   : > { %2966 = shalt.err (!%p2963_p3)
}
  0x34   : > { %s2967_s28 = scalar_lea.vmem %s3246_s6, 1024  ;;  %p2975_p12 = scmp.lt.s32.totalorder %s3246_s6, %s3246_s6 }
  0x35   : > { %p2968_p5 = scmp.ne.s32.totalorder %s3246_s6, %s2967_s28  ;;  %p2976_p0 = scmp.lt.s32.totalorder %s2967_s28, %s2967_s28 }
  0x37   : > { %p2970_p7 = pnand %p2968_p5, %p3256_p13  ;;  %p2977_p2 = por %p2976_p0, %p2975_p12 }
  0x39   : > { %p2971_p9 = pneg %p2970_p7 }
  0x3b   : > { %p2978_p1 = pnand %p2977_p2, %p2971_p9 }
  0x3d   : > { %2981 = shalt.err (!%p2978_p1)
}
  0x3e   : > { %s3148_s14 = smov 64   ;;  %s3149_s15 = smov 4  }
  0x3f   : > { %2621 = dma.hbm_to_vmem [thread:$0]  (!%p3242_p11), %s4107_s3, 1024, %s3246_s6, [#allocation9], %s3148_s14, %s3148_s14, %s3149_s15  }
  0x40   : > { %s3150_s23 = smov [#allocation7]   ;;  %s3151_s30 = smov [#allocation10]  }
  0x41   : > { %s190_s27 = sshll.u32 %s3150_s23, 4  ;;  %s214_s7 = sshll.u32 %s3151_s30, 4  ;;  %s191_s27 = int_to_ptr.vmem [resolvable:$true] %s190_s27  ;;  %s3300_s7 = int_to_ptr.vmem [resolvable:$true] %s214_s7 }
  0x42   : > { %s2982_s10 = scalar_lea.hbm %s4106_s2, 48 }
  0x43   : > { %p2983_p6 = scmp.ne.s32.totalorder %s4106_s2, %s2982_s10  ;;  %p2989_p5 = scmp.lt.u32.totalorder %s2982_s10, %s4106_s2 }
  0x45   : > { %p2985_p10 = pnand %p2983_p6, %p3256_p13 }
  0x47   : > { %p2986_p3 = pneg %p2985_p10 }
  0x49   : > { %p2991_p7 = pnand %p2989_p5, %p2986_p3 }
  0x4b   : > { %2994 = shalt.err (!%p2991_p7)
}
  0x4c   : > { %s2995_s14 = scalar_lea.vmem %s191_s27, 48  ;;  %s3002_s15 = scalar_lea.vmem %s191_s27, 64 }
  0x4d   : > { %p2996_p9 = scmp.ne.s32.totalorder %s191_s27, %s2995_s14  ;;  %p3003_p2 = scmp.lt.s32.totalorder %s191_s27, %s191_s27 }
  0x4e   : > { %p3004_p1 = scmp.lt.s32.totalorder %s3002_s15, %s2995_s14 }
  0x4f   : > { %p2998_p12 = pnand %p2996_p9, %p3256_p13 }
  0x50   : > { %p3005_p4 = por %p3004_p1, %p3003_p2 }
  0x51   : > { %p2999_p0 = pneg %p2998_p12 }
  0x53   : > { %p3006_p8 = pnand %p3005_p4, %p2999_p0 }
  0x55   : > { %3009 = shalt.err (!%p3006_p8)
}
  0x56   : > { %2618 = dma.hbm_to_vmem [thread:$0]  (!%p3242_p11), %s4106_s2, 48, %s191_s27, [#allocation6]  }
  0x57   : > { %s3010_s8 = scalar_lea.hbm %s4108_s4, 16 }
  0x58   : > { %p3011_p6 = scmp.ne.s32.totalorder %s4108_s4, %s3010_s8  ;;  %p3017_p4 = scmp.lt.u32.totalorder %s3010_s8, %s4108_s4 }
  0x5a   : > { %p3013_p10 = pnand %p3011_p6, %p3256_p13 }
  0x5c   : > { %p3014_p3 = pneg %p3013_p10 }
  0x5e   : > { %p3019_p8 = pnand %p3017_p4, %p3014_p3 }
  0x60   : > { %3022 = shalt.err (!%p3019_p8)
}
  0x61   : > { %s3023_s27 = scalar_lea.vmem %s3300_s7, 16  ;;  %s3030_s28 = scalar_lea.vmem %s3300_s7, 32 }
  0x62   : > { %p3024_p5 = scmp.ne.s32.totalorder %s3300_s7, %s3023_s27  ;;  %p3031_p12 = scmp.lt.s32.totalorder %s3300_s7, %s3300_s7 }
  0x63   : > { %p3032_p0 = scmp.lt.s32.totalorder %s3030_s28, %s3023_s27 }
  0x64   : > { %p3026_p7 = pnand %p3024_p5, %p3256_p13 }
  0x65   : > { %p3033_p2 = por %p3032_p0, %p3031_p12 }
  0x66   : > { %p3027_p9 = pneg %p3026_p7 }
  0x68   : > { %p3034_p1 = pnand %p3033_p2, %p3027_p9 }
  0x6a   : > { %3037 = shalt.err (!%p3034_p1)
}
  0x6b   : > { %2624 = dma.hbm_to_vmem [thread:$0]  (!%p3242_p11), %s4108_s4, 16, %s3300_s7, [#allocation9]  }
  0x6c   : > { %s3345_s12 = sadd.s32 1, %s3142_s21   ;;  %s30_s15 = sadd.s32 1, %s3138_s20 }
  0x6d   : > { %s27_s29 = ssub.s32 %s3142_s21, %s3345_s12  ;;  %p37_p6 = scmp.ne.s32.totalorder %s3138_s20, %s3134_s19 }
  0x6e   : > { %p28_p13 = scmp.eq.s32.totalorder %s27_s29, 0  ;;  %p38_p10 = scmp.eq.s32.totalorder %s3142_s21, 0 }
  0x6f   : > { %p4118_p4 = scmp.eq.s32.totalorder %s3212_s22, 1  ;;  %p2637_p5 = scmp.lt.s32.totalorder %s3142_s21, 2 }
  0x70   : > { %s3354_s16 = scalar_select %p28_p13, %s3138_s20, %s30_s15  }
  0x71   : > { %p39_p3 = por %p38_p10, %p37_p6  ;;  %p3358_p8 = por %p4118_p4, %p37_p6 }
  0x72   : > { %s225_s23 = sand.u32 1, %s3138_s20   ;;  %s2279_s7 = sshll.u32 %s3142_s21, 10 }
  0x73   : > { %s2191_s30 = sshll.u32 %s225_s23, 6  ;;  %s3368_s10 = scalar_lea.hbm %s4104_s0, %s2279_s7 }
  0x74   : > { %s229_s11 = scalar_lea.vmem [#allocation2], %s2191_s30  ;;  %p3372_p11 = pnand %p2637_p5, %p39_p3 }
  0x75   : > { %s236_s13 = sshll.u32 %s229_s11, 4  ;;  %s3376_s28 = scalar_lea.sflag [#allocation3], %s225_s23  ;;  %s3370_s13 = int_to_ptr.vmem [resolvable:$true] %s236_s13 }
  0x76   : > { %s3038_s6 = scalar_lea.hbm %s3368_s10, 1024  ;;  %p3040_p9 = pneg %p3372_p11 }
  0x77   : > { %p3039_p7 = scmp.ne.s32.totalorder %s3368_s10, %s3038_s6  ;;  %s3043_s15 = scalar_lea.hbm %s4104_s0, 2048 }
  0x78   : > { %p3044_p2 = scmp.lt.u32.totalorder %s3368_s10, %s4104_s0  ;;  %p3045_p1 = scmp.lt.u32.totalorder %s3043_s15, %s3038_s6 }
  0x79   : > { %p3041_p12 = pnand %p3040_p9, %p3039_p7  ;;  %p3047_p6 = scmp.lt.u32.totalorder %s3038_s6, %s3368_s10 }
  0x7a   : > { %p3046_p13 = por %p3045_p1, %p3044_p2 }
  0x7b   : > { %p3042_p0 = pneg %p3041_p12 }
  0x7c   : > { %p3048_p10 = por %p3047_p6, %p3046_p13 }
  0x7e   : > { %p3049_p3 = pnand %p3048_p10, %p3042_p0 }
  0x80   : > { %3052 = shalt.err (!%p3049_p3)
}
  0x81   : > { %s3053_s23 = scalar_lea.vmem %s3370_s13, 1024  ;;  %s3152_s8 = smov [#allocation2]  }
  0x82   : > { %p3054_p4 = scmp.ne.s32.totalorder %s3370_s13, %s3053_s23  ;;  %s3058_s9 = sshll.u32 %s3152_s8, 4  ;;  %s3059_s9 = int_to_ptr.vmem [resolvable:$false] %s3058_s9 }
  0x83   : > { %s3060_s11 = scalar_lea.vmem %s3059_s9, 2048  ;;  %p3061_p12 = scmp.lt.s32.totalorder %s3370_s13, %s3059_s9 }
  0x84   : > { %p3056_p5 = pnand %p3054_p4, %p3040_p9  ;;  %p3062_p2 = scmp.lt.s32.totalorder %s3060_s11, %s3053_s23 }
  0x86   : > { %p3057_p7 = pneg %p3056_p5  ;;  %p3063_p1 = por %p3062_p2, %p3061_p12 }
  0x88   : > { %p3064_p13 = pnand %p3063_p1, %p3057_p7 }
  0x8a   : > { %3067 = shalt.err (!%p3064_p13)
}
  0x8b   : > { %s3153_s6 = smov 128   ;;  %s3154_s14 = smov 8  }
  0x8c   : > { %2628 = dma.hbm_to_vmem [thread:$0]  (!%p3372_p11), %s3368_s10, 1024, %s3370_s13, %s3376_s28, %s3153_s6, %s3153_s6, %s3154_s14  }
  0x8d   : > { %p4121_p9 = scmp.ne.s32.totalorder %s4115_s26, 0 }
  0x8e   : > { %s3407_s29 = sand.u32 (!%p4121_p9), 1, %s3134_s19   ;;  %p4122_p0 = scmp.ne.s32.totalorder (!%p4121_p9), %s4113_s24, 0 }
  0x8f   : > { %248 = sbr.rel (%p4121_p9) target bundleno = 3033 (0xbd9), region = 40  ;;  %s2195_s15 = sshll.u32 (!%p4121_p9), %s3407_s29, 6 }
  0x90   : > { %s251_s30 = scalar_lea.sflag (!%p4121_p9), [#allocation3], %s3407_s29  ;;  %s3411_s7 = scalar_lea.vmem (!%p4121_p9), [#allocation2], %s2195_s15 }
  0x96   : > { %3113 = dma.done.wait (%p4122_p0), %s251_s30, 1024  }
  0x97   : > { %3115 = vsyncadd (%p4122_p0), %s251_s30, 4294966272  ;;  %p4123_p11 = scmp.eq.s32.totalorder %s3212_s22, 0 }
  0x99   : > { %3117 = dma.done.wait (%p4123_p11), [#allocation6], 3120   ;;  %p4124_p6 = pmov %p4123_p11 }
  0x9b   : > { %3119 = vsyncadd (%p4124_p6), [#allocation6], 4294964176  ;;  %p4125_p10 = pmov %p4124_p6 }
  0x9c   : > { %p4126_p3 = pmov %p4124_p6 }
  0x9d   : > { %3121 = dma.done.wait (%p4125_p10), [#allocation9], 1040  }
  0x9e   : > { %3123 = vsyncadd (%p4126_p3), [#allocation9], 4294966256  ;;  %v3155_v0 = vmov 0   ;;  %v2750_v1 = vld [vmem:[#allocation5 + $0x4] ss:$12 sps:$4 sm:$0xff]   ;;  %v299_v10 = vld [vmem:[%s3411_s7 + $0x8] sm:$0xff] }
  0x9f   : > { %502 = vmatprep.mubr.bf16.mxu0 %v3155_v0  ;;  %v2752_v2 = vld [vmem:[#allocation5] ss:$12 sps:$4 sm:$0xff]   ;;  %470 = vmatprep.subr.bf16.mxu0 %v2750_v1  ;;  %v2753_v3 = vld [vmem:[#allocation5 + $0x1c] ss:$12 sps:$4 sm:$0xff]   ;;  %v2755_v4 = vld [vmem:[#allocation5 + $0x18] ss:$12 sps:$4 sm:$0xff]  }
  0xa0   : > { %471 = vmatpush1.bf16.msra.mxu0 %v2752_v2  ;;  %v2756_v5 = vld [vmem:[#allocation5 + $0x34] ss:$12 sps:$4 sm:$0xff]   ;;  %v2758_v6 = vld [vmem:[#allocation5 + $0x30] ss:$12 sps:$4 sm:$0xff]   ;;  %v2759_v7 = vld [vmem:[#allocation5 + $0x4c] ss:$12 sps:$4 sm:$0xff]  }
  0xa1   : > { %472 = vmatprep.subr.bf16.mxu0 %v2753_v3  ;;  %v298_v8 = vld [vmem:[%s3411_s7] sm:$0xff]  ;;  %v2761_v9 = vld [vmem:[#allocation5 + $0x48] ss:$12 sps:$4 sm:$0xff]   ;;  %v2770_v17 = vld [vmem:[#allocation5 + $0x90] ss:$12 sps:$4 sm:$0xff]   ;;  %vm620_vm0 = vcmask 261120  }
  0xa2   : > { %v2762_v11 = vld [vmem:[#allocation5 + $0x64] ss:$12 sps:$4 sm:$0xff]   ;;  %v306_v12 = vpack.c.bf16 %v299_v10, %v298_v8  ;;  %v2764_v13 = vld [vmem:[#allocation5 + $0x60] ss:$12 sps:$4 sm:$0xff]   ;;  %v2765_v14 = vld [vmem:[#allocation5 + $0x7c] ss:$12 sps:$4 sm:$0xff]  }
  0xa3   : > { %v2767_v15 = vld [vmem:[#allocation5 + $0x78] ss:$12 sps:$4 sm:$0xff]   ;;  %v2768_v16 = vld [vmem:[#allocation5 + $0x94] ss:$12 sps:$4 sm:$0xff]   ;;  %v303_v24 = vld [vmem:[%s3411_s7 + $0x28] sm:$0xff]  ;;  %vm710_vm1 = vcmask 523264  }
  0xa4   : > { %473 = vmatpush1.bf16.msra.mxu0 %v2755_v4  ;;  %2416 = vmatprep.mubr.bf16.mxu1 %v306_v12  ;;  %v2771_v18 = vld [vmem:[#allocation5 + $0xac] ss:$12 sps:$4 sm:$0xff]   ;;  %v2773_v19 = vld [vmem:[#allocation5 + $0xa8] ss:$12 sps:$4 sm:$0xff]   ;;  %v302_v23 = vld [vmem:[%s3411_s7 + $0x20] sm:$0xff]  ;;  %s3156_s24 = smov 96  }
  0xa5   : > { %474 = vmatprep.subr.bf16.mxu0 %v2756_v5  ;;  %v300_v20 = vld [vmem:[%s3411_s7 + $0x10] sm:$0xff]  ;;  %v301_v21 = vld [vmem:[%s3411_s7 + $0x18] sm:$0xff]  ;;  %v3434_v25 = vpack.c.bf16 %v303_v24, %v302_v23  ;;  %v2775_v58 = vld [vmem:[#allocation5 + $0x20] ss:$12 sps:$4 sm:$0xff]   ;;  %s3157_s26 = smov 64   ;;  %s3158_s10 = smov 32  }
  0xa6   : > { %v3429_v22 = vpack.c.bf16 %v301_v21, %v300_v20  ;;  %v304_v26 = vld [vmem:[%s3411_s7 + $0x30] sm:$0xff]  ;;  %v305_v27 = vld [vmem:[%s3411_s7 + $0x38] sm:$0xff]  ;;  %v2779_v62 = vld [vmem:[#allocation5 + $0x80] ss:$12 sps:$4 sm:$0xff]   ;;  %vm1862_vm2 = vcmask 785408   ;;  %s2200_s13 = sshll.u32 %s3407_s29, 5 }
  0xa7   : > { %v3439_v28 = vpack.c.bf16 %v305_v27, %v304_v26  ;;  %v2774_v57 = vld [vmem:[#allocation5 + $0x8] ss:$12 sps:$4 sm:$0xff]   ;;  %v2776_v59 = vld [vmem:[#allocation5 + $0x38] ss:$12 sps:$4 sm:$0xff]   ;;  %v2777_v60 = vld [vmem:[#allocation5 + $0x50] ss:$12 sps:$4 sm:$0xff]  }
  0xa8   : > { %475 = vmatpush1.bf16.msra.mxu0 %v2758_v6  ;;  %2400 = vmatprep.subr.bf16.mxu1 %v2774_v57  ;;  %v2778_v61 = vld [vmem:[#allocation5 + $0x68] ss:$12 sps:$4 sm:$0xff]   ;;  %v2780_v63 = vld [vmem:[#allocation5 + $0x98] ss:$12 sps:$4 sm:$0xff]   ;;  %s296_s27 = scalar_lea.vmem [#allocation11], %s2200_s13  ;;  %s2288_s23 = sshll.u32 %s3212_s22, 9 }
  0xa9   : > { %476 = vmatprep.subr.bf16.mxu0 %v2759_v7  ;;  %2401 = vmatpush3.bf16.msra.mxu1 %v2774_v57  ;;  %s2073_s28 = sshll.u32 %s296_s27, 4  ;;  %s4058_s11 = scalar_lea.hbm %s4109_s5, %s2288_s23  ;;  %s4053_s28 = int_to_ptr.vmem [resolvable:$true] %s2073_s28 }
  0xaa   : > { %2402 = vmatprep.subr.bf16.mxu1 %v2775_v58  ;;  %s2060_s6 = scalar_lea.sflag [#allocation4], %s3407_s29  ;;  %s3068_s22 = scalar_lea.vmem %s4053_s28, 512 }
  0xab   : > { %p3069_p4 = scmp.ne.s32.totalorder %s4053_s28, %s3068_s22  ;;  %s3159_s14 = smov [#allocation11]  }
  0xac   : > { %477 = vmatpush1.bf16.msra.mxu0 %v2761_v9  ;;  %s3072_s15 = sshll.u32 %s3159_s14, 4  ;;  %s3073_s15 = int_to_ptr.vmem [resolvable:$false] %s3072_s15 }
  0xad   : > { %478 = vmatprep.subr.bf16.mxu0 %v2762_v11  ;;  %2403 = vmatpush3.bf16.msra.mxu1 %v2775_v58  ;;  %p3070_p5 = pnand %p3069_p4, %p3358_p8  ;;  %s3074_s30 = scalar_lea.vmem %s3073_s15, 1024 }
  0xae   : > { %2404 = vmatprep.subr.bf16.mxu1 %v2776_v59  ;;  %p3075_p12 = scmp.lt.s32.totalorder %s4053_s28, %s3073_s15  ;;  %p3076_p2 = scmp.lt.s32.totalorder %s3074_s30, %s3068_s22 }
  0xaf   : > { %p3071_p7 = pneg %p3070_p5 }
  0xb0   : > { %479 = vmatpush1.bf16.msra.mxu0 %v2764_v13  ;;  %p3077_p1 = por %p3076_p2, %p3075_p12 }
  0xb1   : > { %480 = vmatprep.subr.bf16.mxu0 %v2765_v14  ;;  %2405 = vmatpush3.bf16.msra.mxu1 %v2776_v59 }
  0xb2   : > { %2406 = vmatprep.subr.bf16.mxu1 %v2777_v60  ;;  %p3078_p13 = pnand %p3077_p1, %p3071_p7 }
  0xb4   : > { %481 = vmatpush1.bf16.msra.mxu0 %v2767_v15 }
  0xb5   : > { %482 = vmatprep.subr.bf16.mxu0 %v2768_v16  ;;  %2407 = vmatpush3.bf16.msra.mxu1 %v2777_v60 }
  0xb6   : > { %2408 = vmatprep.subr.bf16.mxu1 %v2778_v61 }
  0xb8   : > { %483 = vmatpush1.bf16.msra.mxu0 %v2770_v17 }
  0xb9   : > { %484 = vmatprep.subr.bf16.mxu0 %v2771_v18  ;;  %2409 = vmatpush3.bf16.msra.mxu1 %v2778_v61 }
  0xba   : > { %2410 = vmatprep.subr.bf16.mxu1 %v2779_v62 }
  0xbc   : > { %485 = vmatpush1.bf16.msra.mxu0 %v2773_v19 }
  0xbd   : > { %2411 = vmatpush3.bf16.msra.mxu1 %v2779_v62 }
  0xbe   : > { %2412 = vmatprep.subr.bf16.mxu1 %v2780_v63 }
  0xbf   : > { %503 = vmatmul.mubr.bf16.vlgmr.msra.gmra.mrb[0].mxu0 %v306_v12 }
  0xc0   : > { %512 = vmatprep.mubr.bf16.mxu0 %v3155_v0 }
  0xc1   : > { %2413 = vmatpush3.bf16.msra.mxu1 %v2780_v63 }
  0xc7   : > { %513 = vmatmul.mubr.bf16.gmra.mrb[4].mxu0 %v3429_v22 }
  0xc8   : > { %522 = vmatprep.mubr.bf16.mxu0 %v3155_v0 }
  0xcf   : > { %523 = vmatmul.mubr.bf16.gmra.mrb[8].mxu0 %v3434_v25 }
  0xd0   : > { %532 = vmatprep.mubr.bf16.mxu0 %v3155_v0  ;;  %v2781_v0 = vld [vmem:[#allocation5 + $0xb0] ss:$12 sps:$4 sm:$0xff]  }
  0xd1   : > { %2414 = vmatprep.subr.bf16.mxu1 %v2781_v0 }
  0xd2   : > { %2415 = vmatpush3.bf16.msra.mxu1 %v2781_v0 }
  0xd5   : > { %2417 = vmatmul.mubr.bf16.vlgmr.msra.gmra.mrb[0].mxu1 %v3429_v22 }
  0xd6   : > { %2420 = vmatprep.mubr.bf16.mxu1 %v3434_v25 }
  0xd7   : > { %533 = vmatmul.mubr.bf16.gmra.mrb[12].mxu0 %v3439_v28 }
  0xdd   : > { %2421 = vmatmul.mubr.bf16.gmra.mrb[4].mxu1 %v3439_v28 }
 0x192   : > { %v504_v29 = vpop.f32.mrb[0].mxu0 }
 0x193   : > { %v506_v30 = vpop.f32.mrb[1].mxu0 }
 0x194   : > { %v508_v31 = vpop.f32.mrb[2].mxu0 }
 0x195   : > { %v3442_v32 = vpack.c.bf16 %v508_v31, %v504_v29  ;;  %v510_v33 = vpop.f32.mrb[3].mxu0 }
 0x196   : > { %v3444_v34 = vpack.c.bf16 %v510_v33, %v506_v30 }
 0x197   : > { %2432 = vmatprep.mubr.msk.bf16.mxu0 %vm620_vm0, %v3442_v32 }
 0x198   : > { %2576 = vmatprep.subr.msk.bf16.mxu0 %vm620_vm0, %v3444_v34  ;;  %v634_v35 = vsel %vm620_vm0, %v3444_v34, 0 }
 0x199   : > { %2425 = vmatpush3.bf16.xpose.msra.mxu0 %v634_v35 }
 0x19a   : > { %v514_v36 = vpop.f32.mrb[4].mxu0 }
 0x19b   : > { %v516_v37 = vpop.f32.mrb[5].mxu0 }
 0x19c   : > { %v518_v38 = vpop.f32.mrb[6].mxu0 }
 0x19d   : > { %v3452_v39 = vpack.c.bf16 %v518_v38, %v514_v36  ;;  %v520_v40 = vpop.f32.mrb[7].mxu0 }
 0x19e   : > { %v3454_v41 = vpack.c.bf16 %v520_v40, %v516_v37 }
 0x1a0   : > { %2577 = vmatprep.subr.msk.bf16.mxu0 %vm620_vm0, %v3454_v41  ;;  %v637_v42 = vsel %vm620_vm0, %v3454_v41, 0 }
 0x1a1   : > { %2427 = vmatpush3.bf16.xpose.msra.mxu0 %v637_v42 }
 0x1a2   : > { %v524_v43 = vpop.f32.mrb[8].mxu0 }
 0x1a3   : > { %v526_v44 = vpop.f32.mrb[9].mxu0 }
 0x1a4   : > { %v528_v45 = vpop.f32.mrb[10].mxu0 }
 0x1a5   : > { %v3460_v46 = vpack.c.bf16 %v528_v45, %v524_v43  ;;  %v530_v47 = vpop.f32.mrb[11].mxu0 }
 0x1a6   : > { %v3462_v48 = vpack.c.bf16 %v530_v47, %v526_v44 }
 0x1a8   : > { %2578 = vmatprep.subr.msk.bf16.mxu0 %vm620_vm0, %v3462_v48  ;;  %v640_v49 = vsel %vm620_vm0, %v3462_v48, 0  ;;  %v2418_v29 = vpop.f32.mrb[0].mxu1 }
 0x1a9   : > { %2429 = vmatpush3.bf16.xpose.msra.mxu0 %v640_v49  ;;  %v577_v30 = vpop.f32.mrb[1].mxu1 }
 0x1aa   : > { %v534_v50 = vpop.f32.mrb[12].mxu0  ;;  %v2419_v31 = vpop.f32.mrb[2].mxu1 }
 0x1ab   : > { %v536_v51 = vpop.f32.mrb[13].mxu0  ;;  %v3509_v33 = vpack.c.bf16 %v2419_v31, %v2418_v29  ;;  %v580_v35 = vpop.f32.mrb[3].mxu1 }
 0x1ac   : > { %v538_v52 = vpop.f32.mrb[14].mxu0  ;;  %v3513_v37 = vpack.c.bf16 %v580_v35, %v577_v30 }
 0x1ad   : > { %v3468_v53 = vpack.c.bf16 %v538_v52, %v534_v50  ;;  %v540_v54 = vpop.f32.mrb[15].mxu0 }
 0x1ae   : > { %v3470_v55 = vpack.c.bf16 %v540_v54, %v536_v51  ;;  %2440 = vmatprep.subr.bf16.mxu1 %v3513_v37 }
 0x1af   : > { %2441 = vmatpush3.bf16.msra.mxu1 %v3513_v37 }
 0x1b0   : > { %2579 = vmatprep.subr.msk.bf16.mxu0 %vm620_vm0, %v3470_v55  ;;  %v643_v56 = vsel %vm620_vm0, %v3470_v55, 0  ;;  %v2422_v43 = vpop.f32.mrb[4].mxu1  ;;  %2442 = vmatprep.subr.bf16.mxu1 %v3509_v33 }
 0x1b1   : > { %2431 = vmatpush3.bf16.xpose.msra.mxu0 %v643_v56  ;;  %v593_v47 = vpop.f32.mrb[5].mxu1 }
 0x1b2   : > { %v2423_v50 = vpop.f32.mrb[6].mxu1 }
 0x1b3   : > { %v3530_v51 = vpack.c.bf16 %v2423_v50, %v2422_v43  ;;  %v596_v52 = vpop.f32.mrb[7].mxu1  ;;  %2443 = vmatpush3.bf16.msra.mxu1 %v3509_v33 }
 0x1b4   : > { %v3533_v54 = vpack.c.bf16 %v596_v52, %v593_v47 }
 0x1b6   : > { %2444 = vmatprep.subr.bf16.mxu1 %v3533_v54 }
 0x1b7   : > { %2445 = vmatpush3.bf16.msra.mxu1 %v3533_v54 }
 0x1b8   : > { %2433 = vmatmul.mubr.msk.bf16.vlgmr.msra.gmra.mrb[16].mxu0 %vm620_vm0, %v3452_v39  ;;  %2446 = vmatprep.subr.bf16.mxu1 %v3530_v51 }
 0x1b9   : > { %2436 = vmatprep.mubr.msk.bf16.mxu0 %vm620_vm0, %v3460_v46 }
 0x1bb   : > { %2447 = vmatpush3.bf16.msra.mxu1 %v3530_v51 }
 0x1c0   : > { %2437 = vmatmul.mubr.msk.bf16.gmra.mrb[20].mxu0 %vm620_vm0, %v3468_v53 }
 0x28b   : > { %v2434_v1 = vpop.f32.mrb[16].mxu0 }
 0x28c   : > { %v679_v2 = vpop.f32.mrb[17].mxu0  ;;  %v717_v3 = vsel %vm710_vm1, %v2434_v1, -inf }
 0x28d   : > { %718 = vmax.xlane.f32.xlu1 %v717_v3  ;;  %v2435_v4 = vpop.f32.mrb[18].mxu0  ;;  %v711_v5 = vsel %vm710_vm1, %v679_v2, -inf }
 0x28e   : > { %712 = vmax.xlane.f32.xlu0 %v711_v5  ;;  %v682_v6 = vpop.f32.mrb[19].mxu0  ;;  %v720_v7 = vsel %vm710_vm1, %v2435_v4, -inf }
 0x28f   : > { %v714_v8 = vsel %vm710_vm1, %v682_v6, -inf }
 0x291   : > { %721 = vmax.xlane.f32.xlu1 %v720_v7 }
 0x292   : > { %715 = vmax.xlane.f32.xlu0 %v714_v8 }
 0x293   : > { %v3489_v9 = vpop.f32.mrb[20].mxu0 }
 0x294   : > { %v3491_v10 = vpop.f32.mrb[21].mxu0  ;;  %v729_v15 = vsel %vm710_vm1, %v3489_v9, -inf }
 0x295   : > { %v3493_v11 = vpop.f32.mrb[22].mxu0  ;;  %v723_v12 = vsel %vm710_vm1, %v3491_v10, -inf }
 0x296   : > { %724 = vmax.xlane.f32.xlu0 %v723_v12  ;;  %v3497_v13 = vpop.f32.mrb[23].mxu0  ;;  %v732_v14 = vsel %vm710_vm1, %v3493_v11, -inf }
 0x297   : > { %733 = vmax.xlane.f32.xlu1 %v732_v14  ;;  %v726_v16 = vsel %vm710_vm1, %v3497_v13, -inf }
 0x29a   : > { %730 = vmax.xlane.f32.xlu0 %v729_v15 }
 0x29b   : > { %727 = vmax.xlane.f32.xlu1 %v726_v16 }
 0x2ac   : > { %898 = vrot.lane.b32.xlu1 %v3454_v41, %s3156_s24 }
 0x2b0   : > { %900 = vrot.lane.b32.xlu1 %v3462_v48, %s3156_s24 }
 0x31a   : > { %v719_v17 = vpop.xlane.xlu1 %718 }
 0x31b   : > { %v737_v18 = vsub.f32 %v2434_v1, %v719_v17  ;;  %v713_v19 = vpop.xlane.xlu0 %712 }
 0x31c   : > { %v735_v20 = vsub.f32 %v679_v2, %v713_v19 }
 0x31d   : > { %v747_v21 = vmul.f32 1.442695, %v737_v18 }
 0x31e   : > { %v743_v22 = vmul.f32 1.442695, %v735_v20  ;;  %v722_v23 = vpop.xlane.xlu1 %721 }
 0x31f   : > { %2790 = vpow2.f32 %v747_v21  ;;  %v738_v24 = vsub.f32 %v2435_v4, %v722_v23  ;;  %v716_v25 = vpop.xlane.xlu0 %715 }
 0x320   : > { %v736_v26 = vsub.f32 %v682_v6, %v716_v25  ;;  %2792 = vpow2.f32 %v743_v22 }
 0x321   : > { %v749_v27 = vmul.f32 1.442695, %v738_v24 }
 0x322   : > { %v745_v28 = vmul.f32 1.442695, %v736_v26 }
 0x323   : > { %2794 = vpow2.f32 %v749_v27  ;;  %v725_v57 = vpop.xlane.xlu0 %724 }
 0x324   : > { %2796 = vpow2.f32 %v745_v28  ;;  %v734_v59 = vpop.xlane.xlu1 %733  ;;  %v739_v61 = vsub.f32 %v3491_v10, %v725_v57 }
 0x325   : > { %v742_v62 = vsub.f32 %v3493_v11, %v734_v59 }
 0x326   : > { %v751_v1 = vmul.f32 1.442695, %v739_v61 }
 0x327   : > { %v731_v58 = vpop.xlane.xlu0 %730  ;;  %v757_v2 = vmul.f32 1.442695, %v742_v62 }
 0x328   : > { %v741_v60 = vsub.f32 %v3489_v9, %v731_v58  ;;  %v728_v0 = vpop.xlane.xlu1 %727 }
 0x329   : > { %v3511_v36 = vpop.eup %2790  ;;  %v740_v3 = vsub.f32 %v3497_v13, %v728_v0 }
 0x32a   : > { %v765_v38 = vsel %vm710_vm1, %v3511_v36, 0.0  ;;  %v3517_v40 = vpop.eup %2792  ;;  %v755_v63 = vmul.f32 1.442695, %v741_v60 }
 0x32b   : > { %766 = vadd.xlane.f32.xlu0 %v765_v38  ;;  %v759_v44 = vsel %vm710_vm1, %v3517_v40, 0.0  ;;  %v753_v4 = vmul.f32 1.442695, %v740_v3 }
 0x32c   : > { %2798 = vpow2.f32 %v755_v63  ;;  %v899_v13 = vpop.permute.xlu1 %898 }
 0x32d   : > { %v3521_v42 = vpop.eup %2794  ;;  %2800 = vpow2.f32 %v751_v1  ;;  %v920_v38 = vsel %vm620_vm0, %v899_v13, 0 }
 0x32e   : > { %v768_v45 = vsel %vm710_vm1, %v3521_v42, 0.0  ;;  %v3528_v49 = vpop.eup %2796  ;;  %2802 = vpow2.f32 %v757_v2 }
 0x32f   : > { %760 = vadd.xlane.f32.xlu0 %v759_v44  ;;  %769 = vadd.xlane.f32.xlu1 %v768_v45  ;;  %v762_v56 = vsel %vm710_vm1, %v3528_v49, 0.0  ;;  %2804 = vpow2.f32 %v753_v4 }
 0x330   : > { %v901_v14 = vpop.permute.xlu1 %900 }
 0x333   : > { %763 = vadd.xlane.f32.xlu1 %v762_v56 }
 0x336   : > { %v3549_v5 = vpop.eup %2798 }
 0x337   : > { %v3551_v6 = vpop.eup %2800  ;;  %v777_v7 = vsel %vm710_vm1, %v3549_v5, 0.0 }
 0x338   : > { %v3555_v8 = vpop.eup %2802  ;;  %v771_v9 = vsel %vm710_vm1, %v3551_v6, 0.0 }
 0x339   : > { %v780_v10 = vsel %vm710_vm1, %v3555_v8, 0.0  ;;  %v3561_v11 = vpop.eup %2804 }
 0x33a   : > { %v774_v12 = vsel %vm710_vm1, %v3561_v11, 0.0 }
 0x344   : > { %1186 = vrot.lane.b32.xlu1 %v3444_v34, %s3157_s26 }
 0x345   : > { %896 = vrot.lane.b32.xlu0 %v3444_v34, %s3156_s24 }
 0x364   : > { %778 = vadd.xlane.f32.xlu0 %v777_v7 }
 0x368   : > { %772 = vadd.xlane.f32.xlu0 %v771_v9  ;;  %781 = vadd.xlane.f32.xlu1 %v780_v10 }
 0x36c   : > { %775 = vadd.xlane.f32.xlu1 %v774_v12 }
 0x37d   : > { %1188 = vrot.lane.b32.xlu1 %v3454_v41, %s3157_s26 }
 0x37e   : > { %902 = vrot.lane.b32.xlu0 %v3470_v55, %s3156_s24 }
 0x381   : > { %886 = vrot.lane.b32.xlu1 %v3452_v39, %s3156_s24 }
 0x382   : > { %884 = vrot.lane.b32.xlu0 %v3442_v32, %s3156_s24 }
 0x385   : > { %888 = vrot.lane.b32.xlu1 %v3460_v46, %s3156_s24 }
 0x386   : > { %1190 = vrot.lane.b32.xlu0 %v3462_v48, %s3157_s26 }
 0x389   : > { %1192 = vrot.lane.b32.xlu1 %v3470_v55, %s3157_s26 }
 0x38a   : > { %890 = vrot.lane.b32.xlu0 %v3468_v53, %s3156_s24 }
 0x38d   : > { %1180 = vrot.lane.b32.xlu1 %v3452_v39, %s3157_s26 }
 0x38e   : > { %1178 = vrot.lane.b32.xlu0 %v3442_v32, %s3157_s26 }
 0x391   : > { %1184 = vrot.lane.b32.xlu1 %v3468_v53, %s3157_s26 }
 0x392   : > { %1182 = vrot.lane.b32.xlu0 %v3460_v46, %s3157_s26 }
 0x3b8   : > { %v767_v15 = vpop.xlane.xlu0 %766 }
 0x3bc   : > { %v761_v16 = vpop.xlane.xlu0 %760  ;;  %v770_v17 = vpop.xlane.xlu1 %769 }
 0x3bd   : > { %2806 = vrcp.f32 %v770_v17 }
 0x3be   : > { %2808 = vrcp.f32 %v761_v16 }
 0x3bf   : > { %2810 = vrcp.f32 %v767_v15 }
 0x3c0   : > { %v897_v18 = vpop.permute.xlu0 %896  ;;  %v764_v19 = vpop.xlane.xlu1 %763 }
 0x3c1   : > { %2812 = vrcp.f32 %v764_v19  ;;  %2580 = vmatprep.subr.msk.bf16.mxu1 %vm620_vm0, %v897_v18  ;;  %v917_v35 = vsel %vm620_vm0, %v897_v18, 0 }
 0x3c4   : > { %v1187_v20 = vpop.permute.xlu1 %1186 }
 0x3c5   : > { %v1207_v21 = vsel %vm620_vm0, %v1187_v20, 0  ;;  %2584 = vmatprep.subr.msk.bf16.mxu0 %vm620_vm0, %v1187_v20 }
 0x3c6   : > { %2489 = vmatpush3.bf16.xpose.msra.mxu0 %v1207_v21 }
 0x3c7   : > { %v2807_v22 = vpop.eup %2806 }
 0x3c8   : > { %v2809_v23 = vpop.eup %2808  ;;  %v794_v26 = vmul.f32 %v2807_v22, %v3521_v42 }
 0x3c9   : > { %v2811_v24 = vpop.eup %2810  ;;  %v791_v27 = vmul.f32 %v2809_v23, %v3517_v40  ;;  %v923_v40 = vsel %vm620_vm0, %v901_v14, 0 }
 0x3ca   : > { %v793_v29 = vmul.f32 %v2811_v24, %v3511_v36 }
 0x3cb   : > { %v2813_v25 = vpop.eup %2812 }
 0x3cc   : > { %v792_v28 = vmul.f32 %v2813_v25, %v3528_v49  ;;  %v800_v31 = vpack.c.bf16 %v794_v26, %v793_v29 }
 0x3ce   : > { %v799_v30 = vpack.c.bf16 %v792_v28, %v791_v27 }
 0x3d0   : > { %2448 = vmatprep.mubr.msk.bf16.mxu1 %vm710_vm1, %v799_v30 }
 0x3d1   : > { %2449 = vmatmul.mubr.msk.bf16.vlgmr.msra.gmra.mrb[8].mxu1 %vm710_vm1, %v800_v31 }
 0x3d2   : > { %2457 = vmatpush3.bf16.xpose.msra.mxu1 %v917_v35 }
 0x3d3   : > { %2581 = vmatprep.subr.msk.bf16.mxu1 %vm620_vm0, %v899_v13 }
 0x3da   : > { %2459 = vmatpush3.bf16.xpose.msra.mxu1 %v920_v38 }
 0x3db   : > { %2582 = vmatprep.subr.msk.bf16.mxu1 %vm620_vm0, %v901_v14 }
 0x3e2   : > { %2461 = vmatpush3.bf16.xpose.msra.mxu1 %v923_v40 }
 0x3f1   : > { %v779_v36 = vpop.xlane.xlu0 %778 }
 0x3f5   : > { %v773_v42 = vpop.xlane.xlu0 %772  ;;  %v782_v43 = vpop.xlane.xlu1 %781 }
 0x3f6   : > { %2814 = vrcp.f32 %v782_v43 }
 0x3f7   : > { %2816 = vrcp.f32 %v773_v42 }
 0x3f8   : > { %2818 = vrcp.f32 %v779_v36 }
 0x3f9   : > { %v903_v44 = vpop.permute.xlu0 %902  ;;  %v776_v45 = vpop.xlane.xlu1 %775 }
 0x3fa   : > { %v926_v47 = vsel %vm620_vm0, %v903_v44, 0  ;;  %2820 = vrcp.f32 %v776_v45  ;;  %2583 = vmatprep.subr.msk.bf16.mxu1 %vm620_vm0, %v903_v44 }
 0x3fb   : > { %2463 = vmatpush3.bf16.xpose.msra.mxu1 %v926_v47 }
 0x3fd   : > { %v885_v49 = vpop.permute.xlu0 %884  ;;  %v1189_v50 = vpop.permute.xlu1 %1188 }
 0x3fe   : > { %v1210_v52 = vsel %vm620_vm0, %v1189_v50, 0  ;;  %2585 = vmatprep.subr.msk.bf16.mxu0 %vm620_vm0, %v1189_v50 }
 0x3ff   : > { %2491 = vmatpush3.bf16.xpose.msra.mxu0 %v1210_v52 }
 0x400   : > { %v2815_v56 = vpop.eup %2814 }
 0x401   : > { %v1191_v57 = vpop.permute.xlu0 %1190  ;;  %v887_v58 = vpop.permute.xlu1 %886  ;;  %v798_v62 = vmul.f32 %v2815_v56, %v3555_v8 }
 0x402   : > { %v2817_v59 = vpop.eup %2816  ;;  %2586 = vmatprep.subr.msk.bf16.mxu0 %vm620_vm0, %v1191_v57  ;;  %v1213_v3 = vsel %vm620_vm0, %v1191_v57, 0 }
 0x403   : > { %v2819_v60 = vpop.eup %2818  ;;  %v795_v1 = vmul.f32 %v2817_v59, %v3551_v6 }
 0x404   : > { %v2821_v61 = vpop.eup %2820  ;;  %v797_v4 = vmul.f32 %v2819_v60, %v3549_v5 }
 0x405   : > { %v891_v63 = vpop.permute.xlu0 %890  ;;  %v889_v0 = vpop.permute.xlu1 %888  ;;  %v796_v2 = vmul.f32 %v2821_v61, %v3561_v11 }
 0x406   : > { %v802_v9 = vpack.c.bf16 %v798_v62, %v797_v4 }
 0x407   : > { %2493 = vmatpush3.bf16.xpose.msra.mxu0 %v1213_v3  ;;  %v801_v7 = vpack.c.bf16 %v796_v2, %v795_v1 }
 0x409   : > { %v1179_v10 = vpop.permute.xlu0 %1178  ;;  %2452 = vmatprep.mubr.msk.bf16.mxu1 %vm710_vm1, %v801_v7  ;;  %v1193_v12 = vpop.permute.xlu1 %1192 }
 0x40a   : > { %2453 = vmatmul.mubr.msk.bf16.gmra.mrb[12].mxu1 %vm710_vm1, %v802_v9  ;;  %2587 = vmatprep.subr.msk.bf16.mxu0 %vm620_vm0, %v1193_v12  ;;  %v1216_v6 = vsel %vm620_vm0, %v1193_v12, 0 }
 0x40b   : > { %2496 = vmatprep.mubr.msk.bf16.mxu0 %vm620_vm0, %v1179_v10  ;;  %2464 = vmatprep.mubr.msk.bf16.mxu1 %vm620_vm0, %v885_v49 }
 0x40d   : > { %v1181_v5 = vpop.permute.xlu1 %1180  ;;  %v1183_v8 = vpop.permute.xlu0 %1182 }
 0x40f   : > { %2495 = vmatpush3.bf16.xpose.msra.mxu0 %v1216_v6 }
 0x411   : > { %v1185_v11 = vpop.permute.xlu1 %1184 }
 0x412   : > { %2465 = vmatmul.mubr.msk.bf16.vlgmr.msra.gmra.mrb[16].mxu1 %vm620_vm0, %v887_v58 }
 0x413   : > { %2468 = vmatprep.mubr.msk.bf16.mxu1 %vm620_vm0, %v889_v0 }
 0x416   : > { %2497 = vmatmul.mubr.msk.bf16.vlgmr.msra.gmra.mrb[24].mxu0 %vm620_vm0, %v1181_v5 }
 0x417   : > { %2500 = vmatprep.mubr.msk.bf16.mxu0 %vm620_vm0, %v1183_v8 }
 0x41a   : > { %2469 = vmatmul.mubr.msk.bf16.gmra.mrb[20].mxu1 %vm620_vm0, %v891_v63 }
 0x41e   : > { %2501 = vmatmul.mubr.msk.bf16.gmra.mrb[28].mxu0 %vm620_vm0, %v1185_v11 }
 0x4a4   : > { %v3625_v13 = vpop.f32.mrb[8].mxu1 }
 0x4a5   : > { %v3627_v14 = vpop.f32.mrb[9].mxu1 }
 0x4a6   : > { %v3629_v15 = vpop.f32.mrb[10].mxu1 }
 0x4a7   : > { %v3631_v16 = vpop.f32.mrb[11].mxu1 }
 0x4dd   : > { %v3633_v17 = vpop.f32.mrb[12].mxu1 }
 0x4de   : > { %v3635_v18 = vpop.f32.mrb[13].mxu1 }
 0x4df   : > { %v3637_v19 = vpop.f32.mrb[14].mxu1 }
 0x4e0   : > { %v3639_v20 = vpop.f32.mrb[15].mxu1 }
 0x4e5   : > { %v3641_v21 = vpop.f32.mrb[16].mxu1 }
 0x4e6   : > { %v3643_v22 = vpop.f32.mrb[17].mxu1  ;;  %v999_v57 = vsel %vm710_vm1, %v3641_v21, -inf }
 0x4e7   : > { %v3645_v23 = vpop.f32.mrb[18].mxu1  ;;  %v993_v59 = vsel %vm710_vm1, %v3643_v22, -inf }
 0x4e8   : > { %v3647_v24 = vpop.f32.mrb[19].mxu1  ;;  %v1002_v60 = vsel %vm710_vm1, %v3645_v23, -inf }
 0x4e9   : > { %v2498_v25 = vpop.f32.mrb[24].mxu0  ;;  %v996_v58 = vsel %vm710_vm1, %v3647_v24, -inf }
 0x4ea   : > { %v1252_v26 = vpop.f32.mrb[25].mxu0  ;;  %v1289_v40 = vsel %vm710_vm1, %v2498_v25, -inf }
 0x4eb   : > { %v2499_v27 = vpop.f32.mrb[26].mxu0  ;;  %v1283_v28 = vsel %vm710_vm1, %v1252_v26, -inf }
 0x4ec   : > { %1284 = vmax.xlane.f32.xlu0 %v1283_v28  ;;  %v1255_v29 = vpop.f32.mrb[27].mxu0  ;;  %v1292_v43 = vsel %vm710_vm1, %v2499_v27, -inf }
 0x4ed   : > { %v3650_v30 = vpop.f32.mrb[20].mxu1  ;;  %v1286_v31 = vsel %vm710_vm1, %v1255_v29, -inf }
 0x4ee   : > { %v3653_v35 = vpop.f32.mrb[21].mxu1  ;;  %1287 = vmax.xlane.f32.xlu1 %v1286_v31  ;;  %v1011_v61 = vsel %vm710_vm1, %v3650_v30, -inf }
 0x4ef   : > { %v3655_v38 = vpop.f32.mrb[22].mxu1  ;;  %v1005_v62 = vsel %vm710_vm1, %v3653_v35, -inf }
 0x4f0   : > { %v3658_v36 = vpop.f32.mrb[23].mxu1  ;;  %1290 = vmax.xlane.f32.xlu0 %v1289_v40 }
 0x4f1   : > { %v3660_v42 = vpop.f32.mrb[28].mxu0 }
 0x4f2   : > { %1293 = vmax.xlane.f32.xlu1 %v1292_v43  ;;  %v3663_v44 = vpop.f32.mrb[29].mxu0  ;;  %v1301_v52 = vsel %vm710_vm1, %v3660_v42, -inf }
 0x4f3   : > { %v3665_v45 = vpop.f32.mrb[30].mxu0  ;;  %v1295_v47 = vsel %vm710_vm1, %v3663_v44, -inf }
 0x4f4   : > { %1296 = vmax.xlane.f32.xlu0 %v1295_v47  ;;  %v3669_v49 = vpop.f32.mrb[31].mxu0  ;;  %v1304_v56 = vsel %vm710_vm1, %v3665_v45, -inf }
 0x4f5   : > { %v1298_v50 = vsel %vm710_vm1, %v3669_v49, -inf }
 0x4f6   : > { %1299 = vmax.xlane.f32.xlu1 %v1298_v50 }
 0x4f8   : > { %1302 = vmax.xlane.f32.xlu0 %v1301_v52 }
 0x4fa   : > { %1305 = vmax.xlane.f32.xlu1 %v1304_v56 }
 0x50b   : > { %1091 = vrot.lane.b32.xlu1 %v3509_v33, %s3156_s24 }
 0x50e   : > { %1089 = vrot.lane.b32.xlu0 %v3513_v37, %s3156_s24 }
 0x52d   : > { %1000 = vmax.xlane.f32.xlu0 %v999_v57 }
 0x52f   : > { %997 = vmax.xlane.f32.xlu1 %v996_v58 }
 0x531   : > { %994 = vmax.xlane.f32.xlu0 %v993_v59 }
 0x535   : > { %1003 = vmax.xlane.f32.xlu0 %v1002_v60 }
 0x539   : > { %1012 = vmax.xlane.f32.xlu0 %v1011_v61 }
 0x53d   : > { %1006 = vmax.xlane.f32.xlu0 %v1005_v62 }
 0x553   : > { %1093 = vrot.lane.b32.xlu0 %v3533_v54, %s3156_s24 }
 0x579   : > { %v1285_v63 = vpop.xlane.xlu0 %1284 }
 0x57a   : > { %v1307_v0 = vsub.f32 %v1252_v26, %v1285_v63 }
 0x57b   : > { %v1288_v1 = vpop.xlane.xlu1 %1287 }
 0x57c   : > { %v1315_v2 = vmul.f32 1.442695, %v1307_v0  ;;  %v1308_v3 = vsub.f32 %v1255_v29, %v1288_v1  ;;  %v1014_v1 = vsel %vm710_vm1, %v3655_v38, -inf }
 0x57d   : > { %v1291_v4 = vpop.xlane.xlu0 %1290 }
 0x57e   : > { %2822 = vpow2.f32 %v1315_v2  ;;  %v1317_v7 = vmul.f32 1.442695, %v1308_v3  ;;  %v1309_v9 = vsub.f32 %v2498_v25, %v1291_v4 }
 0x57f   : > { %v1294_v10 = vpop.xlane.xlu1 %1293 }
 0x580   : > { %2824 = vpow2.f32 %v1317_v7  ;;  %v1319_v12 = vmul.f32 1.442695, %v1309_v9  ;;  %v1310_v6 = vsub.f32 %v2499_v27, %v1294_v10  ;;  %v1008_v7 = vsel %vm710_vm1, %v3658_v36, -inf }
 0x581   : > { %v3695_v5 = vpop.xlane.xlu0 %1296 }
 0x582   : > { %2826 = vpow2.f32 %v1319_v12  ;;  %v1321_v8 = vmul.f32 1.442695, %v1310_v6  ;;  %v1311_v11 = vsub.f32 %v3663_v44, %v3695_v5 }
 0x583   : > { %v3699_v28 = vpop.xlane.xlu1 %1299 }
 0x584   : > { %v1312_v26 = vsub.f32 %v3669_v49, %v3699_v28  ;;  %2828 = vpow2.f32 %v1321_v8 }
 0x585   : > { %v3703_v29 = vpop.xlane.xlu0 %1302 }
 0x586   : > { %v1313_v25 = vsub.f32 %v3660_v42, %v3703_v29 }
 0x587   : > { %v3707_v31 = vpop.xlane.xlu1 %1305 }
 0x588   : > { %v3709_v27 = vpop.eup %2822  ;;  %v1314_v40 = vsub.f32 %v3665_v45, %v3707_v31 }
 0x589   : > { %v1090_v43 = vpop.permute.xlu0 %1089  ;;  %v1331_v47 = vsel %vm710_vm1, %v3709_v27, 0.0 }
 0x58a   : > { %v3715_v50 = vpop.eup %2824  ;;  %2472 = vmatprep.subr.bf16.mxu1 %v1090_v43  ;;  %1332 = vadd.xlane.f32.xlu1 %v1331_v47  ;;  %v1329_v44 = vmul.f32 1.442695, %v1314_v40 }
 0x58b   : > { %2473 = vmatpush3.bf16.msra.mxu1 %v1090_v43  ;;  %v1092_v52 = vpop.permute.xlu1 %1091  ;;  %v1334_v56 = vsel %vm710_vm1, %v3715_v50, 0.0 }
 0x58c   : > { %v3719_v57 = vpop.eup %2826  ;;  %1335 = vadd.xlane.f32.xlu0 %v1334_v56  ;;  %2474 = vmatprep.subr.bf16.mxu1 %v1092_v52 }
 0x58d   : > { %v1337_v58 = vsel %vm710_vm1, %v3719_v57, 0.0 }
 0x58e   : > { %v3723_v59 = vpop.eup %2828 }
 0x58f   : > { %2475 = vmatpush3.bf16.msra.mxu1 %v1092_v52  ;;  %v1340_v60 = vsel %vm710_vm1, %v3723_v59, 0.0 }
 0x590   : > { %1338 = vadd.xlane.f32.xlu0 %v1337_v58 }
 0x594   : > { %1341 = vadd.xlane.f32.xlu0 %v1340_v60 }
 0x59b   : > { %1095 = vrot.lane.b32.xlu1 %v3530_v51, %s3156_s24 }
 0x5ba   : > { %v1001_v61 = vpop.xlane.xlu0 %1000 }
 0x5bb   : > { %v1019_v62 = vsub.f32 %v3641_v21, %v1001_v61 }
 0x5bc   : > { %v998_v47 = vpop.xlane.xlu1 %997 }
 0x5bd   : > { %v1029_v63 = vmul.f32 1.442695, %v1019_v62  ;;  %v1018_v52 = vsub.f32 %v3647_v24, %v998_v47  ;;  %v1327_v24 = vmul.f32 1.442695, %v1313_v25 }
 0x5be   : > { %v995_v0 = vpop.xlane.xlu0 %994 }
 0x5bf   : > { %2830 = vpow2.f32 %v1029_v63  ;;  %v1017_v2 = vsub.f32 %v3643_v22, %v995_v0  ;;  %1015 = vmax.xlane.f32.xlu1 %v1014_v1  ;;  %v1027_v60 = vmul.f32 1.442695, %v1018_v52  ;;  %v1323_v0 = vmul.f32 1.442695, %v1311_v11 }
 0x5c1   : > { %v1025_v3 = vmul.f32 1.442695, %v1017_v2 }
 0x5c2   : > { %v1004_v4 = vpop.xlane.xlu0 %1003 }
 0x5c3   : > { %2832 = vpow2.f32 %v1025_v3  ;;  %1009 = vmax.xlane.f32.xlu1 %v1008_v7  ;;  %v1020_v43 = vsub.f32 %v3645_v23, %v1004_v4 }
 0x5c5   : > { %v1031_v56 = vmul.f32 1.442695, %v1020_v43 }
 0x5c6   : > { %v1013_v9 = vpop.xlane.xlu0 %1012 }
 0x5c7   : > { %v1023_v58 = vsub.f32 %v3650_v30, %v1013_v9  ;;  %2834 = vpow2.f32 %v1031_v56 }
 0x5c8   : > { %2836 = vpow2.f32 %v1027_v60 }
 0x5c9   : > { %v3735_v10 = vpop.eup %2830  ;;  %v1037_v62 = vmul.f32 1.442695, %v1023_v58 }
 0x5ca   : > { %v1007_v21 = vpop.xlane.xlu0 %1006  ;;  %v1047_v12 = vsel %vm710_vm1, %v3735_v10, 0.0 }
 0x5cb   : > { %1048 = vadd.xlane.f32.xlu0 %v1047_v12  ;;  %v1021_v61 = vsub.f32 %v3653_v35, %v1007_v21  ;;  %2838 = vpow2.f32 %v1037_v62 }
 0x5cd   : > { %v3739_v6 = vpop.eup %2832  ;;  %v1033_v63 = vmul.f32 1.442695, %v1021_v61 }
 0x5ce   : > { %v1094_v8 = vpop.permute.xlu0 %1093  ;;  %v1041_v22 = vsel %vm710_vm1, %v3739_v6, 0.0 }
 0x5cf   : > { %1042 = vadd.xlane.f32.xlu0 %v1041_v22  ;;  %2476 = vmatprep.subr.bf16.mxu1 %v1094_v8  ;;  %2840 = vpow2.f32 %v1033_v63 }
 0x5d0   : > { %2477 = vmatpush3.bf16.msra.mxu1 %v1094_v8  ;;  %2842 = vpow2.f32 %v1323_v0 }
 0x5d1   : > { %v3756_v23 = vpop.eup %2834  ;;  %2844 = vpow2.f32 %v1327_v24 }
 0x5d2   : > { %v1050_v30 = vsel %vm710_vm1, %v3756_v23, 0.0  ;;  %v3763_v35 = vpop.eup %2836  ;;  %2846 = vpow2.f32 %v1329_v44 }
 0x5d3   : > { %v1044_v11 = vsel %vm710_vm1, %v3763_v35, 0.0 }
 0x5d4   : > { %1377 = vrot.lane.b32.xlu1 %v3509_v33, %s3157_s26 }
 0x5d5   : > { %v3768_v5 = vpop.eup %2838 }
 0x5d6   : > { %v1059_v29 = vsel %vm710_vm1, %v3768_v5, 0.0 }
 0x5d8   : > { %1379 = vrot.lane.b32.xlu1 %v3533_v54, %s3157_s26 }
 0x5d9   : > { %v3772_v1 = vpop.eup %2840 }
 0x5da   : > { %v1053_v42 = vsel %vm710_vm1, %v3772_v1, 0.0  ;;  %v3778_v25 = vpop.eup %2842 }
 0x5db   : > { %v1343_v45 = vsel %vm710_vm1, %v3778_v25, 0.0  ;;  %v3782_v31 = vpop.eup %2844 }
 0x5dc   : > { %v1349_v40 = vsel %vm710_vm1, %v3782_v31, 0.0  ;;  %v3786_v2 = vpop.eup %2846 }
 0x5dd   : > { %v1352_v3 = vsel %vm710_vm1, %v3786_v2, 0.0 }
 0x5e5   : > { %1375 = vrot.lane.b32.xlu0 %v3513_v37, %s3157_s26 }
 0x5fc   : > { %1051 = vadd.xlane.f32.xlu1 %v1050_v30 }
 0x600   : > { %1045 = vadd.xlane.f32.xlu1 %v1044_v11  ;;  %v1325_v11 = vmul.f32 1.442695, %v1312_v26 }
 0x604   : > { %1054 = vadd.xlane.f32.xlu0 %v1053_v42  ;;  %1060 = vadd.xlane.f32.xlu1 %v1059_v29 }
 0x608   : > { %1344 = vadd.xlane.f32.xlu0 %v1343_v45 }
 0x60c   : > { %1350 = vadd.xlane.f32.xlu0 %v1349_v40 }
 0x610   : > { %1353 = vadd.xlane.f32.xlu0 %v1352_v3 }
 0x617   : > { %v1333_v4 = vpop.xlane.xlu1 %1332 }
 0x618   : > { %2848 = vrcp.f32 %v1333_v4 }
 0x619   : > { %v1336_v7 = vpop.xlane.xlu0 %1335 }
 0x61a   : > { %2850 = vrcp.f32 %v1336_v7 }
 0x61b   : > { %v1096_v9 = vpop.permute.xlu1 %1095 }
 0x61c   : > { %2478 = vmatprep.subr.bf16.mxu1 %v1096_v9 }
 0x61d   : > { %v1339_v21 = vpop.xlane.xlu0 %1338  ;;  %2479 = vmatpush3.bf16.msra.mxu1 %v1096_v9 }
 0x61e   : > { %2852 = vrcp.f32 %v1339_v21 }
 0x621   : > { %v1342_v12 = vpop.xlane.xlu0 %1341 }
 0x622   : > { %v2849_v8 = vpop.eup %2848  ;;  %2854 = vrcp.f32 %v1342_v12 }
 0x623   : > { %v3791_v43 = vmul.f32 %v2849_v8, %v3709_v27 }
 0x624   : > { %v2851_v22 = vpop.eup %2850 }
 0x625   : > { %v3794_v47 = vmul.f32 %v2851_v22, %v3715_v50 }
 0x626   : > { %1472 = vrot.lane.b32.xlu0 %v3444_v34, %s3158_s10 }
 0x627   : > { %v1371_v52 = vpack.c.bf16 %v3794_v47, %v3791_v43 }
 0x628   : > { %v2853_v56 = vpop.eup %2852 }
 0x629   : > { %v3803_v60 = vmul.f32 %v2853_v56, %v3719_v57 }
 0x62a   : > { %1464 = vrot.lane.b32.xlu0 %v3442_v32, %s3158_s10 }
 0x62c   : > { %v2855_v58 = vpop.eup %2854 }
 0x62d   : > { %v3806_v27 = vmul.f32 %v2855_v58, %v3723_v59 }
 0x62e   : > { %1468 = vrot.lane.b32.xlu0 %v3460_v46, %s3158_s10 }
 0x62f   : > { %v1372_v34 = vpack.c.bf16 %v3806_v27, %v3803_v60 }
 0x64c   : > { %v1016_v50 = vpop.xlane.xlu1 %1015 }
 0x64d   : > { %v1024_v61 = vsub.f32 %v3655_v38, %v1016_v50 }
 0x64f   : > { %v1039_v62 = vmul.f32 1.442695, %v1024_v61 }
 0x650   : > { %v1010_v63 = vpop.xlane.xlu1 %1009 }
 0x651   : > { %2856 = vpow2.f32 %v1039_v62  ;;  %v1022_v32 = vsub.f32 %v3658_v36, %v1010_v63 }
 0x653   : > { %v1035_v0 = vmul.f32 1.442695, %v1022_v32 }
 0x654   : > { %v1378_v36 = vpop.permute.xlu1 %1377 }
 0x655   : > { %2858 = vpow2.f32 %v1035_v0 }
 0x656   : > { %2860 = vpow2.f32 %v1325_v11 }
 0x658   : > { %v1049_v57 = vpop.xlane.xlu0 %1048  ;;  %v1380_v42 = vpop.permute.xlu1 %1379 }
 0x65b   : > { %v3814_v24 = vpop.eup %2856 }
 0x65c   : > { %v1043_v59 = vpop.xlane.xlu0 %1042  ;;  %v1062_v46 = vsel %vm710_vm1, %v3814_v24, 0.0 }
 0x65d   : > { %1063 = vadd.xlane.f32.xlu1 %v1062_v46 }
 0x65f   : > { %v3818_v30 = vpop.eup %2858 }
 0x660   : > { %v1376_v44 = vpop.permute.xlu0 %1375  ;;  %v1056_v38 = vsel %vm710_vm1, %v3818_v30, 0.0  ;;  %v3827_v40 = vpop.eup %2860 }
 0x661   : > { %2504 = vmatprep.subr.bf16.mxu1 %v1376_v44  ;;  %1057 = vadd.xlane.f32.xlu1 %v1056_v38  ;;  %v1346_v4 = vsel %vm710_vm1, %v3827_v40, 0.0 }
 0x672   : > { %1381 = vrot.lane.b32.xlu1 %v3530_v51, %s3157_s26 }
 0x689   : > { %v1052_v29 = vpop.xlane.xlu1 %1051 }
 0x68a   : > { %2862 = vrcp.f32 %v1052_v29 }
 0x68b   : > { %2864 = vrcp.f32 %v1043_v59 }
 0x68c   : > { %2866 = vrcp.f32 %v1049_v57 }
 0x68d   : > { %v1046_v45 = vpop.xlane.xlu1 %1045 }
 0x68e   : > { %2868 = vrcp.f32 %v1046_v45 }
 0x694   : > { %v2863_v3 = vpop.eup %2862 }
 0x695   : > { %v2865_v7 = vpop.eup %2864  ;;  %v1076_v49 = vmul.f32 %v2863_v3, %v3756_v23  ;;  %v1061_v23 = vpop.xlane.xlu1 %1060 }
 0x696   : > { %1347 = vadd.xlane.f32.xlu1 %v1346_v4  ;;  %v2867_v9 = vpop.eup %2866  ;;  %v1073_v28 = vmul.f32 %v2865_v7, %v3739_v6 }
 0x697   : > { %v1075_v12 = vmul.f32 %v2867_v9, %v3735_v10  ;;  %v1055_v10 = vpop.xlane.xlu0 %1054 }
 0x698   : > { %v2869_v21 = vpop.eup %2868 }
 0x699   : > { %v1074_v26 = vmul.f32 %v2869_v21, %v3763_v35  ;;  %v1082_v22 = vpack.c.bf16 %v1076_v49, %v1075_v12 }
 0x69b   : > { %v1081_v8 = vpack.c.bf16 %v1074_v26, %v1073_v28  ;;  %v1345_v6 = vpop.xlane.xlu0 %1344 }
 0x69d   : > { %2480 = vmatprep.mubr.msk.bf16.mxu1 %vm710_vm1, %v1081_v8 }
 0x69e   : > { %2481 = vmatmul.mubr.msk.bf16.vlgmr.msra.gmra.mrb[24].mxu1 %vm710_vm1, %v1082_v22 }
 0x69f   : > { %2505 = vmatpush3.bf16.msra.mxu1 %v1376_v44  ;;  %v1351_v35 = vpop.xlane.xlu0 %1350 }
 0x6a0   : > { %2506 = vmatprep.subr.bf16.mxu1 %v1378_v36 }
 0x6a3   : > { %2507 = vmatpush3.bf16.msra.mxu1 %v1378_v36 }
 0x6a4   : > { %2508 = vmatprep.subr.bf16.mxu1 %v1380_v42 }
 0x6a7   : > { %2509 = vmatpush3.bf16.msra.mxu1 %v1380_v42  ;;  %1474 = vrot.lane.b32.xlu1 %v3454_v41, %s3158_s10  ;;  %v1354_v41 = vpop.xlane.xlu0 %1353 }
 0x6ab   : > { %1476 = vrot.lane.b32.xlu1 %v3462_v48, %s3158_s10 }
 0x6af   : > { %1478 = vrot.lane.b32.xlu1 %v3470_v55, %s3158_s10  ;;  %v1473_v55 = vpop.permute.xlu0 %1472 }
 0x6b0   : > { %v1493_v46 = vsel %vm620_vm0, %v1473_v55, 0 }
 0x6b3   : > { %1466 = vrot.lane.b32.xlu1 %v3452_v39, %s3158_s10  ;;  %v1465_v45 = vpop.permute.xlu0 %1464 }
 0x6b7   : > { %1470 = vrot.lane.b32.xlu1 %v3468_v53, %s3158_s10 }
 0x6ea   : > { %v1064_v56 = vpop.xlane.xlu1 %1063 }
 0x6eb   : > { %2870 = vrcp.f32 %v1064_v56 }
 0x6ec   : > { %2872 = vrcp.f32 %v1055_v10 }
 0x6ed   : > { %2874 = vrcp.f32 %v1061_v23 }
 0x6ee   : > { %v1058_v58 = vpop.xlane.xlu1 %1057 }
 0x6ef   : > { %2876 = vrcp.f32 %v1058_v58 }
 0x6f0   : > { %2878 = vrcp.f32 %v1354_v41 }
 0x6f1   : > { %2880 = vrcp.f32 %v1345_v6 }
 0x6f2   : > { %v1382_v48 = vpop.permute.xlu1 %1381  ;;  %2882 = vrcp.f32 %v1351_v35 }
 0x6f3   : > { %2510 = vmatprep.subr.bf16.mxu1 %v1382_v48 }
 0x6f4   : > { %2511 = vmatpush3.bf16.msra.mxu1 %v1382_v48 }
 0x6f5   : > { %2588 = vmatprep.subr.msk.bf16.mxu1 %vm620_vm0, %v1473_v55  ;;  %v2871_v39 = vpop.eup %2870 }
 0x6f6   : > { %v2873_v50 = vpop.eup %2872  ;;  %v1080_v62 = vmul.f32 %v2871_v39, %v3814_v24 }
 0x6f7   : > { %v2875_v53 = vpop.eup %2874  ;;  %v1077_v63 = vmul.f32 %v2873_v50, %v3772_v1 }
 0x6f8   : > { %v1079_v0 = vmul.f32 %v2875_v53, %v3768_v5 }
 0x6f9   : > { %v2877_v61 = vpop.eup %2876 }
 0x6fa   : > { %v1078_v32 = vmul.f32 %v2877_v61, %v3818_v30  ;;  %v1084_v59 = vpack.c.bf16 %v1080_v62, %v1079_v0  ;;  %v2879_v43 = vpop.eup %2878 }
 0x6fc   : > { %v1083_v57 = vpack.c.bf16 %v1078_v32, %v1077_v63 }
 0x6fe   : > { %2484 = vmatprep.mubr.msk.bf16.mxu1 %vm710_vm1, %v1083_v57 }
 0x6ff   : > { %2485 = vmatmul.mubr.msk.bf16.gmra.mrb[28].mxu1 %vm710_vm1, %v1084_v59 }
 0x700   : > { %2512 = vmatprep.mubr.msk.bf16.mxu1 %vm710_vm1, %v1371_v52  ;;  %v2881_v52 = vpop.eup %2880 }
 0x701   : > { %v2883_v60 = vpop.eup %2882  ;;  %v1367_v30 = vmul.f32 %v2881_v52, %v3778_v25 }
 0x702   : > { %v1369_v36 = vmul.f32 %v2883_v60, %v3782_v31 }
 0x707   : > { %2513 = vmatmul.mubr.msk.bf16.vlgmr.msra.gmra.mrb[32].mxu1 %vm710_vm1, %v1372_v34  ;;  %v1370_v34 = vmul.f32 %v2879_v43, %v3786_v2 }
 0x708   : > { %2521 = vmatpush3.bf16.xpose.msra.mxu1 %v1493_v46 }
 0x709   : > { %v1374_v29 = vpack.c.bf16 %v1370_v34, %v1369_v36 }
 0x723   : > { %v1348_v5 = vpop.xlane.xlu1 %1347 }
 0x724   : > { %2884 = vrcp.f32 %v1348_v5 }
 0x727   : > { %v1475_v1 = vpop.permute.xlu1 %1474 }
 0x728   : > { %v1496_v24 = vsel %vm620_vm0, %v1475_v1, 0  ;;  %2589 = vmatprep.subr.msk.bf16.mxu1 %vm620_vm0, %v1475_v1 }
 0x729   : > { %2523 = vmatpush3.bf16.xpose.msra.mxu1 %v1496_v24 }
 0x72b   : > { %v1477_v47 = vpop.permute.xlu1 %1476 }
 0x72c   : > { %2590 = vmatprep.subr.msk.bf16.mxu1 %vm620_vm0, %v1477_v47  ;;  %v1499_v38 = vsel %vm620_vm0, %v1477_v47, 0 }
 0x72e   : > { %v2885_v27 = vpop.eup %2884 }
 0x72f   : > { %v1368_v44 = vmul.f32 %v2885_v27, %v3827_v40  ;;  %v1479_v11 = vpop.permute.xlu1 %1478  ;;  %v1469_v40 = vpop.permute.xlu0 %1468 }
 0x730   : > { %v1502_v25 = vsel %vm620_vm0, %v1479_v11, 0 }
 0x731   : > { %2525 = vmatpush3.bf16.xpose.msra.mxu1 %v1499_v38  ;;  %v1373_v42 = vpack.c.bf16 %v1368_v44, %v1367_v30 }
 0x732   : > { %2591 = vmatprep.subr.msk.bf16.mxu1 %vm620_vm0, %v1479_v11 }
 0x733   : > { %2516 = vmatprep.mubr.msk.bf16.mxu1 %vm710_vm1, %v1373_v42  ;;  %v1467_v2 = vpop.permute.xlu1 %1466 }
 0x734   : > { %2517 = vmatmul.mubr.msk.bf16.gmra.mrb[36].mxu1 %vm710_vm1, %v1374_v29 }
 0x735   : > { %2528 = vmatprep.mubr.msk.bf16.mxu1 %vm620_vm0, %v1465_v45 }
 0x737   : > { %v1471_v31 = vpop.permute.xlu1 %1470 }
 0x739   : > { %2527 = vmatpush3.bf16.xpose.msra.mxu1 %v1502_v25 }
 0x740   : > { %2529 = vmatmul.mubr.msk.bf16.vlgmr.msra.gmra.mrb[40].mxu1 %vm620_vm0, %v1467_v2 }
 0x741   : > { %2532 = vmatprep.mubr.msk.bf16.mxu1 %vm620_vm0, %v1469_v40 }
 0x748   : > { %2533 = vmatmul.mubr.msk.bf16.gmra.mrb[44].mxu1 %vm620_vm0, %v1471_v31 }
 0x771   : > { %v3879_v3 = vpop.f32.mrb[24].mxu1 }
 0x772   : > { %v3881_v4 = vpop.f32.mrb[25].mxu1 }
 0x773   : > { %v3883_v7 = vpop.f32.mrb[26].mxu1 }
 0x774   : > { %v2695_v9 = vpack.i.bf16 %v3883_v7, %v3879_v3  ;;  %v3887_v21 = vpop.f32.mrb[27].mxu1 }
 0x775   : > { %v2690_v49 = vpack.i.bf16 %v3887_v21, %v3881_v4 }
 0x7d2   : > { %v3891_v28 = vpop.f32.mrb[28].mxu1 }
 0x7d3   : > { %v3893_v26 = vpop.f32.mrb[29].mxu1 }
 0x7d4   : > { %v3895_v12 = vpop.f32.mrb[30].mxu1 }
 0x7d5   : > { %v2715_v8 = vpack.i.bf16 %v3895_v12, %v3891_v28  ;;  %v3899_v22 = vpop.f32.mrb[31].mxu1 }
 0x7d6   : > { %v2710_v10 = vpack.i.bf16 %v3899_v22, %v3893_v26 }
 0x7da   : > { %v3903_v6 = vpop.f32.mrb[32].mxu1 }
 0x7db   : > { %v3905_v23 = vpop.f32.mrb[33].mxu1 }
 0x7dc   : > { %v3907_v35 = vpop.f32.mrb[34].mxu1 }
 0x7dd   : > { %v2705_v56 = vpack.i.bf16 %v3907_v35, %v3903_v6  ;;  %v3911_v41 = vpop.f32.mrb[35].mxu1 }
 0x7de   : > { %v2700_v58 = vpack.i.bf16 %v3911_v41, %v3905_v23 }
 0x807   : > { %v3915_v48 = vpop.f32.mrb[36].mxu1 }
 0x808   : > { %v3917_v55 = vpop.f32.mrb[37].mxu1 }
 0x809   : > { %v3919_v39 = vpop.f32.mrb[38].mxu1 }
 0x80a   : > { %v2735_v50 = vpack.i.bf16 %v3919_v39, %v3915_v48  ;;  %v3923_v53 = vpop.f32.mrb[39].mxu1 }
 0x80b   : > { %v2730_v61 = vpack.i.bf16 %v3923_v53, %v3917_v55 }
 0x813   : > { %v2530_v62 = vpop.f32.mrb[40].mxu1 }
 0x814   : > { %v1538_v63 = vpop.f32.mrb[41].mxu1  ;;  %v1575_v46 = vsel %vm710_vm1, %v2530_v62, -inf }
 0x815   : > { %v2531_v32 = vpop.f32.mrb[42].mxu1  ;;  %v1569_v0 = vsel %vm710_vm1, %v1538_v63, -inf }
 0x816   : > { %1570 = vmax.xlane.f32.xlu0 %v1569_v0  ;;  %v1541_v57 = vpop.f32.mrb[43].mxu1  ;;  %v1578_v43 = vsel %vm710_vm1, %v2531_v32, -inf }
 0x817   : > { %v1572_v59 = vsel %vm710_vm1, %v1541_v57, -inf }
 0x818   : > { %1573 = vmax.xlane.f32.xlu1 %v1572_v59 }
 0x81a   : > { %1576 = vmax.xlane.f32.xlu0 %v1575_v46 }
 0x81b   : > { %v2534_v5 = vpop.f32.mrb[44].mxu1 }
 0x81c   : > { %v1554_v1 = vpop.f32.mrb[45].mxu1  ;;  %v1587_v34 = vsel %vm710_vm1, %v2534_v5, -inf }
 0x81d   : > { %v3930_v24 = vpop.f32.mrb[46].mxu1  ;;  %v1581_v60 = vsel %vm710_vm1, %v1554_v1, -inf }
 0x81e   : > { %1579 = vmax.xlane.f32.xlu0 %v1578_v43  ;;  %v1557_v47 = vpop.f32.mrb[47].mxu1  ;;  %v1590_v27 = vsel %vm710_vm1, %v3930_v24, -inf }
 0x81f   : > { %v1584_v52 = vsel %vm710_vm1, %v1557_v47, -inf }
 0x820   : > { %1585 = vmax.xlane.f32.xlu1 %v1584_v52 }
 0x822   : > { %1582 = vmax.xlane.f32.xlu0 %v1581_v60 }
 0x824   : > { %1591 = vmax.xlane.f32.xlu1 %v1590_v27 }
 0x826   : > { %1588 = vmax.xlane.f32.xlu0 %v1587_v34 }
 0x8a3   : > { %v1571_v30 = vpop.xlane.xlu0 %1570 }
 0x8a4   : > { %v1593_v44 = vsub.f32 %v1538_v63, %v1571_v30 }
 0x8a5   : > { %v1574_v38 = vpop.xlane.xlu1 %1573 }
 0x8a6   : > { %v1601_v42 = vmul.f32 1.442695, %v1593_v44  ;;  %v1594_v29 = vsub.f32 %v1541_v57, %v1574_v38 }
 0x8a7   : > { %v1577_v36 = vpop.xlane.xlu0 %1576 }
 0x8a8   : > { %v1595_v11 = vsub.f32 %v2530_v62, %v1577_v36  ;;  %v1603_v40 = vmul.f32 1.442695, %v1594_v29 }
 0x8aa   : > { %v1605_v45 = vmul.f32 1.442695, %v1595_v11 }
 0x8ab   : > { %v1580_v25 = vpop.xlane.xlu0 %1579 }
 0x8ac   : > { %2886 = vpow2.f32 %v1605_v45  ;;  %v1596_v2 = vsub.f32 %v2531_v32, %v1580_v25 }
 0x8ad   : > { %2888 = vpow2.f32 %v1601_v42  ;;  %v1586_v11 = vpop.xlane.xlu1 %1585 }
 0x8ae   : > { %v1607_v31 = vmul.f32 1.442695, %v1596_v2 }
 0x8af   : > { %v1583_v0 = vpop.xlane.xlu0 %1582 }
 0x8b0   : > { %2890 = vpow2.f32 %v1607_v31  ;;  %v1597_v59 = vsub.f32 %v1554_v1, %v1583_v0 }
 0x8b1   : > { %2892 = vpow2.f32 %v1603_v40  ;;  %v1592_v42 = vpop.xlane.xlu1 %1591 }
 0x8b2   : > { %v1609_v63 = vmul.f32 1.442695, %v1597_v59  ;;  %v1600_v29 = vsub.f32 %v3930_v24, %v1592_v42 }
 0x8b3   : > { %v1589_v46 = vpop.xlane.xlu0 %1588 }
 0x8b4   : > { %v1599_v43 = vsub.f32 %v2534_v5, %v1589_v46  ;;  %v1615_v45 = vmul.f32 1.442695, %v1600_v29 }
 0x8b6   : > { %v3938_v52 = vpop.eup %2886  ;;  %v1613_v60 = vmul.f32 1.442695, %v1599_v43 }
 0x8b7   : > { %v1623_v62 = vsel %vm710_vm1, %v3938_v52, 0.0  ;;  %v2889_v57 = vpop.eup %2888 }
 0x8b8   : > { %2894 = vpow2.f32 %v1613_v60  ;;  %1624 = vadd.xlane.f32.xlu0 %v1623_v62  ;;  %v1617_v27 = vsel %vm710_vm1, %v2889_v57, 0.0 }
 0x8b9   : > { %2896 = vpow2.f32 %v1609_v63 }
 0x8ba   : > { %v3942_v32 = vpop.eup %2890  ;;  %2898 = vpow2.f32 %v1615_v45 }
 0x8bb   : > { %v1626_v1 = vsel %vm710_vm1, %v3942_v32, 0.0  ;;  %v2893_v34 = vpop.eup %2892 }
 0x8bc   : > { %1618 = vadd.xlane.f32.xlu0 %v1617_v27  ;;  %1627 = vadd.xlane.f32.xlu1 %v1626_v1  ;;  %v1620_v5 = vsel %vm710_vm1, %v2893_v34, 0.0  ;;  %v2783_v1 = vld [vmem:[#allocation8 + $0x8] sm:$0xff]  }
 0x8c0   : > { %1621 = vadd.xlane.f32.xlu1 %v1620_v5  ;;  %v2785_v5 = vld [vmem:[#allocation8 + $0x18] sm:$0xff]  }
 0x8c2   : > { %v3948_v30 = vpop.eup %2894 }
 0x8c3   : > { %v1635_v44 = vsel %vm710_vm1, %v3948_v30, 0.0  ;;  %v3952_v38 = vpop.eup %2896 }
 0x8c4   : > { %1636 = vadd.xlane.f32.xlu0 %v1635_v44  ;;  %v1629_v36 = vsel %vm710_vm1, %v3952_v38, 0.0  ;;  %v2786_v44 = vld [vmem:[#allocation8 + $0x20] sm:$0xff]  }
 0x8c8   : > { %1630 = vadd.xlane.f32.xlu0 %v1629_v36  ;;  %v2789_v36 = vld [vmem:[#allocation8 + $0x38] sm:$0xff]  }
 0x8d1   : > { %1663 = vrot.lane.b32.xlu1 %v3509_v33, %s3158_s10  ;;  %v1598_v33 = vsub.f32 %v1557_v47, %v1586_v11 }
 0x8d5   : > { %1665 = vrot.lane.b32.xlu1 %v3533_v54, %s3158_s10  ;;  %v2899_v54 = vpop.eup %2898 }
 0x8d6   : > { %v1638_v4 = vsel %vm710_vm1, %v2899_v54, 0.0 }
 0x8de   : > { %1661 = vrot.lane.b32.xlu0 %v3513_v37, %s3158_s10  ;;  %v1611_v37 = vmul.f32 1.442695, %v1598_v33 }
 0x8e0   : > { %2900 = vpow2.f32 %v1611_v37 }
 0x8e2   : > { %2691 = vrot.lane.b32.xlu0 %v2690_v49, %s3158_s10 }
 0x8e6   : > { %2701 = vrot.lane.b32.xlu0 %v2700_v58, %s3157_s26 }
 0x8ea   : > { %2711 = vrot.lane.b32.xlu0 %v2710_v10, %s3158_s10  ;;  %v2901_v21 = vpop.eup %2900 }
 0x8eb   : > { %v1632_v49 = vsel %vm710_vm1, %v2901_v21, 0.0 }
 0x8f9   : > { %1639 = vadd.xlane.f32.xlu1 %v1638_v4 }
 0x8fd   : > { %1633 = vadd.xlane.f32.xlu1 %v1632_v49 }
 0x90e   : > { %1667 = vrot.lane.b32.xlu1 %v3530_v51, %s3158_s10 }
 0x912   : > { %2696 = vrot.lane.b32.xlu1 %v2695_v9, %s3158_s10 }
 0x916   : > { %2706 = vrot.lane.b32.xlu1 %v2705_v56, %s3157_s26 }
 0x91a   : > { %2716 = vrot.lane.b32.xlu1 %v2715_v8, %s3158_s10 }
 0x945   : > { %v1625_v26 = vpop.xlane.xlu0 %1624 }
 0x949   : > { %v1619_v22 = vpop.xlane.xlu0 %1618  ;;  %v1628_v10 = vpop.xlane.xlu1 %1627 }
 0x94a   : > { %2902 = vrcp.f32 %v1619_v22 }
 0x94d   : > { %v1622_v51 = vpop.xlane.xlu1 %1621 }
 0x94e   : > { %2904 = vrcp.f32 %v1622_v51 }
 0x94f   : > { %2906 = vrcp.f32 %v1628_v10 }
 0x950   : > { %2908 = vrcp.f32 %v1625_v26 }
 0x951   : > { %v1637_v23 = vpop.xlane.xlu0 %1636  ;;  %v1664_v9 = vpop.permute.xlu1 %1663 }
 0x954   : > { %v2903_v3 = vpop.eup %2902 }
 0x955   : > { %v1631_v41 = vpop.xlane.xlu0 %1630  ;;  %v1649_v24 = vmul.f32 %v2903_v3, %v2889_v57  ;;  %v1666_v28 = vpop.permute.xlu1 %1665 }
 0x958   : > { %v2905_v7 = vpop.eup %2904 }
 0x959   : > { %v1662_v58 = vpop.permute.xlu0 %1661  ;;  %v1650_v6 = vmul.f32 %v2905_v7, %v2893_v34  ;;  %v2907_v8 = vpop.eup %2906  ;;  %v2784_v34 = vld [vmem:[#allocation8 + $0x10] sm:$0xff]  }
 0x95a   : > { %2536 = vmatprep.subr.bf16.mxu0 %v1662_v58  ;;  %v2909_v47 = vpop.eup %2908  ;;  %v1652_v25 = vmul.f32 %v2907_v8, %v3942_v32 }
 0x95b   : > { %2537 = vmatpush3.bf16.msra.mxu0 %v1662_v58  ;;  %v1657_v35 = vpack.c.bf16 %v1650_v6, %v1649_v24  ;;  %v1651_v40 = vmul.f32 %v2909_v47, %v3938_v52  ;;  %v2782_v52 = vld [vmem:[#allocation8] sm:$0xff]  }
 0x95c   : > { %2538 = vmatprep.subr.bf16.mxu0 %v1664_v9 }
 0x95d   : > { %2544 = vmatprep.mubr.msk.bf16.mxu0 %vm710_vm1, %v1657_v35  ;;  %v1658_v31 = vpack.c.bf16 %v1652_v25, %v1651_v40  ;;  %v2692_v51 = vpop.permute.xlu0 %2691 }
 0x95e   : > { %v2693_v48 = vunpack.i.l.bf16 %v2692_v51  ;;  %v2694_v39 = vunpack.i.h.bf16 %v2692_v51 }
 0x95f   : > { %2539 = vmatpush3.bf16.msra.mxu0 %v1664_v9 }
 0x960   : > { %2540 = vmatprep.subr.bf16.mxu0 %v1666_v28  ;;  %v1846_v58 = vsel %vm620_vm0, %v3627_v14, %v2693_v48  ;;  %v1847_v6 = vsel %vm620_vm0, %v3631_v16, %v2694_v39 }
 0x963   : > { %2541 = vmatpush3.bf16.msra.mxu0 %v1666_v28 }
 0x986   : > { %v1640_v12 = vpop.xlane.xlu1 %1639 }
 0x987   : > { %2910 = vrcp.f32 %v1640_v12 }
 0x988   : > { %2912 = vrcp.f32 %v1631_v41  ;;  %v2702_v41 = vpop.permute.xlu0 %2701 }
 0x989   : > { %2914 = vrcp.f32 %v1637_v23  ;;  %v2704_v24 = vunpack.i.h.bf16 %v2702_v41 }
 0x98a   : > { %v1634_v56 = vpop.xlane.xlu1 %1633 }
 0x98b   : > { %2916 = vrcp.f32 %v1634_v56  ;;  %v1855_v16 = vsel %vm710_vm1, %v1847_v6, %v2704_v24  ;;  %v2921_v6 = vld [vmem:[%s3411_s7 + $0x8] sm:$0xff] }
 0x98c   : > { %v2712_v7 = vpop.permute.xlu0 %2711 }
 0x98e   : > { %v1668_v2 = vpop.permute.xlu1 %1667 }
 0x98f   : > { %2542 = vmatprep.subr.bf16.mxu0 %v1668_v2 }
 0x990   : > { %2543 = vmatpush3.bf16.msra.mxu0 %v1668_v2 }
 0x991   : > { %v2911_v0 = vpop.eup %2910  ;;  %2552 = vmatprep.subr.bf16.mxu0 %v2782_v52 }
 0x992   : > { %v2913_v59 = vpop.eup %2912  ;;  %v1656_v63 = vmul.f32 %v2911_v0, %v2899_v54  ;;  %v2697_v10 = vpop.permute.xlu1 %2696  ;;  %v2714_v0 = vunpack.i.h.bf16 %v2712_v7 }
 0x993   : > { %2545 = vmatmul.mubr.msk.bf16.vlgmr.msra.gmra.mrb[32].mxu0 %vm710_vm1, %v1658_v31  ;;  %v2915_v46 = vpop.eup %2914  ;;  %v1653_v60 = vmul.f32 %v2913_v59, %v3952_v38  ;;  %v2788_v38 = vld [vmem:[#allocation8 + $0x30] sm:$0xff]   ;;  %v2699_v9 = vunpack.i.h.bf16 %v2697_v10  ;;  %v2698_v55 = vunpack.i.l.bf16 %v2697_v10  ;;  %v2257_v10 = vld [vmem:[#allocation10] ss:$0 sm:$0xff] }
 0x994   : > { %v1655_v57 = vmul.f32 %v2915_v46, %v3948_v30  ;;  %2553 = vmatpush3.bf16.msra.mxu0 %v2782_v52  ;;  %v2787_v30 = vld [vmem:[#allocation8 + $0x28] sm:$0xff]  }
 0x995   : > { %v2917_v43 = vpop.eup %2916  ;;  %2554 = vmatprep.subr.bf16.mxu0 %v2783_v1  ;;  %v1849_v12 = vsel %vm620_vm0, %v3629_v15, %v2699_v9  ;;  %v1848_v8 = vsel %vm620_vm0, %v3625_v13, %v2698_v55  ;;  %v2713_v15 = vunpack.i.l.bf16 %v2712_v7  ;;  %v2918_v9 = vld [vmem:[%s3411_s7 + $0x10] sm:$0xff] }
 0x996   : > { %v1654_v62 = vmul.f32 %v2917_v43, %v2901_v21  ;;  %v1660_v32 = vpack.c.bf16 %v1656_v63, %v1655_v57  ;;  %v2707_v23 = vpop.permute.xlu1 %2706 }
 0x997   : > { %v2709_v53 = vunpack.i.h.bf16 %v2707_v23 }
 0x998   : > { %v1659_v27 = vpack.c.bf16 %v1654_v62, %v1653_v60  ;;  %2555 = vmatpush3.bf16.msra.mxu0 %v2783_v1 }
 0x999   : > { %2556 = vmatprep.subr.bf16.mxu0 %v2784_v34  ;;  %v1857_v14 = vsel %vm710_vm1, %v1849_v12, %v2709_v53  ;;  %v2919_v53 = vld [vmem:[%s3411_s7 + $0x18] sm:$0xff] }
 0x99a   : > { %2548 = vmatprep.mubr.msk.bf16.mxu0 %vm710_vm1, %v1659_v27  ;;  %v2717_v3 = vpop.permute.xlu1 %2716 }
 0x99b   : > { %2549 = vmatmul.mubr.msk.bf16.gmra.mrb[36].mxu0 %vm710_vm1, %v1660_v32  ;;  %v2719_v62 = vunpack.i.h.bf16 %v2717_v3  ;;  %v2718_v57 = vunpack.i.l.bf16 %v2717_v3 }
 0x99c   : > { %2557 = vmatpush3.bf16.msra.mxu0 %v2784_v34 }
 0x99d   : > { %2558 = vmatprep.subr.bf16.mxu0 %v2785_v5 }
 0x9a0   : > { %2559 = vmatpush3.bf16.msra.mxu0 %v2785_v5 }
 0x9a1   : > { %2560 = vmatprep.subr.bf16.mxu0 %v2786_v44 }
 0x9a4   : > { %2561 = vmatpush3.bf16.msra.mxu0 %v2786_v44  ;;  %v1851_v44 = vsel %vm620_vm0, %v3639_v20, %v2714_v0 }
 0x9a5   : > { %2562 = vmatprep.subr.bf16.mxu0 %v2787_v30 }
 0x9a8   : > { %2563 = vmatpush3.bf16.msra.mxu0 %v2787_v30  ;;  %v1850_v30 = vsel %vm620_vm0, %v3635_v18, %v2713_v15  ;;  %v2924_v15 = vld [vmem:[%s3411_s7 + $0x20] sm:$0xff] }
 0x9a9   : > { %2564 = vmatprep.subr.bf16.mxu0 %v2788_v38 }
 0x9ac   : > { %2565 = vmatpush3.bf16.msra.mxu0 %v2788_v38 }
 0x9ad   : > { %2566 = vmatprep.subr.bf16.mxu0 %v2789_v36 }
 0x9b0   : > { %2567 = vmatpush3.bf16.msra.mxu0 %v2789_v36  ;;  %v1853_v36 = vsel %vm620_vm0, %v3637_v19, %v2719_v62 }
 0xa66   : > { %v2546_v11 = vpop.f32.mrb[32].mxu0 }
 0xa67   : > { %v1719_v42 = vpop.f32.mrb[33].mxu0 }
 0xa68   : > { %v2547_v29 = vpop.f32.mrb[34].mxu0 }
 0xa69   : > { %v2720_v33 = vpack.i.bf16 %v2547_v29, %v2546_v11  ;;  %v1722_v45 = vpop.f32.mrb[35].mxu0  ;;  %v1852_v11 = vsel %vm620_vm0, %v3633_v17, %v2718_v57 }
 0xa6a   : > { %v2725_v37 = vpack.i.bf16 %v1722_v45, %v1719_v42 }
 0xa6b   : > { %2721 = vrot.lane.b32.xlu1 %v2720_v33, %s3156_s24 }
 0xa6c   : > { %2726 = vrot.lane.b32.xlu0 %v2725_v37, %s3156_s24 }
 0xa6e   : > { %v2550_v54 = vpop.f32.mrb[36].mxu0 }
 0xa6f   : > { %2736 = vrot.lane.b32.xlu1 %v2735_v50, %s3157_s26  ;;  %v1735_v4 = vpop.f32.mrb[37].mxu0  ;;  %v2703_v50 = vunpack.i.l.bf16 %v2702_v41 }
 0xa70   : > { %2731 = vrot.lane.b32.xlu0 %v2730_v61, %s3157_s26  ;;  %v2551_v21 = vpop.f32.mrb[38].mxu0  ;;  %v2708_v61 = vunpack.i.l.bf16 %v2707_v23 }
 0xa71   : > { %v2745_v49 = vpack.i.bf16 %v2551_v21, %v2550_v54  ;;  %v1738_v26 = vpop.f32.mrb[39].mxu0  ;;  %v1854_v35 = vsel %vm710_vm1, %v1846_v58, %v2703_v50  ;;  %v2920_v58 = vld [vmem:[%s3411_s7] sm:$0xff] }
 0xa72   : > { %v2740_v22 = vpack.i.bf16 %v1738_v26, %v1735_v4  ;;  %v1856_v2 = vsel %vm710_vm1, %v1848_v8, %v2708_v61 }
 0xa73   : > { %2746 = vrot.lane.b32.xlu1 %v2745_v49, %s3156_s24 }
 0xa74   : > { %2741 = vrot.lane.b32.xlu0 %v2740_v22, %s3156_s24 }
 0xadd   : > { %v2722_v28 = vpop.permute.xlu1 %2721 }
 0xade   : > { %v2724_v56 = vunpack.i.h.bf16 %v2722_v28  ;;  %v2723_v47 = vunpack.i.l.bf16 %v2722_v28  ;;  %v2727_v25 = vpop.permute.xlu0 %2726 }
 0xadf   : > { %v2729_v40 = vunpack.i.h.bf16 %v2727_v25  ;;  %v2728_v31 = vunpack.i.l.bf16 %v2727_v25 }
 0xae0   : > { %v1865_v59 = vsel %vm1862_vm2, %v1856_v2, %v2723_v47  ;;  %v1866_v46 = vsel %vm1862_vm2, %v1857_v14, %v2724_v56 }
 0xae1   : > { %v1872_v43 = vpack.c.bf16 %v1866_v46, %v1865_v59  ;;  %v2737_v63 = vpop.permute.xlu1 %2736  ;;  %v1863_v13 = vsel %vm1862_vm2, %v1854_v35, %v2728_v31  ;;  %v1864_v60 = vsel %vm1862_vm2, %v1855_v16, %v2729_v40  ;;  %v2922_v16 = vld [vmem:[%s3411_s7 + $0x30] sm:$0xff]  ;;  %v2923_v59 = vld [vmem:[%s3411_s7 + $0x38] sm:$0xff] }
 0xae2   : > { %v2732_v27 = vpop.permute.xlu0 %2731  ;;  %v1871_v32 = vpack.c.bf16 %v1864_v60, %v1863_v13  ;;  %v2739_v52 = vunpack.i.h.bf16 %v2737_v63  ;;  %v2738_v1 = vunpack.i.l.bf16 %v2737_v63  ;;  %v2925_v63 = vld [vmem:[%s3411_s7 + $0x28] sm:$0xff] }
 0xae3   : > { %v2734_v34 = vunpack.i.h.bf16 %v2732_v27  ;;  %v2733_v5 = vunpack.i.l.bf16 %v2732_v27 }
 0xae4   : > { %2568 = vmatprep.mubr.bf16.mxu0 %v1871_v32  ;;  %v1860_v45 = vsel %vm710_vm1, %v1852_v11, %v2738_v1  ;;  %v1861_v37 = vsel %vm710_vm1, %v1853_v36, %v2739_v52 }
 0xae5   : > { %v2747_v38 = vpop.permute.xlu1 %2746  ;;  %2569 = vmatmul.mubr.bf16.vlgmr.msra.gmra.mrb[40].mxu0 %v1872_v43  ;;  %v1859_v4 = vsel %vm710_vm1, %v1851_v44, %v2734_v34  ;;  %v1858_v18 = vsel %vm710_vm1, %v1850_v30, %v2733_v5 }
 0xae6   : > { %v2749_v42 = vunpack.i.h.bf16 %v2747_v38  ;;  %v2748_v29 = vunpack.i.l.bf16 %v2747_v38  ;;  %v2742_v33 = vpop.permute.xlu0 %2741 }
 0xae7   : > { %v2744_v54 = vunpack.i.h.bf16 %v2742_v33  ;;  %v2743_v20 = vunpack.i.l.bf16 %v2742_v33 }
 0xae8   : > { %v1869_v21 = vsel %vm1862_vm2, %v1860_v45, %v2748_v29  ;;  %v1870_v19 = vsel %vm1862_vm2, %v1861_v37, %v2749_v42 }
 0xae9   : > { %v1867_v17 = vsel %vm1862_vm2, %v1858_v18, %v2743_v20  ;;  %v1868_v49 = vsel %vm1862_vm2, %v1859_v4, %v2744_v54  ;;  %v1874_v26 = vpack.c.bf16 %v1870_v19, %v1869_v21 }
 0xaea   : > { %v1873_v22 = vpack.c.bf16 %v1868_v49, %v1867_v17 }
 0xaec   : > { %2572 = vmatprep.mubr.bf16.mxu0 %v1873_v22 }
 0xaed   : > { %2573 = vmatmul.mubr.bf16.gmra.mrb[44].mxu0 %v1874_v26 }
 0xbb8   : > { %v2570_v51 = vpop.f32.mrb[40].mxu0 }
 0xbb9   : > { %v1989_v23 = vadd.f32 %v2570_v51, %v2257_v10  ;;  %v1980_v41 = vpop.f32.mrb[41].mxu0 }
 0xbba   : > { %v1981_v48 = vadd.f32 %v2257_v10, %v1980_v41  ;;  %v2571_v39 = vpop.f32.mrb[42].mxu0 }
 0xbbb   : > { %v1992_v50 = vadd.f32 %v2571_v39, %v2257_v10  ;;  %v1983_v3 = vpop.f32.mrb[43].mxu0  ;;  %v2013_v55 = vadd.f32 %v2918_v9, %v1989_v23 }
 0xbbc   : > { %v1984_v7 = vadd.f32 %v2257_v10, %v1983_v3  ;;  %v2011_v24 = vadd.f32 %v2920_v58, %v1981_v48 }
 0xbbd   : > { %v2014_v61 = vadd.f32 %v2919_v53, %v1992_v50 }
 0xbbe   : > { %v2012_v35 = vadd.f32 %v2921_v6, %v1984_v7 }
 0xbbf   : > { %v2297_v28 = vpack.c.bf16 %v2014_v61, %v2013_v55 }
 0xbc0   : > { %v2292_v12 = vpack.c.bf16 %v2012_v35, %v2011_v24  ;;  %v2574_v8 = vpop.f32.mrb[44].mxu0 }
 0xbc1   : > { %2309 = vst [vmem:[%s296_s27 + $0x8] sm:$0xff] %v2297_v28   ;;  %v2005_v56 = vadd.f32 %v2574_v8, %v2257_v10  ;;  %v1996_v47 = vpop.f32.mrb[45].mxu0 }
 0xbc2   : > { %2293 = vst [vmem:[%s296_s27] sm:$0xff] %v2292_v12   ;;  %v1997_v25 = vadd.f32 %v2257_v10, %v1996_v47  ;;  %v2575_v2 = vpop.f32.mrb[46].mxu0 }
 0xbc3   : > { %v2008_v14 = vadd.f32 %v2575_v2, %v2257_v10  ;;  %v1999_v40 = vpop.f32.mrb[47].mxu0  ;;  %v2017_v0 = vadd.f32 %v2922_v16, %v2005_v56 }
 0xbc4   : > { %v2000_v31 = vadd.f32 %v2257_v10, %v1999_v40  ;;  %v2015_v43 = vadd.f32 %v2924_v15, %v1997_v25 }
 0xbc5   : > { %v2018_v46 = vadd.f32 %v2923_v59, %v2008_v14 }
 0xbc6   : > { %v2016_v13 = vadd.f32 %v2925_v63, %v2000_v31 }
 0xbc7   : > { %v2307_v60 = vpack.c.bf16 %v2018_v46, %v2017_v0 }
 0xbc8   : > { %v2302_v62 = vpack.c.bf16 %v2016_v13, %v2015_v43 }
 0xbc9   : > { %2311 = vst [vmem:[%s296_s27 + $0x18] sm:$0xff] %v2307_v60  }
 0xbca   : > { %2310 = vst [vmem:[%s296_s27 + $0x10] sm:$0xff] %v2302_v62  }
 0xbcb   : > { %3081 = shalt.err (!%p3078_p13)
}
 0xbcc   : > { %s3082_s7 = scalar_lea.hbm %s4058_s11, 512  ;;  %s3086_s13 = scalar_lea.hbm %s4109_s5, 1024 }
 0xbcd   : > { %p3083_p9 = scmp.ne.s32.totalorder %s4058_s11, %s3082_s7  ;;  %p3087_p6 = scmp.lt.u32.totalorder %s4058_s11, %s4109_s5 }
 0xbce   : > { %p3088_p10 = scmp.lt.u32.totalorder %s3086_s13, %s3082_s7  ;;  %p3090_p4 = scmp.lt.u32.totalorder %s3082_s7, %s4058_s11 }
 0xbcf   : > { %p3084_p0 = pnand %p3083_p9, %p3358_p8 }
 0xbd0   : > { %p3089_p3 = por %p3088_p10, %p3087_p6 }
 0xbd1   : > { %p3085_p11 = pneg %p3084_p0 }
 0xbd2   : > { %p3091_p5 = por %p3090_p4, %p3089_p3 }
 0xbd4   : > { %p3092_p7 = pnand %p3091_p5, %p3085_p11 }
 0xbd6   : > { %3095 = shalt.err (!%p3092_p7)
}
 0xbd7   : > { %s3160_s8 = smov 4  }
 0xbd8   : > { %2610 = dma.vmem_to_hbm [thread:$0]  (%p3358_p8), %s4053_s28, 512, %s4058_s11, %s2060_s6, %s3157_s26, %s3157_s26, %s3160_s8  }
 0xbd9 PF: > { %s2088_s9 = sand.u32 1, %s3130_s18   ;;  %p4127_p12 = scmp.ne.s32.totalorder %s4114_s25, 0 }
 0xbda   : > { %p4128_p2 = scmp.ge.s32.totalorder %s3142_s21, 2  ;;  %s2089_s22 = scalar_lea.sflag [#allocation4], %s2088_s9 }
 0xbdc   : > { %p2630_p1 = pnand %p4128_p2, %p4127_p12 }
 0xbde   : > { %3125 = dma.done.wait (!%p2630_p1), %s2089_s22, 512  }
 0xbdf   : > { %3127 = vsyncadd (!%p2630_p1), %s2089_s22, 4294966784  ;;  %p20_p13 = scmp.ge.s32.totalorder %s3345_s12, 4   ;;  %s4129_s18 = smov %s3134_s19 }
 0xbe0   : > { %s4130_s19 = smov %s3138_s20  ;;  %s4131_s20 = smov %s3354_s16 }
 0xbe1   : > { %s4132_s21 = smov %s3345_s12  ;;  %22 = sbr.rel (!%p20_p13) target bundleno = 7 (0x7), region = 101 }
 0xbe8   :  { %2094 = vsyncpa [#allocation3], 1 }
 0xbe9   :  { %2096 = vsyncpa [#allocation3 + $0x1], 1 }
 0xbea   :  { %2097 = vsyncpa [#allocation6], 1 }
 0xbeb   :  { %2098 = vsyncpa [#allocation9], 1 }
 0xbec   :  { %2099 = vsyncpa [#allocation4], 1 }
 0xbed   :  { %2101 = vsyncpa [#allocation4 + $0x1], 1 }

// kernel: tpu_custom_call.1
= control target key start
LH: loop header
LB: loop body
LE: loop exit
PB: predicated region body
PF: predicated region fallthrough
CT: control target
= control target key end

     0   :  { %10 = vsyncpa [#allocation3], 0  ;;  %s4104_s0 = inlined_call_operand.hbm [shape: f32[2,64,128], index: 0, kind: input, shape index: {}]   ;;  %s4105_s1 = inlined_call_operand.hbm [shape: bf16[128,384], index: 1, kind: input, shape index: {}]   ;;  %s4106_s2 = inlined_call_operand.hbm [shape: f32[1,384], index: 2, kind: input, shape index: {}]   ;;  %s4107_s3 = inlined_call_operand.hbm [shape: bf16[128,128], index: 3, kind: input, shape index: {}]   ;;  %s4108_s4 = inlined_call_operand.hbm [shape: f32[1,128], index: 4, kind: input, shape index: {}]   ;;  %s4109_s5 = inlined_call_operand.hbm [shape: bf16[2,64,128], index: 5, kind: output, shape index: {}]  }
   0x1   :  { %12 = vsyncpa [#allocation3 + $0x1], 0 }
   0x2   :  { %13 = vsyncpa [#allocation6], 0 }
   0x3   :  { %14 = vsyncpa [#allocation9], 0 }
   0x4   :  { %15 = vsyncpa [#allocation4], 0 }
   0x5   :  { %17 = vsyncpa [#allocation4 + $0x1], 0  ;;  %s3191_s18 = smov 0   ;;  %s3193_s19 = smov 0  }
   0x6   :  { %s3195_s20 = smov 0   ;;  %s3197_s21 = smov 0  }
   0x7 LB: > { %s3212_s22 = sadd.s32 4294967295, %s3142_s21   ;;  %s2184_s23 = sadd.s32 4294967294, %s3142_s21   ;;  %s3142_s21 = sphi %s3197_s21, %s4132_s21   ;;  %s3138_s20 = sphi %s3195_s20, %s4131_s20   ;;  %s3134_s19 = sphi %s3193_s19, %s4130_s19   ;;  %s3130_s18 = sphi %s3191_s18, %s4129_s18  }
   0x8   : > { %p43_p0 = scmp.ne.s32.totalorder %s3134_s19, %s3130_s18  ;;  %p4110_p1 = scmp.eq.s32.totalorder %s3212_s22, 0 }
   0x9   : > { %p157_p3 = scmp.eq.s32.totalorder %s2184_s23, 1  ;;  %p2185_p5 = scmp.ge.s32.totalorder %s3142_s21, 1 }
   0xa   : > { %p3221_p4 = por %p4110_p1, %p43_p0  ;;  %p164_p7 = scmp.lt.s32.totalorder %s3142_s21, 3 }
   0xb   : > { %p3226_p6 = por %p157_p3, %p43_p0  ;;  %s3144_s27 = smov [#allocation5]  }
   0xc   : > { %s4113_s24 = scalar_select %p3221_p4, 1, 0 }
   0xd   : > { %s4114_s25 = scalar_select %p3226_p6, 1, 0 }
   0xe   : > { %p3231_p8 = pnand %p2185_p5, %p164_p7  ;;  %s176_s28 = sshll.u32 %s3144_s27, 4  ;;  %s3235_s28 = int_to_ptr.vmem [resolvable:$true] %s176_s28 }
   0xf   : > { %s3145_s30 = smov [#allocation8]   ;;  %s2926_s9 = scalar_lea.hbm %s4105_s1, 3072 }
  0x10   : > { %s4115_s26 = scalar_select %p3231_p8, 1, 0 }
  0x11   : > { %p2612_p9 = pneg %p3231_p8  ;;  %s200_s6 = sshll.u32 %s3145_s30, 4  ;;  %s3246_s6 = int_to_ptr.vmem [resolvable:$true] %s200_s6 }
  0x12   : > { %p2927_p12 = scmp.ne.s32.totalorder %s4105_s1, %s2926_s9  ;;  %p2933_p5 = scmp.lt.u32.totalorder %s2926_s9, %s4105_s1 }
  0x13   : > { %p3242_p11 = pnand %p2612_p9, %p4110_p1 }
  0x15   : > { %p3256_p13 = pneg %p3242_p11 }
  0x17   : > { %p2929_p0 = pnand %p3256_p13, %p2927_p12 }
  0x19   : > { %p2930_p3 = pneg %p2929_p0 }
  0x1b   : > { %p2935_p7 = pnand %p2933_p5, %p2930_p3 }
  0x1d   : > { %2938 = shalt.err (!%p2935_p7)
}
  0x1e   : > { %s2939_s15 = scalar_lea.vmem %s3235_s28, 3072  ;;  %p2947_p2 = scmp.lt.s32.totalorder %s3235_s28, %s3235_s28 }
  0x1f   : > { %p2940_p9 = scmp.ne.s32.totalorder %s3235_s28, %s2939_s15  ;;  %p2948_p6 = scmp.lt.s32.totalorder %s2939_s15, %s2939_s15 }
  0x21   : > { %p2942_p10 = pnand %p2940_p9, %p3256_p13  ;;  %p2949_p12 = por %p2948_p6, %p2947_p2 }
  0x23   : > { %p2943_p1 = pneg %p2942_p10 }
  0x25   : > { %p2950_p0 = pnand %p2949_p12, %p2943_p1 }
  0x27   : > { %2953 = shalt.err (!%p2950_p0)
}
  0x28   : > { %s3146_s16 = smov 192   ;;  %s3147_s17 = smov 12  }
  0x29   : > { %2615 = dma.hbm_to_vmem [thread:$0]  (!%p3242_p11), %s4105_s1, 3072, %s3235_s28, [#allocation6], %s3146_s16, %s3146_s16, %s3147_s17  }
  0x2a   : > { %s2954_s8 = scalar_lea.hbm %s4107_s3, 1024 }
  0x2b   : > { %p2955_p2 = scmp.ne.s32.totalorder %s4107_s3, %s2954_s8  ;;  %p2961_p10 = scmp.lt.u32.totalorder %s2954_s8, %s4107_s3 }
  0x2d   : > { %p2957_p1 = pnand %p2955_p2, %p3256_p13 }
  0x2f   : > { %p2958_p6 = pneg %p2957_p1 }
  0x31   : > { %p2963_p3 = pnand %p2961_p10, %p2958_p6 }
  0x33   : > { %2966 = shalt.err (!%p2963_p3)
}
  0x34   : > { %s2967_s28 = scalar_lea.vmem %s3246_s6, 1024  ;;  %p2975_p12 = scmp.lt.s32.totalorder %s3246_s6, %s3246_s6 }
  0x35   : > { %p2968_p5 = scmp.ne.s32.totalorder %s3246_s6, %s2967_s28  ;;  %p2976_p0 = scmp.lt.s32.totalorder %s2967_s28, %s2967_s28 }
  0x37   : > { %p2970_p7 = pnand %p2968_p5, %p3256_p13  ;;  %p2977_p2 = por %p2976_p0, %p2975_p12 }
  0x39   : > { %p2971_p9 = pneg %p2970_p7 }
  0x3b   : > { %p2978_p1 = pnand %p2977_p2, %p2971_p9 }
  0x3d   : > { %2981 = shalt.err (!%p2978_p1)
}
  0x3e   : > { %s3148_s14 = smov 64   ;;  %s3149_s15 = smov 4  }
  0x3f   : > { %2621 = dma.hbm_to_vmem [thread:$0]  (!%p3242_p11), %s4107_s3, 1024, %s3246_s6, [#allocation9], %s3148_s14, %s3148_s14, %s3149_s15  }
  0x40   : > { %s3150_s23 = smov [#allocation7]   ;;  %s3151_s30 = smov [#allocation10]  }
  0x41   : > { %s190_s27 = sshll.u32 %s3150_s23, 4  ;;  %s214_s7 = sshll.u32 %s3151_s30, 4  ;;  %s191_s27 = int_to_ptr.vmem [resolvable:$true] %s190_s27  ;;  %s3300_s7 = int_to_ptr.vmem [resolvable:$true] %s214_s7 }
  0x42   : > { %s2982_s10 = scalar_lea.hbm %s4106_s2, 48 }
  0x43   : > { %p2983_p6 = scmp.ne.s32.totalorder %s4106_s2, %s2982_s10  ;;  %p2989_p5 = scmp.lt.u32.totalorder %s2982_s10, %s4106_s2 }
  0x45   : > { %p2985_p10 = pnand %p2983_p6, %p3256_p13 }
  0x47   : > { %p2986_p3 = pneg %p2985_p10 }
  0x49   : > { %p2991_p7 = pnand %p2989_p5, %p2986_p3 }
  0x4b   : > { %2994 = shalt.err (!%p2991_p7)
}
  0x4c   : > { %s2995_s14 = scalar_lea.vmem %s191_s27, 48  ;;  %s3002_s15 = scalar_lea.vmem %s191_s27, 64 }
  0x4d   : > { %p2996_p9 = scmp.ne.s32.totalorder %s191_s27, %s2995_s14  ;;  %p3003_p2 = scmp.lt.s32.totalorder %s191_s27, %s191_s27 }
  0x4e   : > { %p3004_p1 = scmp.lt.s32.totalorder %s3002_s15, %s2995_s14 }
  0x4f   : > { %p2998_p12 = pnand %p2996_p9, %p3256_p13 }
  0x50   : > { %p3005_p4 = por %p3004_p1, %p3003_p2 }
  0x51   : > { %p2999_p0 = pneg %p2998_p12 }
  0x53   : > { %p3006_p8 = pnand %p3005_p4, %p2999_p0 }
  0x55   : > { %3009 = shalt.err (!%p3006_p8)
}
  0x56   : > { %2618 = dma.hbm_to_vmem [thread:$0]  (!%p3242_p11), %s4106_s2, 48, %s191_s27, [#allocation6]  }
  0x57   : > { %s3010_s8 = scalar_lea.hbm %s4108_s4, 16 }
  0x58   : > { %p3011_p6 = scmp.ne.s32.totalorder %s4108_s4, %s3010_s8  ;;  %p3017_p4 = scmp.lt.u32.totalorder %s3010_s8, %s4108_s4 }
  0x5a   : > { %p3013_p10 = pnand %p3011_p6, %p3256_p13 }
  0x5c   : > { %p3014_p3 = pneg %p3013_p10 }
  0x5e   : > { %p3019_p8 = pnand %p3017_p4, %p3014_p3 }
  0x60   : > { %3022 = shalt.err (!%p3019_p8)
}
  0x61   : > { %s3023_s27 = scalar_lea.vmem %s3300_s7, 16  ;;  %s3030_s28 = scalar_lea.vmem %s3300_s7, 32 }
  0x62   : > { %p3024_p5 = scmp.ne.s32.totalorder %s3300_s7, %s3023_s27  ;;  %p3031_p12 = scmp.lt.s32.totalorder %s3300_s7, %s3300_s7 }
  0x63   : > { %p3032_p0 = scmp.lt.s32.totalorder %s3030_s28, %s3023_s27 }
  0x64   : > { %p3026_p7 = pnand %p3024_p5, %p3256_p13 }
  0x65   : > { %p3033_p2 = por %p3032_p0, %p3031_p12 }
  0x66   : > { %p3027_p9 = pneg %p3026_p7 }
  0x68   : > { %p3034_p1 = pnand %p3033_p2, %p3027_p9 }
  0x6a   : > { %3037 = shalt.err (!%p3034_p1)
}
  0x6b   : > { %2624 = dma.hbm_to_vmem [thread:$0]  (!%p3242_p11), %s4108_s4, 16, %s3300_s7, [#allocation9]  }
  0x6c   : > { %s3345_s12 = sadd.s32 1, %s3142_s21   ;;  %s30_s15 = sadd.s32 1, %s3138_s20 }
  0x6d   : > { %s27_s29 = ssub.s32 %s3142_s21, %s3345_s12  ;;  %p37_p6 = scmp.ne.s32.totalorder %s3138_s20, %s3134_s19 }
  0x6e   : > { %p28_p13 = scmp.eq.s32.totalorder %s27_s29, 0  ;;  %p38_p10 = scmp.eq.s32.totalorder %s3142_s21, 0 }
  0x6f   : > { %p4118_p4 = scmp.eq.s32.totalorder %s3212_s22, 1  ;;  %p2637_p5 = scmp.lt.s32.totalorder %s3142_s21, 2 }
  0x70   : > { %s3354_s16 = scalar_select %p28_p13, %s3138_s20, %s30_s15  }
  0x71   : > { %p39_p3 = por %p38_p10, %p37_p6  ;;  %p3358_p8 = por %p4118_p4, %p37_p6 }
  0x72   : > { %s225_s23 = sand.u32 1, %s3138_s20   ;;  %s2279_s7 = sshll.u32 %s3142_s21, 10 }
  0x73   : > { %s2191_s30 = sshll.u32 %s225_s23, 6  ;;  %s3368_s10 = scalar_lea.hbm %s4104_s0, %s2279_s7 }
  0x74   : > { %s229_s11 = scalar_lea.vmem [#allocation2], %s2191_s30  ;;  %p3372_p11 = pnand %p2637_p5, %p39_p3 }
  0x75   : > { %s236_s13 = sshll.u32 %s229_s11, 4  ;;  %s3376_s28 = scalar_lea.sflag [#allocation3], %s225_s23  ;;  %s3370_s13 = int_to_ptr.vmem [resolvable:$true] %s236_s13 }
  0x76   : > { %s3038_s6 = scalar_lea.hbm %s3368_s10, 1024  ;;  %p3040_p9 = pneg %p3372_p11 }
  0x77   : > { %p3039_p7 = scmp.ne.s32.totalorder %s3368_s10, %s3038_s6  ;;  %s3043_s15 = scalar_lea.hbm %s4104_s0, 2048 }
  0x78   : > { %p3044_p2 = scmp.lt.u32.totalorder %s3368_s10, %s4104_s0  ;;  %p3045_p1 = scmp.lt.u32.totalorder %s3043_s15, %s3038_s6 }
  0x79   : > { %p3041_p12 = pnand %p3040_p9, %p3039_p7  ;;  %p3047_p6 = scmp.lt.u32.totalorder %s3038_s6, %s3368_s10 }
  0x7a   : > { %p3046_p13 = por %p3045_p1, %p3044_p2 }
  0x7b   : > { %p3042_p0 = pneg %p3041_p12 }
  0x7c   : > { %p3048_p10 = por %p3047_p6, %p3046_p13 }
  0x7e   : > { %p3049_p3 = pnand %p3048_p10, %p3042_p0 }
  0x80   : > { %3052 = shalt.err (!%p3049_p3)
}
  0x81   : > { %s3053_s23 = scalar_lea.vmem %s3370_s13, 1024  ;;  %s3152_s8 = smov [#allocation2]  }
  0x82   : > { %p3054_p4 = scmp.ne.s32.totalorder %s3370_s13, %s3053_s23  ;;  %s3058_s9 = sshll.u32 %s3152_s8, 4  ;;  %s3059_s9 = int_to_ptr.vmem [resolvable:$false] %s3058_s9 }
  0x83   : > { %s3060_s11 = scalar_lea.vmem %s3059_s9, 2048  ;;  %p3061_p12 = scmp.lt.s32.totalorder %s3370_s13, %s3059_s9 }
  0x84   : > { %p3056_p5 = pnand %p3054_p4, %p3040_p9  ;;  %p3062_p2 = scmp.lt.s32.totalorder %s3060_s11, %s3053_s23 }
  0x86   : > { %p3057_p7 = pneg %p3056_p5  ;;  %p3063_p1 = por %p3062_p2, %p3061_p12 }
  0x88   : > { %p3064_p13 = pnand %p3063_p1, %p3057_p7 }
  0x8a   : > { %3067 = shalt.err (!%p3064_p13)
}
  0x8b   : > { %s3153_s6 = smov 128   ;;  %s3154_s14 = smov 8  }
  0x8c   : > { %2628 = dma.hbm_to_vmem [thread:$0]  (!%p3372_p11), %s3368_s10, 1024, %s3370_s13, %s3376_s28, %s3153_s6, %s3153_s6, %s3154_s14  }
  0x8d   : > { %p4121_p9 = scmp.ne.s32.totalorder %s4115_s26, 0 }
  0x8e   : > { %s3407_s29 = sand.u32 (!%p4121_p9), 1, %s3134_s19   ;;  %p4122_p0 = scmp.ne.s32.totalorder (!%p4121_p9), %s4113_s24, 0 }
  0x8f   : > { %248 = sbr.rel (%p4121_p9) target bundleno = 3033 (0xbd9), region = 40  ;;  %s2195_s15 = sshll.u32 (!%p4121_p9), %s3407_s29, 6 }
  0x90   : > { %s251_s30 = scalar_lea.sflag (!%p4121_p9), [#allocation3], %s3407_s29  ;;  %s3411_s7 = scalar_lea.vmem (!%p4121_p9), [#allocation2], %s2195_s15 }
  0x96   : > { %3113 = dma.done.wait (%p4122_p0), %s251_s30, 1024  }
  0x97   : > { %3115 = vsyncadd (%p4122_p0), %s251_s30, 4294966272  ;;  %p4123_p11 = scmp.eq.s32.totalorder %s3212_s22, 0 }
  0x99   : > { %3117 = dma.done.wait (%p4123_p11), [#allocation6], 3120   ;;  %p4124_p6 = pmov %p4123_p11 }
  0x9b   : > { %3119 = vsyncadd (%p4124_p6), [#allocation6], 4294964176  ;;  %p4125_p10 = pmov %p4124_p6 }
  0x9c   : > { %p4126_p3 = pmov %p4124_p6 }
  0x9d   : > { %3121 = dma.done.wait (%p4125_p10), [#allocation9], 1040  }
  0x9e   : > { %3123 = vsyncadd (%p4126_p3), [#allocation9], 4294966256  ;;  %v3155_v0 = vmov 0   ;;  %v2750_v1 = vld [vmem:[#allocation5 + $0x4] ss:$12 sps:$4 sm:$0xff]   ;;  %v299_v10 = vld [vmem:[%s3411_s7 + $0x8] sm:$0xff] }
  0x9f   : > { %502 = vmatprep.mubr.bf16.mxu0 %v3155_v0  ;;  %v2752_v2 = vld [vmem:[#allocation5] ss:$12 sps:$4 sm:$0xff]   ;;  %470 = vmatprep.subr.bf16.mxu0 %v2750_v1  ;;  %v2753_v3 = vld [vmem:[#allocation5 + $0x1c] ss:$12 sps:$4 sm:$0xff]   ;;  %v2755_v4 = vld [vmem:[#allocation5 + $0x18] ss:$12 sps:$4 sm:$0xff]  }
  0xa0   : > { %471 = vmatpush1.bf16.msra.mxu0 %v2752_v2  ;;  %v2756_v5 = vld [vmem:[#allocation5 + $0x34] ss:$12 sps:$4 sm:$0xff]   ;;  %v2758_v6 = vld [vmem:[#allocation5 + $0x30] ss:$12 sps:$4 sm:$0xff]   ;;  %v2759_v7 = vld [vmem:[#allocation5 + $0x4c] ss:$12 sps:$4 sm:$0xff]  }
  0xa1   : > { %472 = vmatprep.subr.bf16.mxu0 %v2753_v3  ;;  %v298_v8 = vld [vmem:[%s3411_s7] sm:$0xff]  ;;  %v2761_v9 = vld [vmem:[#allocation5 + $0x48] ss:$12 sps:$4 sm:$0xff]   ;;  %v2770_v17 = vld [vmem:[#allocation5 + $0x90] ss:$12 sps:$4 sm:$0xff]   ;;  %vm620_vm0 = vcmask 261120  }
  0xa2   : > { %v2762_v11 = vld [vmem:[#allocation5 + $0x64] ss:$12 sps:$4 sm:$0xff]   ;;  %v306_v12 = vpack.c.bf16 %v299_v10, %v298_v8  ;;  %v2764_v13 = vld [vmem:[#allocation5 + $0x60] ss:$12 sps:$4 sm:$0xff]   ;;  %v2765_v14 = vld [vmem:[#allocation5 + $0x7c] ss:$12 sps:$4 sm:$0xff]  }
  0xa3   : > { %v2767_v15 = vld [vmem:[#allocation5 + $0x78] ss:$12 sps:$4 sm:$0xff]   ;;  %v2768_v16 = vld [vmem:[#allocation5 + $0x94] ss:$12 sps:$4 sm:$0xff]   ;;  %v303_v24 = vld [vmem:[%s3411_s7 + $0x28] sm:$0xff]  ;;  %vm710_vm1 = vcmask 523264  }
  0xa4   : > { %473 = vmatpush1.bf16.msra.mxu0 %v2755_v4  ;;  %2416 = vmatprep.mubr.bf16.mxu1 %v306_v12  ;;  %v2771_v18 = vld [vmem:[#allocation5 + $0xac] ss:$12 sps:$4 sm:$0xff]   ;;  %v2773_v19 = vld [vmem:[#allocation5 + $0xa8] ss:$12 sps:$4 sm:$0xff]   ;;  %v302_v23 = vld [vmem:[%s3411_s7 + $0x20] sm:$0xff]  ;;  %s3156_s24 = smov 96  }
  0xa5   : > { %474 = vmatprep.subr.bf16.mxu0 %v2756_v5  ;;  %v300_v20 = vld [vmem:[%s3411_s7 + $0x10] sm:$0xff]  ;;  %v301_v21 = vld [vmem:[%s3411_s7 + $0x18] sm:$0xff]  ;;  %v3434_v25 = vpack.c.bf16 %v303_v24, %v302_v23  ;;  %v2775_v58 = vld [vmem:[#allocation5 + $0x20] ss:$12 sps:$4 sm:$0xff]   ;;  %s3157_s26 = smov 64   ;;  %s3158_s10 = smov 32  }
  0xa6   : > { %v3429_v22 = vpack.c.bf16 %v301_v21, %v300_v20  ;;  %v304_v26 = vld [vmem:[%s3411_s7 + $0x30] sm:$0xff]  ;;  %v305_v27 = vld [vmem:[%s3411_s7 + $0x38] sm:$0xff]  ;;  %v2779_v62 = vld [vmem:[#allocation5 + $0x80] ss:$12 sps:$4 sm:$0xff]   ;;  %vm1862_vm2 = vcmask 785408   ;;  %s2200_s13 = sshll.u32 %s3407_s29, 5 }
  0xa7   : > { %v3439_v28 = vpack.c.bf16 %v305_v27, %v304_v26  ;;  %v2774_v57 = vld [vmem:[#allocation5 + $0x8] ss:$12 sps:$4 sm:$0xff]   ;;  %v2776_v59 = vld [vmem:[#allocation5 + $0x38] ss:$12 sps:$4 sm:$0xff]   ;;  %v2777_v60 = vld [vmem:[#allocation5 + $0x50] ss:$12 sps:$4 sm:$0xff]  }
  0xa8   : > { %475 = vmatpush1.bf16.msra.mxu0 %v2758_v6  ;;  %2400 = vmatprep.subr.bf16.mxu1 %v2774_v57  ;;  %v2778_v61 = vld [vmem:[#allocation5 + $0x68] ss:$12 sps:$4 sm:$0xff]   ;;  %v2780_v63 = vld [vmem:[#allocation5 + $0x98] ss:$12 sps:$4 sm:$0xff]   ;;  %s296_s27 = scalar_lea.vmem [#allocation11], %s2200_s13  ;;  %s2288_s23 = sshll.u32 %s3212_s22, 9 }
  0xa9   : > { %476 = vmatprep.subr.bf16.mxu0 %v2759_v7  ;;  %2401 = vmatpush3.bf16.msra.mxu1 %v2774_v57  ;;  %s2073_s28 = sshll.u32 %s296_s27, 4  ;;  %s4058_s11 = scalar_lea.hbm %s4109_s5, %s2288_s23  ;;  %s4053_s28 = int_to_ptr.vmem [resolvable:$true] %s2073_s28 }
  0xaa   : > { %2402 = vmatprep.subr.bf16.mxu1 %v2775_v58  ;;  %s2060_s6 = scalar_lea.sflag [#allocation4], %s3407_s29  ;;  %s3068_s22 = scalar_lea.vmem %s4053_s28, 512 }
  0xab   : > { %p3069_p4 = scmp.ne.s32.totalorder %s4053_s28, %s3068_s22  ;;  %s3159_s14 = smov [#allocation11]  }
  0xac   : > { %477 = vmatpush1.bf16.msra.mxu0 %v2761_v9  ;;  %s3072_s15 = sshll.u32 %s3159_s14, 4  ;;  %s3073_s15 = int_to_ptr.vmem [resolvable:$false] %s3072_s15 }
  0xad   : > { %478 = vmatprep.subr.bf16.mxu0 %v2762_v11  ;;  %2403 = vmatpush3.bf16.msra.mxu1 %v2775_v58  ;;  %p3070_p5 = pnand %p3069_p4, %p3358_p8  ;;  %s3074_s30 = scalar_lea.vmem %s3073_s15, 1024 }
  0xae   : > { %2404 = vmatprep.subr.bf16.mxu1 %v2776_v59  ;;  %p3075_p12 = scmp.lt.s32.totalorder %s4053_s28, %s3073_s15  ;;  %p3076_p2 = scmp.lt.s32.totalorder %s3074_s30, %s3068_s22 }
  0xaf   : > { %p3071_p7 = pneg %p3070_p5 }
  0xb0   : > { %479 = vmatpush1.bf16.msra.mxu0 %v2764_v13  ;;  %p3077_p1 = por %p3076_p2, %p3075_p12 }
  0xb1   : > { %480 = vmatprep.subr.bf16.mxu0 %v2765_v14  ;;  %2405 = vmatpush3.bf16.msra.mxu1 %v2776_v59 }
  0xb2   : > { %2406 = vmatprep.subr.bf16.mxu1 %v2777_v60  ;;  %p3078_p13 = pnand %p3077_p1, %p3071_p7 }
  0xb4   : > { %481 = vmatpush1.bf16.msra.mxu0 %v2767_v15 }
  0xb5   : > { %482 = vmatprep.subr.bf16.mxu0 %v2768_v16  ;;  %2407 = vmatpush3.bf16.msra.mxu1 %v2777_v60 }
  0xb6   : > { %2408 = vmatprep.subr.bf16.mxu1 %v2778_v61 }
  0xb8   : > { %483 = vmatpush1.bf16.msra.mxu0 %v2770_v17 }
  0xb9   : > { %484 = vmatprep.subr.bf16.mxu0 %v2771_v18  ;;  %2409 = vmatpush3.bf16.msra.mxu1 %v2778_v61 }
  0xba   : > { %2410 = vmatprep.subr.bf16.mxu1 %v2779_v62 }
  0xbc   : > { %485 = vmatpush1.bf16.msra.mxu0 %v2773_v19 }
  0xbd   : > { %2411 = vmatpush3.bf16.msra.mxu1 %v2779_v62 }
  0xbe   : > { %2412 = vmatprep.subr.bf16.mxu1 %v2780_v63 }
  0xbf   : > { %503 = vmatmul.mubr.bf16.vlgmr.msra.gmra.mrb[0].mxu0 %v306_v12 }
  0xc0   : > { %512 = vmatprep.mubr.bf16.mxu0 %v3155_v0 }
  0xc1   : > { %2413 = vmatpush3.bf16.msra.mxu1 %v2780_v63 }
  0xc7   : > { %513 = vmatmul.mubr.bf16.gmra.mrb[4].mxu0 %v3429_v22 }
  0xc8   : > { %522 = vmatprep.mubr.bf16.mxu0 %v3155_v0 }
  0xcf   : > { %523 = vmatmul.mubr.bf16.gmra.mrb[8].mxu0 %v3434_v25 }
  0xd0   : > { %532 = vmatprep.mubr.bf16.mxu0 %v3155_v0  ;;  %v2781_v0 = vld [vmem:[#allocation5 + $0xb0] ss:$12 sps:$4 sm:$0xff]  }
  0xd1   : > { %2414 = vmatprep.subr.bf16.mxu1 %v2781_v0 }
  0xd2   : > { %2415 = vmatpush3.bf16.msra.mxu1 %v2781_v0 }
  0xd5   : > { %2417 = vmatmul.mubr.bf16.vlgmr.msra.gmra.mrb[0].mxu1 %v3429_v22 }
  0xd6   : > { %2420 = vmatprep.mubr.bf16.mxu1 %v3434_v25 }
  0xd7   : > { %533 = vmatmul.mubr.bf16.gmra.mrb[12].mxu0 %v3439_v28 }
  0xdd   : > { %2421 = vmatmul.mubr.bf16.gmra.mrb[4].mxu1 %v3439_v28 }
 0x192   : > { %v504_v29 = vpop.f32.mrb[0].mxu0 }
 0x193   : > { %v506_v30 = vpop.f32.mrb[1].mxu0 }
 0x194   : > { %v508_v31 = vpop.f32.mrb[2].mxu0 }
 0x195   : > { %v3442_v32 = vpack.c.bf16 %v508_v31, %v504_v29  ;;  %v510_v33 = vpop.f32.mrb[3].mxu0 }
 0x196   : > { %v3444_v34 = vpack.c.bf16 %v510_v33, %v506_v30 }
 0x197   : > { %2432 = vmatprep.mubr.msk.bf16.mxu0 %vm620_vm0, %v3442_v32 }
 0x198   : > { %2576 = vmatprep.subr.msk.bf16.mxu0 %vm620_vm0, %v3444_v34  ;;  %v634_v35 = vsel %vm620_vm0, %v3444_v34, 0 }
 0x199   : > { %2425 = vmatpush3.bf16.xpose.msra.mxu0 %v634_v35 }
 0x19a   : > { %v514_v36 = vpop.f32.mrb[4].mxu0 }
 0x19b   : > { %v516_v37 = vpop.f32.mrb[5].mxu0 }
 0x19c   : > { %v518_v38 = vpop.f32.mrb[6].mxu0 }
 0x19d   : > { %v3452_v39 = vpack.c.bf16 %v518_v38, %v514_v36  ;;  %v520_v40 = vpop.f32.mrb[7].mxu0 }
 0x19e   : > { %v3454_v41 = vpack.c.bf16 %v520_v40, %v516_v37 }
 0x1a0   : > { %2577 = vmatprep.subr.msk.bf16.mxu0 %vm620_vm0, %v3454_v41  ;;  %v637_v42 = vsel %vm620_vm0, %v3454_v41, 0 }
 0x1a1   : > { %2427 = vmatpush3.bf16.xpose.msra.mxu0 %v637_v42 }
 0x1a2   : > { %v524_v43 = vpop.f32.mrb[8].mxu0 }
 0x1a3   : > { %v526_v44 = vpop.f32.mrb[9].mxu0 }
 0x1a4   : > { %v528_v45 = vpop.f32.mrb[10].mxu0 }
 0x1a5   : > { %v3460_v46 = vpack.c.bf16 %v528_v45, %v524_v43  ;;  %v530_v47 = vpop.f32.mrb[11].mxu0 }
 0x1a6   : > { %v3462_v48 = vpack.c.bf16 %v530_v47, %v526_v44 }
 0x1a8   : > { %2578 = vmatprep.subr.msk.bf16.mxu0 %vm620_vm0, %v3462_v48  ;;  %v640_v49 = vsel %vm620_vm0, %v3462_v48, 0  ;;  %v2418_v29 = vpop.f32.mrb[0].mxu1 }
 0x1a9   : > { %2429 = vmatpush3.bf16.xpose.msra.mxu0 %v640_v49  ;;  %v577_v30 = vpop.f32.mrb[1].mxu1 }
 0x1aa   : > { %v534_v50 = vpop.f32.mrb[12].mxu0  ;;  %v2419_v31 = vpop.f32.mrb[2].mxu1 }
 0x1ab   : > { %v536_v51 = vpop.f32.mrb[13].mxu0  ;;  %v3509_v33 = vpack.c.bf16 %v2419_v31, %v2418_v29  ;;  %v580_v35 = vpop.f32.mrb[3].mxu1 }
 0x1ac   : > { %v538_v52 = vpop.f32.mrb[14].mxu0  ;;  %v3513_v37 = vpack.c.bf16 %v580_v35, %v577_v30 }
 0x1ad   : > { %v3468_v53 = vpack.c.bf16 %v538_v52, %v534_v50  ;;  %v540_v54 = vpop.f32.mrb[15].mxu0 }
 0x1ae   : > { %v3470_v55 = vpack.c.bf16 %v540_v54, %v536_v51  ;;  %2440 = vmatprep.subr.bf16.mxu1 %v3513_v37 }
 0x1af   : > { %2441 = vmatpush3.bf16.msra.mxu1 %v3513_v37 }
 0x1b0   : > { %2579 = vmatprep.subr.msk.bf16.mxu0 %vm620_vm0, %v3470_v55  ;;  %v643_v56 = vsel %vm620_vm0, %v3470_v55, 0  ;;  %v2422_v43 = vpop.f32.mrb[4].mxu1  ;;  %2442 = vmatprep.subr.bf16.mxu1 %v3509_v33 }
 0x1b1   : > { %2431 = vmatpush3.bf16.xpose.msra.mxu0 %v643_v56  ;;  %v593_v47 = vpop.f32.mrb[5].mxu1 }
 0x1b2   : > { %v2423_v50 = vpop.f32.mrb[6].mxu1 }
 0x1b3   : > { %v3530_v51 = vpack.c.bf16 %v2423_v50, %v2422_v43  ;;  %v596_v52 = vpop.f32.mrb[7].mxu1  ;;  %2443 = vmatpush3.bf16.msra.mxu1 %v3509_v33 }
 0x1b4   : > { %v3533_v54 = vpack.c.bf16 %v596_v52, %v593_v47 }
 0x1b6   : > { %2444 = vmatprep.subr.bf16.mxu1 %v3533_v54 }
 0x1b7   : > { %2445 = vmatpush3.bf16.msra.mxu1 %v3533_v54 }
 0x1b8   : > { %2433 = vmatmul.mubr.msk.bf16.vlgmr.msra.gmra.mrb[16].mxu0 %vm620_vm0, %v3452_v39  ;;  %2446 = vmatprep.subr.bf16.mxu1 %v3530_v51 }
 0x1b9   : > { %2436 = vmatprep.mubr.msk.bf16.mxu0 %vm620_vm0, %v3460_v46 }
 0x1bb   : > { %2447 = vmatpush3.bf16.msra.mxu1 %v3530_v51 }
 0x1c0   : > { %2437 = vmatmul.mubr.msk.bf16.gmra.mrb[20].mxu0 %vm620_vm0, %v3468_v53 }
 0x28b   : > { %v2434_v1 = vpop.f32.mrb[16].mxu0 }
 0x28c   : > { %v679_v2 = vpop.f32.mrb[17].mxu0  ;;  %v717_v3 = vsel %vm710_vm1, %v2434_v1, -inf }
 0x28d   : > { %718 = vmax.xlane.f32.xlu1 %v717_v3  ;;  %v2435_v4 = vpop.f32.mrb[18].mxu0  ;;  %v711_v5 = vsel %vm710_vm1, %v679_v2, -inf }
 0x28e   : > { %712 = vmax.xlane.f32.xlu0 %v711_v5  ;;  %v682_v6 = vpop.f32.mrb[19].mxu0  ;;  %v720_v7 = vsel %vm710_vm1, %v2435_v4, -inf }
 0x28f   : > { %v714_v8 = vsel %vm710_vm1, %v682_v6, -inf }
 0x291   : > { %721 = vmax.xlane.f32.xlu1 %v720_v7 }
 0x292   : > { %715 = vmax.xlane.f32.xlu0 %v714_v8 }
 0x293   : > { %v3489_v9 = vpop.f32.mrb[20].mxu0 }
 0x294   : > { %v3491_v10 = vpop.f32.mrb[21].mxu0  ;;  %v729_v15 = vsel %vm710_vm1, %v3489_v9, -inf }
 0x295   : > { %v3493_v11 = vpop.f32.mrb[22].mxu0  ;;  %v723_v12 = vsel %vm710_vm1, %v3491_v10, -inf }
 0x296   : > { %724 = vmax.xlane.f32.xlu0 %v723_v12  ;;  %v3497_v13 = vpop.f32.mrb[23].mxu0  ;;  %v732_v14 = vsel %vm710_vm1, %v3493_v11, -inf }
 0x297   : > { %733 = vmax.xlane.f32.xlu1 %v732_v14  ;;  %v726_v16 = vsel %vm710_vm1, %v3497_v13, -inf }
 0x29a   : > { %730 = vmax.xlane.f32.xlu0 %v729_v15 }
 0x29b   : > { %727 = vmax.xlane.f32.xlu1 %v726_v16 }
 0x2ac   : > { %898 = vrot.lane.b32.xlu1 %v3454_v41, %s3156_s24 }
 0x2b0   : > { %900 = vrot.lane.b32.xlu1 %v3462_v48, %s3156_s24 }
 0x31a   : > { %v719_v17 = vpop.xlane.xlu1 %718 }
 0x31b   : > { %v737_v18 = vsub.f32 %v2434_v1, %v719_v17  ;;  %v713_v19 = vpop.xlane.xlu0 %712 }
 0x31c   : > { %v735_v20 = vsub.f32 %v679_v2, %v713_v19 }
 0x31d   : > { %v747_v21 = vmul.f32 1.442695, %v737_v18 }
 0x31e   : > { %v743_v22 = vmul.f32 1.442695, %v735_v20  ;;  %v722_v23 = vpop.xlane.xlu1 %721 }
 0x31f   : > { %2790 = vpow2.f32 %v747_v21  ;;  %v738_v24 = vsub.f32 %v2435_v4, %v722_v23  ;;  %v716_v25 = vpop.xlane.xlu0 %715 }
 0x320   : > { %v736_v26 = vsub.f32 %v682_v6, %v716_v25  ;;  %2792 = vpow2.f32 %v743_v22 }
 0x321   : > { %v749_v27 = vmul.f32 1.442695, %v738_v24 }
 0x322   : > { %v745_v28 = vmul.f32 1.442695, %v736_v26 }
 0x323   : > { %2794 = vpow2.f32 %v749_v27  ;;  %v725_v57 = vpop.xlane.xlu0 %724 }
 0x324   : > { %2796 = vpow2.f32 %v745_v28  ;;  %v734_v59 = vpop.xlane.xlu1 %733  ;;  %v739_v61 = vsub.f32 %v3491_v10, %v725_v57 }
 0x325   : > { %v742_v62 = vsub.f32 %v3493_v11, %v734_v59 }
 0x326   : > { %v751_v1 = vmul.f32 1.442695, %v739_v61 }
 0x327   : > { %v731_v58 = vpop.xlane.xlu0 %730  ;;  %v757_v2 = vmul.f32 1.442695, %v742_v62 }
 0x328   : > { %v741_v60 = vsub.f32 %v3489_v9, %v731_v58  ;;  %v728_v0 = vpop.xlane.xlu1 %727 }
 0x329   : > { %v3511_v36 = vpop.eup %2790  ;;  %v740_v3 = vsub.f32 %v3497_v13, %v728_v0 }
 0x32a   : > { %v765_v38 = vsel %vm710_vm1, %v3511_v36, 0.0  ;;  %v3517_v40 = vpop.eup %2792  ;;  %v755_v63 = vmul.f32 1.442695, %v741_v60 }
 0x32b   : > { %766 = vadd.xlane.f32.xlu0 %v765_v38  ;;  %v759_v44 = vsel %vm710_vm1, %v3517_v40, 0.0  ;;  %v753_v4 = vmul.f32 1.442695, %v740_v3 }
 0x32c   : > { %2798 = vpow2.f32 %v755_v63  ;;  %v899_v13 = vpop.permute.xlu1 %898 }
 0x32d   : > { %v3521_v42 = vpop.eup %2794  ;;  %2800 = vpow2.f32 %v751_v1  ;;  %v920_v38 = vsel %vm620_vm0, %v899_v13, 0 }
 0x32e   : > { %v768_v45 = vsel %vm710_vm1, %v3521_v42, 0.0  ;;  %v3528_v49 = vpop.eup %2796  ;;  %2802 = vpow2.f32 %v757_v2 }
 0x32f   : > { %760 = vadd.xlane.f32.xlu0 %v759_v44  ;;  %769 = vadd.xlane.f32.xlu1 %v768_v45  ;;  %v762_v56 = vsel %vm710_vm1, %v3528_v49, 0.0  ;;  %2804 = vpow2.f32 %v753_v4 }
 0x330   : > { %v901_v14 = vpop.permute.xlu1 %900 }
 0x333   : > { %763 = vadd.xlane.f32.xlu1 %v762_v56 }
 0x336   : > { %v3549_v5 = vpop.eup %2798 }
 0x337   : > { %v3551_v6 = vpop.eup %2800  ;;  %v777_v7 = vsel %vm710_vm1, %v3549_v5, 0.0 }
 0x338   : > { %v3555_v8 = vpop.eup %2802  ;;  %v771_v9 = vsel %vm710_vm1, %v3551_v6, 0.0 }
 0x339   : > { %v780_v10 = vsel %vm710_vm1, %v3555_v8, 0.0  ;;  %v3561_v11 = vpop.eup %2804 }
 0x33a   : > { %v774_v12 = vsel %vm710_vm1, %v3561_v11, 0.0 }
 0x344   : > { %1186 = vrot.lane.b32.xlu1 %v3444_v34, %s3157_s26 }
 0x345   : > { %896 = vrot.lane.b32.xlu0 %v3444_v34, %s3156_s24 }
 0x364   : > { %778 = vadd.xlane.f32.xlu0 %v777_v7 }
 0x368   : > { %772 = vadd.xlane.f32.xlu0 %v771_v9  ;;  %781 = vadd.xlane.f32.xlu1 %v780_v10 }
 0x36c   : > { %775 = vadd.xlane.f32.xlu1 %v774_v12 }
 0x37d   : > { %1188 = vrot.lane.b32.xlu1 %v3454_v41, %s3157_s26 }
 0x37e   : > { %902 = vrot.lane.b32.xlu0 %v3470_v55, %s3156_s24 }
 0x381   : > { %886 = vrot.lane.b32.xlu1 %v3452_v39, %s3156_s24 }
 0x382   : > { %884 = vrot.lane.b32.xlu0 %v3442_v32, %s3156_s24 }
 0x385   : > { %888 = vrot.lane.b32.xlu1 %v3460_v46, %s3156_s24 }
 0x386   : > { %1190 = vrot.lane.b32.xlu0 %v3462_v48, %s3157_s26 }
 0x389   : > { %1192 = vrot.lane.b32.xlu1 %v3470_v55, %s3157_s26 }
 0x38a   : > { %890 = vrot.lane.b32.xlu0 %v3468_v53, %s3156_s24 }
 0x38d   : > { %1180 = vrot.lane.b32.xlu1 %v3452_v39, %s3157_s26 }
 0x38e   : > { %1178 = vrot.lane.b32.xlu0 %v3442_v32, %s3157_s26 }
 0x391   : > { %1184 = vrot.lane.b32.xlu1 %v3468_v53, %s3157_s26 }
 0x392   : > { %1182 = vrot.lane.b32.xlu0 %v3460_v46, %s3157_s26 }
 0x3b8   : > { %v767_v15 = vpop.xlane.xlu0 %766 }
 0x3bc   : > { %v761_v16 = vpop.xlane.xlu0 %760  ;;  %v770_v17 = vpop.xlane.xlu1 %769 }
 0x3bd   : > { %2806 = vrcp.f32 %v770_v17 }
 0x3be   : > { %2808 = vrcp.f32 %v761_v16 }
 0x3bf   : > { %2810 = vrcp.f32 %v767_v15 }
 0x3c0   : > { %v897_v18 = vpop.permute.xlu0 %896  ;;  %v764_v19 = vpop.xlane.xlu1 %763 }
 0x3c1   : > { %2812 = vrcp.f32 %v764_v19  ;;  %2580 = vmatprep.subr.msk.bf16.mxu1 %vm620_vm0, %v897_v18  ;;  %v917_v35 = vsel %vm620_vm0, %v897_v18, 0 }
 0x3c4   : > { %v1187_v20 = vpop.permute.xlu1 %1186 }
 0x3c5   : > { %v1207_v21 = vsel %vm620_vm0, %v1187_v20, 0  ;;  %2584 = vmatprep.subr.msk.bf16.mxu0 %vm620_vm0, %v1187_v20 }
 0x3c6   : > { %2489 = vmatpush3.bf16.xpose.msra.mxu0 %v1207_v21 }
 0x3c7   : > { %v2807_v22 = vpop.eup %2806 }
 0x3c8   : > { %v2809_v23 = vpop.eup %2808  ;;  %v794_v26 = vmul.f32 %v2807_v22, %v3521_v42 }
 0x3c9   : > { %v2811_v24 = vpop.eup %2810  ;;  %v791_v27 = vmul.f32 %v2809_v23, %v3517_v40  ;;  %v923_v40 = vsel %vm620_vm0, %v901_v14, 0 }
 0x3ca   : > { %v793_v29 = vmul.f32 %v2811_v24, %v3511_v36 }
 0x3cb   : > { %v2813_v25 = vpop.eup %2812 }
 0x3cc   : > { %v792_v28 = vmul.f32 %v2813_v25, %v3528_v49  ;;  %v800_v31 = vpack.c.bf16 %v794_v26, %v793_v29 }
 0x3ce   : > { %v799_v30 = vpack.c.bf16 %v792_v28, %v791_v27 }
 0x3d0   : > { %2448 = vmatprep.mubr.msk.bf16.mxu1 %vm710_vm1, %v799_v30 }
 0x3d1   : > { %2449 = vmatmul.mubr.msk.bf16.vlgmr.msra.gmra.mrb[8].mxu1 %vm710_vm1, %v800_v31 }
 0x3d2   : > { %2457 = vmatpush3.bf16.xpose.msra.mxu1 %v917_v35 }
 0x3d3   : > { %2581 = vmatprep.subr.msk.bf16.mxu1 %vm620_vm0, %v899_v13 }
 0x3da   : > { %2459 = vmatpush3.bf16.xpose.msra.mxu1 %v920_v38 }
 0x3db   : > { %2582 = vmatprep.subr.msk.bf16.mxu1 %vm620_vm0, %v901_v14 }
 0x3e2   : > { %2461 = vmatpush3.bf16.xpose.msra.mxu1 %v923_v40 }
 0x3f1   : > { %v779_v36 = vpop.xlane.xlu0 %778 }
 0x3f5   : > { %v773_v42 = vpop.xlane.xlu0 %772  ;;  %v782_v43 = vpop.xlane.xlu1 %781 }
 0x3f6   : > { %2814 = vrcp.f32 %v782_v43 }
 0x3f7   : > { %2816 = vrcp.f32 %v773_v42 }
 0x3f8   : > { %2818 = vrcp.f32 %v779_v36 }
 0x3f9   : > { %v903_v44 = vpop.permute.xlu0 %902  ;;  %v776_v45 = vpop.xlane.xlu1 %775 }
 0x3fa   : > { %v926_v47 = vsel %vm620_vm0, %v903_v44, 0  ;;  %2820 = vrcp.f32 %v776_v45  ;;  %2583 = vmatprep.subr.msk.bf16.mxu1 %vm620_vm0, %v903_v44 }
 0x3fb   : > { %2463 = vmatpush3.bf16.xpose.msra.mxu1 %v926_v47 }
 0x3fd   : > { %v885_v49 = vpop.permute.xlu0 %884  ;;  %v1189_v50 = vpop.permute.xlu1 %1188 }
 0x3fe   : > { %v1210_v52 = vsel %vm620_vm0, %v1189_v50, 0  ;;  %2585 = vmatprep.subr.msk.bf16.mxu0 %vm620_vm0, %v1189_v50 }
 0x3ff   : > { %2491 = vmatpush3.bf16.xpose.msra.mxu0 %v1210_v52 }
 0x400   : > { %v2815_v56 = vpop.eup %2814 }
 0x401   : > { %v1191_v57 = vpop.permute.xlu0 %1190  ;;  %v887_v58 = vpop.permute.xlu1 %886  ;;  %v798_v62 = vmul.f32 %v2815_v56, %v3555_v8 }
 0x402   : > { %v2817_v59 = vpop.eup %2816  ;;  %2586 = vmatprep.subr.msk.bf16.mxu0 %vm620_vm0, %v1191_v57  ;;  %v1213_v3 = vsel %vm620_vm0, %v1191_v57, 0 }
 0x403   : > { %v2819_v60 = vpop.eup %2818  ;;  %v795_v1 = vmul.f32 %v2817_v59, %v3551_v6 }
 0x404   : > { %v2821_v61 = vpop.eup %2820  ;;  %v797_v4 = vmul.f32 %v2819_v60, %v3549_v5 }
 0x405   : > { %v891_v63 = vpop.permute.xlu0 %890  ;;  %v889_v0 = vpop.permute.xlu1 %888  ;;  %v796_v2 = vmul.f32 %v2821_v61, %v3561_v11 }
 0x406   : > { %v802_v9 = vpack.c.bf16 %v798_v62, %v797_v4 }
 0x407   : > { %2493 = vmatpush3.bf16.xpose.msra.mxu0 %v1213_v3  ;;  %v801_v7 = vpack.c.bf16 %v796_v2, %v795_v1 }
 0x409   : > { %v1179_v10 = vpop.permute.xlu0 %1178  ;;  %2452 = vmatprep.mubr.msk.bf16.mxu1 %vm710_vm1, %v801_v7  ;;  %v1193_v12 = vpop.permute.xlu1 %1192 }
 0x40a   : > { %2453 = vmatmul.mubr.msk.bf16.gmra.mrb[12].mxu1 %vm710_vm1, %v802_v9  ;;  %2587 = vmatprep.subr.msk.bf16.mxu0 %vm620_vm0, %v1193_v12  ;;  %v1216_v6 = vsel %vm620_vm0, %v1193_v12, 0 }
 0x40b   : > { %2496 = vmatprep.mubr.msk.bf16.mxu0 %vm620_vm0, %v1179_v10  ;;  %2464 = vmatprep.mubr.msk.bf16.mxu1 %vm620_vm0, %v885_v49 }
 0x40d   : > { %v1181_v5 = vpop.permute.xlu1 %1180  ;;  %v1183_v8 = vpop.permute.xlu0 %1182 }
 0x40f   : > { %2495 = vmatpush3.bf16.xpose.msra.mxu0 %v1216_v6 }
 0x411   : > { %v1185_v11 = vpop.permute.xlu1 %1184 }
 0x412   : > { %2465 = vmatmul.mubr.msk.bf16.vlgmr.msra.gmra.mrb[16].mxu1 %vm620_vm0, %v887_v58 }
 0x413   : > { %2468 = vmatprep.mubr.msk.bf16.mxu1 %vm620_vm0, %v889_v0 }
 0x416   : > { %2497 = vmatmul.mubr.msk.bf16.vlgmr.msra.gmra.mrb[24].mxu0 %vm620_vm0, %v1181_v5 }
 0x417   : > { %2500 = vmatprep.mubr.msk.bf16.mxu0 %vm620_vm0, %v1183_v8 }
 0x41a   : > { %2469 = vmatmul.mubr.msk.bf16.gmra.mrb[20].mxu1 %vm620_vm0, %v891_v63 }
 0x41e   : > { %2501 = vmatmul.mubr.msk.bf16.gmra.mrb[28].mxu0 %vm620_vm0, %v1185_v11 }
 0x4a4   : > { %v3625_v13 = vpop.f32.mrb[8].mxu1 }
 0x4a5   : > { %v3627_v14 = vpop.f32.mrb[9].mxu1 }
 0x4a6   : > { %v3629_v15 = vpop.f32.mrb[10].mxu1 }
 0x4a7   : > { %v3631_v16 = vpop.f32.mrb[11].mxu1 }
 0x4dd   : > { %v3633_v17 = vpop.f32.mrb[12].mxu1 }
 0x4de   : > { %v3635_v18 = vpop.f32.mrb[13].mxu1 }
 0x4df   : > { %v3637_v19 = vpop.f32.mrb[14].mxu1 }
 0x4e0   : > { %v3639_v20 = vpop.f32.mrb[15].mxu1 }
 0x4e5   : > { %v3641_v21 = vpop.f32.mrb[16].mxu1 }
 0x4e6   : > { %v3643_v22 = vpop.f32.mrb[17].mxu1  ;;  %v999_v57 = vsel %vm710_vm1, %v3641_v21, -inf }
 0x4e7   : > { %v3645_v23 = vpop.f32.mrb[18].mxu1  ;;  %v993_v59 = vsel %vm710_vm1, %v3643_v22, -inf }
 0x4e8   : > { %v3647_v24 = vpop.f32.mrb[19].mxu1  ;;  %v1002_v60 = vsel %vm710_vm1, %v3645_v23, -inf }
 0x4e9   : > { %v2498_v25 = vpop.f32.mrb[24].mxu0  ;;  %v996_v58 = vsel %vm710_vm1, %v3647_v24, -inf }
 0x4ea   : > { %v1252_v26 = vpop.f32.mrb[25].mxu0  ;;  %v1289_v40 = vsel %vm710_vm1, %v2498_v25, -inf }
 0x4eb   : > { %v2499_v27 = vpop.f32.mrb[26].mxu0  ;;  %v1283_v28 = vsel %vm710_vm1, %v1252_v26, -inf }
 0x4ec   : > { %1284 = vmax.xlane.f32.xlu0 %v1283_v28  ;;  %v1255_v29 = vpop.f32.mrb[27].mxu0  ;;  %v1292_v43 = vsel %vm710_vm1, %v2499_v27, -inf }
 0x4ed   : > { %v3650_v30 = vpop.f32.mrb[20].mxu1  ;;  %v1286_v31 = vsel %vm710_vm1, %v1255_v29, -inf }
 0x4ee   : > { %v3653_v35 = vpop.f32.mrb[21].mxu1  ;;  %1287 = vmax.xlane.f32.xlu1 %v1286_v31  ;;  %v1011_v61 = vsel %vm710_vm1, %v3650_v30, -inf }
 0x4ef   : > { %v3655_v38 = vpop.f32.mrb[22].mxu1  ;;  %v1005_v62 = vsel %vm710_vm1, %v3653_v35, -inf }
 0x4f0   : > { %v3658_v36 = vpop.f32.mrb[23].mxu1  ;;  %1290 = vmax.xlane.f32.xlu0 %v1289_v40 }
 0x4f1   : > { %v3660_v42 = vpop.f32.mrb[28].mxu0 }
 0x4f2   : > { %1293 = vmax.xlane.f32.xlu1 %v1292_v43  ;;  %v3663_v44 = vpop.f32.mrb[29].mxu0  ;;  %v1301_v52 = vsel %vm710_vm1, %v3660_v42, -inf }
 0x4f3   : > { %v3665_v45 = vpop.f32.mrb[30].mxu0  ;;  %v1295_v47 = vsel %vm710_vm1, %v3663_v44, -inf }
 0x4f4   : > { %1296 = vmax.xlane.f32.xlu0 %v1295_v47  ;;  %v3669_v49 = vpop.f32.mrb[31].mxu0  ;;  %v1304_v56 = vsel %vm710_vm1, %v3665_v45, -inf }
 0x4f5   : > { %v1298_v50 = vsel %vm710_vm1, %v3669_v49, -inf }
 0x4f6   : > { %1299 = vmax.xlane.f32.xlu1 %v1298_v50 }
 0x4f8   : > { %1302 = vmax.xlane.f32.xlu0 %v1301_v52 }
 0x4fa   : > { %1305 = vmax.xlane.f32.xlu1 %v1304_v56 }
 0x50b   : > { %1091 = vrot.lane.b32.xlu1 %v3509_v33, %s3156_s24 }
 0x50e   : > { %1089 = vrot.lane.b32.xlu0 %v3513_v37, %s3156_s24 }
 0x52d   : > { %1000 = vmax.xlane.f32.xlu0 %v999_v57 }
 0x52f   : > { %997 = vmax.xlane.f32.xlu1 %v996_v58 }
 0x531   : > { %994 = vmax.xlane.f32.xlu0 %v993_v59 }
 0x535   : > { %1003 = vmax.xlane.f32.xlu0 %v1002_v60 }
 0x539   : > { %1012 = vmax.xlane.f32.xlu0 %v1011_v61 }
 0x53d   : > { %1006 = vmax.xlane.f32.xlu0 %v1005_v62 }
 0x553   : > { %1093 = vrot.lane.b32.xlu0 %v3533_v54, %s3156_s24 }
 0x579   : > { %v1285_v63 = vpop.xlane.xlu0 %1284 }
 0x57a   : > { %v1307_v0 = vsub.f32 %v1252_v26, %v1285_v63 }
 0x57b   : > { %v1288_v1 = vpop.xlane.xlu1 %1287 }
 0x57c   : > { %v1315_v2 = vmul.f32 1.442695, %v1307_v0  ;;  %v1308_v3 = vsub.f32 %v1255_v29, %v1288_v1  ;;  %v1014_v1 = vsel %vm710_vm1, %v3655_v38, -inf }
 0x57d   : > { %v1291_v4 = vpop.xlane.xlu0 %1290 }
 0x57e   : > { %2822 = vpow2.f32 %v1315_v2  ;;  %v1317_v7 = vmul.f32 1.442695, %v1308_v3  ;;  %v1309_v9 = vsub.f32 %v2498_v25, %v1291_v4 }
 0x57f   : > { %v1294_v10 = vpop.xlane.xlu1 %1293 }
 0x580   : > { %2824 = vpow2.f32 %v1317_v7  ;;  %v1319_v12 = vmul.f32 1.442695, %v1309_v9  ;;  %v1310_v6 = vsub.f32 %v2499_v27, %v1294_v10  ;;  %v1008_v7 = vsel %vm710_vm1, %v3658_v36, -inf }
 0x581   : > { %v3695_v5 = vpop.xlane.xlu0 %1296 }
 0x582   : > { %2826 = vpow2.f32 %v1319_v12  ;;  %v1321_v8 = vmul.f32 1.442695, %v1310_v6  ;;  %v1311_v11 = vsub.f32 %v3663_v44, %v3695_v5 }
 0x583   : > { %v3699_v28 = vpop.xlane.xlu1 %1299 }
 0x584   : > { %v1312_v26 = vsub.f32 %v3669_v49, %v3699_v28  ;;  %2828 = vpow2.f32 %v1321_v8 }
 0x585   : > { %v3703_v29 = vpop.xlane.xlu0 %1302 }
 0x586   : > { %v1313_v25 = vsub.f32 %v3660_v42, %v3703_v29 }
 0x587   : > { %v3707_v31 = vpop.xlane.xlu1 %1305 }
 0x588   : > { %v3709_v27 = vpop.eup %2822  ;;  %v1314_v40 = vsub.f32 %v3665_v45, %v3707_v31 }
 0x589   : > { %v1090_v43 = vpop.permute.xlu0 %1089  ;;  %v1331_v47 = vsel %vm710_vm1, %v3709_v27, 0.0 }
 0x58a   : > { %v3715_v50 = vpop.eup %2824  ;;  %2472 = vmatprep.subr.bf16.mxu1 %v1090_v43  ;;  %1332 = vadd.xlane.f32.xlu1 %v1331_v47  ;;  %v1329_v44 = vmul.f32 1.442695, %v1314_v40 }
 0x58b   : > { %2473 = vmatpush3.bf16.msra.mxu1 %v1090_v43  ;;  %v1092_v52 = vpop.permute.xlu1 %1091  ;;  %v1334_v56 = vsel %vm710_vm1, %v3715_v50, 0.0 }
 0x58c   : > { %v3719_v57 = vpop.eup %2826  ;;  %1335 = vadd.xlane.f32.xlu0 %v1334_v56  ;;  %2474 = vmatprep.subr.bf16.mxu1 %v1092_v52 }
 0x58d   : > { %v1337_v58 = vsel %vm710_vm1, %v3719_v57, 0.0 }
 0x58e   : > { %v3723_v59 = vpop.eup %2828 }
 0x58f   : > { %2475 = vmatpush3.bf16.msra.mxu1 %v1092_v52  ;;  %v1340_v60 = vsel %vm710_vm1, %v3723_v59, 0.0 }
 0x590   : > { %1338 = vadd.xlane.f32.xlu0 %v1337_v58 }
 0x594   : > { %1341 = vadd.xlane.f32.xlu0 %v1340_v60 }
 0x59b   : > { %1095 = vrot.lane.b32.xlu1 %v3530_v51, %s3156_s24 }
 0x5ba   : > { %v1001_v61 = vpop.xlane.xlu0 %1000 }
 0x5bb   : > { %v1019_v62 = vsub.f32 %v3641_v21, %v1001_v61 }
 0x5bc   : > { %v998_v47 = vpop.xlane.xlu1 %997 }
 0x5bd   : > { %v1029_v63 = vmul.f32 1.442695, %v1019_v62  ;;  %v1018_v52 = vsub.f32 %v3647_v24, %v998_v47  ;;  %v1327_v24 = vmul.f32 1.442695, %v1313_v25 }
 0x5be   : > { %v995_v0 = vpop.xlane.xlu0 %994 }
 0x5bf   : > { %2830 = vpow2.f32 %v1029_v63  ;;  %v1017_v2 = vsub.f32 %v3643_v22, %v995_v0  ;;  %1015 = vmax.xlane.f32.xlu1 %v1014_v1  ;;  %v1027_v60 = vmul.f32 1.442695, %v1018_v52  ;;  %v1323_v0 = vmul.f32 1.442695, %v1311_v11 }
 0x5c1   : > { %v1025_v3 = vmul.f32 1.442695, %v1017_v2 }
 0x5c2   : > { %v1004_v4 = vpop.xlane.xlu0 %1003 }
 0x5c3   : > { %2832 = vpow2.f32 %v1025_v3  ;;  %1009 = vmax.xlane.f32.xlu1 %v1008_v7  ;;  %v1020_v43 = vsub.f32 %v3645_v23, %v1004_v4 }
 0x5c5   : > { %v1031_v56 = vmul.f32 1.442695, %v1020_v43 }
 0x5c6   : > { %v1013_v9 = vpop.xlane.xlu0 %1012 }
 0x5c7   : > { %v1023_v58 = vsub.f32 %v3650_v30, %v1013_v9  ;;  %2834 = vpow2.f32 %v1031_v56 }
 0x5c8   : > { %2836 = vpow2.f32 %v1027_v60 }
 0x5c9   : > { %v3735_v10 = vpop.eup %2830  ;;  %v1037_v62 = vmul.f32 1.442695, %v1023_v58 }
 0x5ca   : > { %v1007_v21 = vpop.xlane.xlu0 %1006  ;;  %v1047_v12 = vsel %vm710_vm1, %v3735_v10, 0.0 }
 0x5cb   : > { %1048 = vadd.xlane.f32.xlu0 %v1047_v12  ;;  %v1021_v61 = vsub.f32 %v3653_v35, %v1007_v21  ;;  %2838 = vpow2.f32 %v1037_v62 }
 0x5cd   : > { %v3739_v6 = vpop.eup %2832  ;;  %v1033_v63 = vmul.f32 1.442695, %v1021_v61 }
 0x5ce   : > { %v1094_v8 = vpop.permute.xlu0 %1093  ;;  %v1041_v22 = vsel %vm710_vm1, %v3739_v6, 0.0 }
 0x5cf   : > { %1042 = vadd.xlane.f32.xlu0 %v1041_v22  ;;  %2476 = vmatprep.subr.bf16.mxu1 %v1094_v8  ;;  %2840 = vpow2.f32 %v1033_v63 }
 0x5d0   : > { %2477 = vmatpush3.bf16.msra.mxu1 %v1094_v8  ;;  %2842 = vpow2.f32 %v1323_v0 }
 0x5d1   : > { %v3756_v23 = vpop.eup %2834  ;;  %2844 = vpow2.f32 %v1327_v24 }
 0x5d2   : > { %v1050_v30 = vsel %vm710_vm1, %v3756_v23, 0.0  ;;  %v3763_v35 = vpop.eup %2836  ;;  %2846 = vpow2.f32 %v1329_v44 }
 0x5d3   : > { %v1044_v11 = vsel %vm710_vm1, %v3763_v35, 0.0 }
 0x5d4   : > { %1377 = vrot.lane.b32.xlu1 %v3509_v33, %s3157_s26 }
 0x5d5   : > { %v3768_v5 = vpop.eup %2838 }
 0x5d6   : > { %v1059_v29 = vsel %vm710_vm1, %v3768_v5, 0.0 }
 0x5d8   : > { %1379 = vrot.lane.b32.xlu1 %v3533_v54, %s3157_s26 }
 0x5d9   : > { %v3772_v1 = vpop.eup %2840 }
 0x5da   : > { %v1053_v42 = vsel %vm710_vm1, %v3772_v1, 0.0  ;;  %v3778_v25 = vpop.eup %2842 }
 0x5db   : > { %v1343_v45 = vsel %vm710_vm1, %v3778_v25, 0.0  ;;  %v3782_v31 = vpop.eup %2844 }
 0x5dc   : > { %v1349_v40 = vsel %vm710_vm1, %v3782_v31, 0.0  ;;  %v3786_v2 = vpop.eup %2846 }
 0x5dd   : > { %v1352_v3 = vsel %vm710_vm1, %v3786_v2, 0.0 }
 0x5e5   : > { %1375 = vrot.lane.b32.xlu0 %v3513_v37, %s3157_s26 }
 0x5fc   : > { %1051 = vadd.xlane.f32.xlu1 %v1050_v30 }
 0x600   : > { %1045 = vadd.xlane.f32.xlu1 %v1044_v11  ;;  %v1325_v11 = vmul.f32 1.442695, %v1312_v26 }
 0x604   : > { %1054 = vadd.xlane.f32.xlu0 %v1053_v42  ;;  %1060 = vadd.xlane.f32.xlu1 %v1059_v29 }
 0x608   : > { %1344 = vadd.xlane.f32.xlu0 %v1343_v45 }
 0x60c   : > { %1350 = vadd.xlane.f32.xlu0 %v1349_v40 }
 0x610   : > { %1353 = vadd.xlane.f32.xlu0 %v1352_v3 }
 0x617   : > { %v1333_v4 = vpop.xlane.xlu1 %1332 }
 0x618   : > { %2848 = vrcp.f32 %v1333_v4 }
 0x619   : > { %v1336_v7 = vpop.xlane.xlu0 %1335 }
 0x61a   : > { %2850 = vrcp.f32 %v1336_v7 }
 0x61b   : > { %v1096_v9 = vpop.permute.xlu1 %1095 }
 0x61c   : > { %2478 = vmatprep.subr.bf16.mxu1 %v1096_v9 }
 0x61d   : > { %v1339_v21 = vpop.xlane.xlu0 %1338  ;;  %2479 = vmatpush3.bf16.msra.mxu1 %v1096_v9 }
 0x61e   : > { %2852 = vrcp.f32 %v1339_v21 }
 0x621   : > { %v1342_v12 = vpop.xlane.xlu0 %1341 }
 0x622   : > { %v2849_v8 = vpop.eup %2848  ;;  %2854 = vrcp.f32 %v1342_v12 }
 0x623   : > { %v3791_v43 = vmul.f32 %v2849_v8, %v3709_v27 }
 0x624   : > { %v2851_v22 = vpop.eup %2850 }
 0x625   : > { %v3794_v47 = vmul.f32 %v2851_v22, %v3715_v50 }
 0x626   : > { %1472 = vrot.lane.b32.xlu0 %v3444_v34, %s3158_s10 }
 0x627   : > { %v1371_v52 = vpack.c.bf16 %v3794_v47, %v3791_v43 }
 0x628   : > { %v2853_v56 = vpop.eup %2852 }
 0x629   : > { %v3803_v60 = vmul.f32 %v2853_v56, %v3719_v57 }
 0x62a   : > { %1464 = vrot.lane.b32.xlu0 %v3442_v32, %s3158_s10 }
 0x62c   : > { %v2855_v58 = vpop.eup %2854 }
 0x62d   : > { %v3806_v27 = vmul.f32 %v2855_v58, %v3723_v59 }
 0x62e   : > { %1468 = vrot.lane.b32.xlu0 %v3460_v46, %s3158_s10 }
 0x62f   : > { %v1372_v34 = vpack.c.bf16 %v3806_v27, %v3803_v60 }
 0x64c   : > { %v1016_v50 = vpop.xlane.xlu1 %1015 }
 0x64d   : > { %v1024_v61 = vsub.f32 %v3655_v38, %v1016_v50 }
 0x64f   : > { %v1039_v62 = vmul.f32 1.442695, %v1024_v61 }
 0x650   : > { %v1010_v63 = vpop.xlane.xlu1 %1009 }
 0x651   : > { %2856 = vpow2.f32 %v1039_v62  ;;  %v1022_v32 = vsub.f32 %v3658_v36, %v1010_v63 }
 0x653   : > { %v1035_v0 = vmul.f32 1.442695, %v1022_v32 }
 0x654   : > { %v1378_v36 = vpop.permute.xlu1 %1377 }
 0x655   : > { %2858 = vpow2.f32 %v1035_v0 }
 0x656   : > { %2860 = vpow2.f32 %v1325_v11 }
 0x658   : > { %v1049_v57 = vpop.xlane.xlu0 %1048  ;;  %v1380_v42 = vpop.permute.xlu1 %1379 }
 0x65b   : > { %v3814_v24 = vpop.eup %2856 }
 0x65c   : > { %v1043_v59 = vpop.xlane.xlu0 %1042  ;;  %v1062_v46 = vsel %vm710_vm1, %v3814_v24, 0.0 }
 0x65d   : > { %1063 = vadd.xlane.f32.xlu1 %v1062_v46 }
 0x65f   : > { %v3818_v30 = vpop.eup %2858 }
 0x660   : > { %v1376_v44 = vpop.permute.xlu0 %1375  ;;  %v1056_v38 = vsel %vm710_vm1, %v3818_v30, 0.0  ;;  %v3827_v40 = vpop.eup %2860 }
 0x661   : > { %2504 = vmatprep.subr.bf16.mxu1 %v1376_v44  ;;  %1057 = vadd.xlane.f32.xlu1 %v1056_v38  ;;  %v1346_v4 = vsel %vm710_vm1, %v3827_v40, 0.0 }
 0x672   : > { %1381 = vrot.lane.b32.xlu1 %v3530_v51, %s3157_s26 }
 0x689   : > { %v1052_v29 = vpop.xlane.xlu1 %1051 }
 0x68a   : > { %2862 = vrcp.f32 %v1052_v29 }
 0x68b   : > { %2864 = vrcp.f32 %v1043_v59 }
 0x68c   : > { %2866 = vrcp.f32 %v1049_v57 }
 0x68d   : > { %v1046_v45 = vpop.xlane.xlu1 %1045 }
 0x68e   : > { %2868 = vrcp.f32 %v1046_v45 }
 0x694   : > { %v2863_v3 = vpop.eup %2862 }
 0x695   : > { %v2865_v7 = vpop.eup %2864  ;;  %v1076_v49 = vmul.f32 %v2863_v3, %v3756_v23  ;;  %v1061_v23 = vpop.xlane.xlu1 %1060 }
 0x696   : > { %1347 = vadd.xlane.f32.xlu1 %v1346_v4  ;;  %v2867_v9 = vpop.eup %2866  ;;  %v1073_v28 = vmul.f32 %v2865_v7, %v3739_v6 }
 0x697   : > { %v1075_v12 = vmul.f32 %v2867_v9, %v3735_v10  ;;  %v1055_v10 = vpop.xlane.xlu0 %1054 }
 0x698   : > { %v2869_v21 = vpop.eup %2868 }
 0x699   : > { %v1074_v26 = vmul.f32 %v2869_v21, %v3763_v35  ;;  %v1082_v22 = vpack.c.bf16 %v1076_v49, %v1075_v12 }
 0x69b   : > { %v1081_v8 = vpack.c.bf16 %v1074_v26, %v1073_v28  ;;  %v1345_v6 = vpop.xlane.xlu0 %1344 }
 0x69d   : > { %2480 = vmatprep.mubr.msk.bf16.mxu1 %vm710_vm1, %v1081_v8 }
 0x69e   : > { %2481 = vmatmul.mubr.msk.bf16.vlgmr.msra.gmra.mrb[24].mxu1 %vm710_vm1, %v1082_v22 }
 0x69f   : > { %2505 = vmatpush3.bf16.msra.mxu1 %v1376_v44  ;;  %v1351_v35 = vpop.xlane.xlu0 %1350 }
 0x6a0   : > { %2506 = vmatprep.subr.bf16.mxu1 %v1378_v36 }
 0x6a3   : > { %2507 = vmatpush3.bf16.msra.mxu1 %v1378_v36 }
 0x6a4   : > { %2508 = vmatprep.subr.bf16.mxu1 %v1380_v42 }
 0x6a7   : > { %2509 = vmatpush3.bf16.msra.mxu1 %v1380_v42  ;;  %1474 = vrot.lane.b32.xlu1 %v3454_v41, %s3158_s10  ;;  %v1354_v41 = vpop.xlane.xlu0 %1353 }
 0x6ab   : > { %1476 = vrot.lane.b32.xlu1 %v3462_v48, %s3158_s10 }
 0x6af   : > { %1478 = vrot.lane.b32.xlu1 %v3470_v55, %s3158_s10  ;;  %v1473_v55 = vpop.permute.xlu0 %1472 }
 0x6b0   : > { %v1493_v46 = vsel %vm620_vm0, %v1473_v55, 0 }
 0x6b3   : > { %1466 = vrot.lane.b32.xlu1 %v3452_v39, %s3158_s10  ;;  %v1465_v45 = vpop.permute.xlu0 %1464 }
 0x6b7   : > { %1470 = vrot.lane.b32.xlu1 %v3468_v53, %s3158_s10 }
 0x6ea   : > { %v1064_v56 = vpop.xlane.xlu1 %1063 }
 0x6eb   : > { %2870 = vrcp.f32 %v1064_v56 }
 0x6ec   : > { %2872 = vrcp.f32 %v1055_v10 }
 0x6ed   : > { %2874 = vrcp.f32 %v1061_v23 }
 0x6ee   : > { %v1058_v58 = vpop.xlane.xlu1 %1057 }
 0x6ef   : > { %2876 = vrcp.f32 %v1058_v58 }
 0x6f0   : > { %2878 = vrcp.f32 %v1354_v41 }
 0x6f1   : > { %2880 = vrcp.f32 %v1345_v6 }
 0x6f2   : > { %v1382_v48 = vpop.permute.xlu1 %1381  ;;  %2882 = vrcp.f32 %v1351_v35 }
 0x6f3   : > { %2510 = vmatprep.subr.bf16.mxu1 %v1382_v48 }
 0x6f4   : > { %2511 = vmatpush3.bf16.msra.mxu1 %v1382_v48 }
 0x6f5   : > { %2588 = vmatprep.subr.msk.bf16.mxu1 %vm620_vm0, %v1473_v55  ;;  %v2871_v39 = vpop.eup %2870 }
 0x6f6   : > { %v2873_v50 = vpop.eup %2872  ;;  %v1080_v62 = vmul.f32 %v2871_v39, %v3814_v24 }
 0x6f7   : > { %v2875_v53 = vpop.eup %2874  ;;  %v1077_v63 = vmul.f32 %v2873_v50, %v3772_v1 }
 0x6f8   : > { %v1079_v0 = vmul.f32 %v2875_v53, %v3768_v5 }
 0x6f9   : > { %v2877_v61 = vpop.eup %2876 }
 0x6fa   : > { %v1078_v32 = vmul.f32 %v2877_v61, %v3818_v30  ;;  %v1084_v59 = vpack.c.bf16 %v1080_v62, %v1079_v0  ;;  %v2879_v43 = vpop.eup %2878 }
 0x6fc   : > { %v1083_v57 = vpack.c.bf16 %v1078_v32, %v1077_v63 }
 0x6fe   : > { %2484 = vmatprep.mubr.msk.bf16.mxu1 %vm710_vm1, %v1083_v57 }
 0x6ff   : > { %2485 = vmatmul.mubr.msk.bf16.gmra.mrb[28].mxu1 %vm710_vm1, %v1084_v59 }
 0x700   : > { %2512 = vmatprep.mubr.msk.bf16.mxu1 %vm710_vm1, %v1371_v52  ;;  %v2881_v52 = vpop.eup %2880 }
 0x701   : > { %v2883_v60 = vpop.eup %2882  ;;  %v1367_v30 = vmul.f32 %v2881_v52, %v3778_v25 }
 0x702   : > { %v1369_v36 = vmul.f32 %v2883_v60, %v3782_v31 }
 0x707   : > { %2513 = vmatmul.mubr.msk.bf16.vlgmr.msra.gmra.mrb[32].mxu1 %vm710_vm1, %v1372_v34  ;;  %v1370_v34 = vmul.f32 %v2879_v43, %v3786_v2 }
 0x708   : > { %2521 = vmatpush3.bf16.xpose.msra.mxu1 %v1493_v46 }
 0x709   : > { %v1374_v29 = vpack.c.bf16 %v1370_v34, %v1369_v36 }
 0x723   : > { %v1348_v5 = vpop.xlane.xlu1 %1347 }
 0x724   : > { %2884 = vrcp.f32 %v1348_v5 }
 0x727   : > { %v1475_v1 = vpop.permute.xlu1 %1474 }
 0x728   : > { %v1496_v24 = vsel %vm620_vm0, %v1475_v1, 0  ;;  %2589 = vmatprep.subr.msk.bf16.mxu1 %vm620_vm0, %v1475_v1 }
 0x729   : > { %2523 = vmatpush3.bf16.xpose.msra.mxu1 %v1496_v24 }
 0x72b   : > { %v1477_v47 = vpop.permute.xlu1 %1476 }
 0x72c   : > { %2590 = vmatprep.subr.msk.bf16.mxu1 %vm620_vm0, %v1477_v47  ;;  %v1499_v38 = vsel %vm620_vm0, %v1477_v47, 0 }
 0x72e   : > { %v2885_v27 = vpop.eup %2884 }
 0x72f   : > { %v1368_v44 = vmul.f32 %v2885_v27, %v3827_v40  ;;  %v1479_v11 = vpop.permute.xlu1 %1478  ;;  %v1469_v40 = vpop.permute.xlu0 %1468 }
 0x730   : > { %v1502_v25 = vsel %vm620_vm0, %v1479_v11, 0 }
 0x731   : > { %2525 = vmatpush3.bf16.xpose.msra.mxu1 %v1499_v38  ;;  %v1373_v42 = vpack.c.bf16 %v1368_v44, %v1367_v30 }
 0x732   : > { %2591 = vmatprep.subr.msk.bf16.mxu1 %vm620_vm0, %v1479_v11 }
 0x733   : > { %2516 = vmatprep.mubr.msk.bf16.mxu1 %vm710_vm1, %v1373_v42  ;;  %v1467_v2 = vpop.permute.xlu1 %1466 }
 0x734   : > { %2517 = vmatmul.mubr.msk.bf16.gmra.mrb[36].mxu1 %vm710_vm1, %v1374_v29 }
 0x735   : > { %2528 = vmatprep.mubr.msk.bf16.mxu1 %vm620_vm0, %v1465_v45 }
 0x737   : > { %v1471_v31 = vpop.permute.xlu1 %1470 }
 0x739   : > { %2527 = vmatpush3.bf16.xpose.msra.mxu1 %v1502_v25 }
 0x740   : > { %2529 = vmatmul.mubr.msk.bf16.vlgmr.msra.gmra.mrb[40].mxu1 %vm620_vm0, %v1467_v2 }
 0x741   : > { %2532 = vmatprep.mubr.msk.bf16.mxu1 %vm620_vm0, %v1469_v40 }
 0x748   : > { %2533 = vmatmul.mubr.msk.bf16.gmra.mrb[44].mxu1 %vm620_vm0, %v1471_v31 }
 0x771   : > { %v3879_v3 = vpop.f32.mrb[24].mxu1 }
 0x772   : > { %v3881_v4 = vpop.f32.mrb[25].mxu1 }
 0x773   : > { %v3883_v7 = vpop.f32.mrb[26].mxu1 }
 0x774   : > { %v2695_v9 = vpack.i.bf16 %v3883_v7, %v3879_v3  ;;  %v3887_v21 = vpop.f32.mrb[27].mxu1 }
 0x775   : > { %v2690_v49 = vpack.i.bf16 %v3887_v21, %v3881_v4 }
 0x7d2   : > { %v3891_v28 = vpop.f32.mrb[28].mxu1 }
 0x7d3   : > { %v3893_v26 = vpop.f32.mrb[29].mxu1 }
 0x7d4   : > { %v3895_v12 = vpop.f32.mrb[30].mxu1 }
 0x7d5   : > { %v2715_v8 = vpack.i.bf16 %v3895_v12, %v3891_v28  ;;  %v3899_v22 = vpop.f32.mrb[31].mxu1 }
 0x7d6   : > { %v2710_v10 = vpack.i.bf16 %v3899_v22, %v3893_v26 }
 0x7da   : > { %v3903_v6 = vpop.f32.mrb[32].mxu1 }
 0x7db   : > { %v3905_v23 = vpop.f32.mrb[33].mxu1 }
 0x7dc   : > { %v3907_v35 = vpop.f32.mrb[34].mxu1 }
 0x7dd   : > { %v2705_v56 = vpack.i.bf16 %v3907_v35, %v3903_v6  ;;  %v3911_v41 = vpop.f32.mrb[35].mxu1 }
 0x7de   : > { %v2700_v58 = vpack.i.bf16 %v3911_v41, %v3905_v23 }
 0x807   : > { %v3915_v48 = vpop.f32.mrb[36].mxu1 }
 0x808   : > { %v3917_v55 = vpop.f32.mrb[37].mxu1 }
 0x809   : > { %v3919_v39 = vpop.f32.mrb[38].mxu1 }
 0x80a   : > { %v2735_v50 = vpack.i.bf16 %v3919_v39, %v3915_v48  ;;  %v3923_v53 = vpop.f32.mrb[39].mxu1 }
 0x80b   : > { %v2730_v61 = vpack.i.bf16 %v3923_v53, %v3917_v55 }
 0x813   : > { %v2530_v62 = vpop.f32.mrb[40].mxu1 }
 0x814   : > { %v1538_v63 = vpop.f32.mrb[41].mxu1  ;;  %v1575_v46 = vsel %vm710_vm1, %v2530_v62, -inf }
 0x815   : > { %v2531_v32 = vpop.f32.mrb[42].mxu1  ;;  %v1569_v0 = vsel %vm710_vm1, %v1538_v63, -inf }
 0x816   : > { %1570 = vmax.xlane.f32.xlu0 %v1569_v0  ;;  %v1541_v57 = vpop.f32.mrb[43].mxu1  ;;  %v1578_v43 = vsel %vm710_vm1, %v2531_v32, -inf }
 0x817   : > { %v1572_v59 = vsel %vm710_vm1, %v1541_v57, -inf }
 0x818   : > { %1573 = vmax.xlane.f32.xlu1 %v1572_v59 }
 0x81a   : > { %1576 = vmax.xlane.f32.xlu0 %v1575_v46 }
 0x81b   : > { %v2534_v5 = vpop.f32.mrb[44].mxu1 }
 0x81c   : > { %v1554_v1 = vpop.f32.mrb[45].mxu1  ;;  %v1587_v34 = vsel %vm710_vm1, %v2534_v5, -inf }
 0x81d   : > { %v3930_v24 = vpop.f32.mrb[46].mxu1  ;;  %v1581_v60 = vsel %vm710_vm1, %v1554_v1, -inf }
 0x81e   : > { %1579 = vmax.xlane.f32.xlu0 %v1578_v43  ;;  %v1557_v47 = vpop.f32.mrb[47].mxu1  ;;  %v1590_v27 = vsel %vm710_vm1, %v3930_v24, -inf }
 0x81f   : > { %v1584_v52 = vsel %vm710_vm1, %v1557_v47, -inf }
 0x820   : > { %1585 = vmax.xlane.f32.xlu1 %v1584_v52 }
 0x822   : > { %1582 = vmax.xlane.f32.xlu0 %v1581_v60 }
 0x824   : > { %1591 = vmax.xlane.f32.xlu1 %v1590_v27 }
 0x826   : > { %1588 = vmax.xlane.f32.xlu0 %v1587_v34 }
 0x8a3   : > { %v1571_v30 = vpop.xlane.xlu0 %1570 }
 0x8a4   : > { %v1593_v44 = vsub.f32 %v1538_v63, %v1571_v30 }
 0x8a5   : > { %v1574_v38 = vpop.xlane.xlu1 %1573 }
 0x8a6   : > { %v1601_v42 = vmul.f32 1.442695, %v1593_v44  ;;  %v1594_v29 = vsub.f32 %v1541_v57, %v1574_v38 }
 0x8a7   : > { %v1577_v36 = vpop.xlane.xlu0 %1576 }
 0x8a8   : > { %v1595_v11 = vsub.f32 %v2530_v62, %v1577_v36  ;;  %v1603_v40 = vmul.f32 1.442695, %v1594_v29 }
 0x8aa   : > { %v1605_v45 = vmul.f32 1.442695, %v1595_v11 }
 0x8ab   : > { %v1580_v25 = vpop.xlane.xlu0 %1579 }
 0x8ac   : > { %2886 = vpow2.f32 %v1605_v45  ;;  %v1596_v2 = vsub.f32 %v2531_v32, %v1580_v25 }
 0x8ad   : > { %2888 = vpow2.f32 %v1601_v42  ;;  %v1586_v11 = vpop.xlane.xlu1 %1585 }
 0x8ae   : > { %v1607_v31 = vmul.f32 1.442695, %v1596_v2 }
 0x8af   : > { %v1583_v0 = vpop.xlane.xlu0 %1582 }
 0x8b0   : > { %2890 = vpow2.f32 %v1607_v31  ;;  %v1597_v59 = vsub.f32 %v1554_v1, %v1583_v0 }
 0x8b1   : > { %2892 = vpow2.f32 %v1603_v40  ;;  %v1592_v42 = vpop.xlane.xlu1 %1591 }
 0x8b2   : > { %v1609_v63 = vmul.f32 1.442695, %v1597_v59  ;;  %v1600_v29 = vsub.f32 %v3930_v24, %v1592_v42 }
 0x8b3   : > { %v1589_v46 = vpop.xlane.xlu0 %1588 }
 0x8b4   : > { %v1599_v43 = vsub.f32 %v2534_v5, %v1589_v46  ;;  %v1615_v45 = vmul.f32 1.442695, %v1600_v29 }
 0x8b6   : > { %v3938_v52 = vpop.eup %2886  ;;  %v1613_v60 = vmul.f32 1.442695, %v1599_v43 }
 0x8b7   : > { %v1623_v62 = vsel %vm710_vm1, %v3938_v52, 0.0  ;;  %v2889_v57 = vpop.eup %2888 }
 0x8b8   : > { %2894 = vpow2.f32 %v1613_v60  ;;  %1624 = vadd.xlane.f32.xlu0 %v1623_v62  ;;  %v1617_v27 = vsel %vm710_vm1, %v2889_v57, 0.0 }
 0x8b9   : > { %2896 = vpow2.f32 %v1609_v63 }
 0x8ba   : > { %v3942_v32 = vpop.eup %2890  ;;  %2898 = vpow2.f32 %v1615_v45 }
 0x8bb   : > { %v1626_v1 = vsel %vm710_vm1, %v3942_v32, 0.0  ;;  %v2893_v34 = vpop.eup %2892 }
 0x8bc   : > { %1618 = vadd.xlane.f32.xlu0 %v1617_v27  ;;  %1627 = vadd.xlane.f32.xlu1 %v1626_v1  ;;  %v1620_v5 = vsel %vm710_vm1, %v2893_v34, 0.0  ;;  %v2783_v1 = vld [vmem:[#allocation8 + $0x8] sm:$0xff]  }
 0x8c0   : > { %1621 = vadd.xlane.f32.xlu1 %v1620_v5  ;;  %v2785_v5 = vld [vmem:[#allocation8 + $0x18] sm:$0xff]  }
 0x8c2   : > { %v3948_v30 = vpop.eup %2894 }
 0x8c3   : > { %v1635_v44 = vsel %vm710_vm1, %v3948_v30, 0.0  ;;  %v3952_v38 = vpop.eup %2896 }
 0x8c4   : > { %1636 = vadd.xlane.f32.xlu0 %v1635_v44  ;;  %v1629_v36 = vsel %vm710_vm1, %v3952_v38, 0.0  ;;  %v2786_v44 = vld [vmem:[#allocation8 + $0x20] sm:$0xff]  }
 0x8c8   : > { %1630 = vadd.xlane.f32.xlu0 %v1629_v36  ;;  %v2789_v36 = vld [vmem:[#allocation8 + $0x38] sm:$0xff]  }
 0x8d1   : > { %1663 = vrot.lane.b32.xlu1 %v3509_v33, %s3158_s10  ;;  %v1598_v33 = vsub.f32 %v1557_v47, %v1586_v11 }
 0x8d5   : > { %1665 = vrot.lane.b32.xlu1 %v3533_v54, %s3158_s10  ;;  %v2899_v54 = vpop.eup %2898 }
 0x8d6   : > { %v1638_v4 = vsel %vm710_vm1, %v2899_v54, 0.0 }
 0x8de   : > { %1661 = vrot.lane.b32.xlu0 %v3513_v37, %s3158_s10  ;;  %v1611_v37 = vmul.f32 1.442695, %v1598_v33 }
 0x8e0   : > { %2900 = vpow2.f32 %v1611_v37 }
 0x8e2   : > { %2691 = vrot.lane.b32.xlu0 %v2690_v49, %s3158_s10 }
 0x8e6   : > { %2701 = vrot.lane.b32.xlu0 %v2700_v58, %s3157_s26 }
 0x8ea   : > { %2711 = vrot.lane.b32.xlu0 %v2710_v10, %s3158_s10  ;;  %v2901_v21 = vpop.eup %2900 }
 0x8eb   : > { %v1632_v49 = vsel %vm710_vm1, %v2901_v21, 0.0 }
 0x8f9   : > { %1639 = vadd.xlane.f32.xlu1 %v1638_v4 }
 0x8fd   : > { %1633 = vadd.xlane.f32.xlu1 %v1632_v49 }
 0x90e   : > { %1667 = vrot.lane.b32.xlu1 %v3530_v51, %s3158_s10 }
 0x912   : > { %2696 = vrot.lane.b32.xlu1 %v2695_v9, %s3158_s10 }
 0x916   : > { %2706 = vrot.lane.b32.xlu1 %v2705_v56, %s3157_s26 }
 0x91a   : > { %2716 = vrot.lane.b32.xlu1 %v2715_v8, %s3158_s10 }
 0x945   : > { %v1625_v26 = vpop.xlane.xlu0 %1624 }
 0x949   : > { %v1619_v22 = vpop.xlane.xlu0 %1618  ;;  %v1628_v10 = vpop.xlane.xlu1 %1627 }
 0x94a   : > { %2902 = vrcp.f32 %v1619_v22 }
 0x94d   : > { %v1622_v51 = vpop.xlane.xlu1 %1621 }
 0x94e   : > { %2904 = vrcp.f32 %v1622_v51 }
 0x94f   : > { %2906 = vrcp.f32 %v1628_v10 }
 0x950   : > { %2908 = vrcp.f32 %v1625_v26 }
 0x951   : > { %v1637_v23 = vpop.xlane.xlu0 %1636  ;;  %v1664_v9 = vpop.permute.xlu1 %1663 }
 0x954   : > { %v2903_v3 = vpop.eup %2902 }
 0x955   : > { %v1631_v41 = vpop.xlane.xlu0 %1630  ;;  %v1649_v24 = vmul.f32 %v2903_v3, %v2889_v57  ;;  %v1666_v28 = vpop.permute.xlu1 %1665 }
 0x958   : > { %v2905_v7 = vpop.eup %2904 }
 0x959   : > { %v1662_v58 = vpop.permute.xlu0 %1661  ;;  %v1650_v6 = vmul.f32 %v2905_v7, %v2893_v34  ;;  %v2907_v8 = vpop.eup %2906  ;;  %v2784_v34 = vld [vmem:[#allocation8 + $0x10] sm:$0xff]  }
 0x95a   : > { %2536 = vmatprep.subr.bf16.mxu0 %v1662_v58  ;;  %v2909_v47 = vpop.eup %2908  ;;  %v1652_v25 = vmul.f32 %v2907_v8, %v3942_v32 }
 0x95b   : > { %2537 = vmatpush3.bf16.msra.mxu0 %v1662_v58  ;;  %v1657_v35 = vpack.c.bf16 %v1650_v6, %v1649_v24  ;;  %v1651_v40 = vmul.f32 %v2909_v47, %v3938_v52  ;;  %v2782_v52 = vld [vmem:[#allocation8] sm:$0xff]  }
 0x95c   : > { %2538 = vmatprep.subr.bf16.mxu0 %v1664_v9 }
 0x95d   : > { %2544 = vmatprep.mubr.msk.bf16.mxu0 %vm710_vm1, %v1657_v35  ;;  %v1658_v31 = vpack.c.bf16 %v1652_v25, %v1651_v40  ;;  %v2692_v51 = vpop.permute.xlu0 %2691 }
 0x95e   : > { %v2693_v48 = vunpack.i.l.bf16 %v2692_v51  ;;  %v2694_v39 = vunpack.i.h.bf16 %v2692_v51 }
 0x95f   : > { %2539 = vmatpush3.bf16.msra.mxu0 %v1664_v9 }
 0x960   : > { %2540 = vmatprep.subr.bf16.mxu0 %v1666_v28  ;;  %v1846_v58 = vsel %vm620_vm0, %v3627_v14, %v2693_v48  ;;  %v1847_v6 = vsel %vm620_vm0, %v3631_v16, %v2694_v39 }
 0x963   : > { %2541 = vmatpush3.bf16.msra.mxu0 %v1666_v28 }
 0x986   : > { %v1640_v12 = vpop.xlane.xlu1 %1639 }
 0x987   : > { %2910 = vrcp.f32 %v1640_v12 }
 0x988   : > { %2912 = vrcp.f32 %v1631_v41  ;;  %v2702_v41 = vpop.permute.xlu0 %2701 }
 0x989   : > { %2914 = vrcp.f32 %v1637_v23  ;;  %v2704_v24 = vunpack.i.h.bf16 %v2702_v41 }
 0x98a   : > { %v1634_v56 = vpop.xlane.xlu1 %1633 }
 0x98b   : > { %2916 = vrcp.f32 %v1634_v56  ;;  %v1855_v16 = vsel %vm710_vm1, %v1847_v6, %v2704_v24  ;;  %v2921_v6 = vld [vmem:[%s3411_s7 + $0x8] sm:$0xff] }
 0x98c   : > { %v2712_v7 = vpop.permute.xlu0 %2711 }
 0x98e   : > { %v1668_v2 = vpop.permute.xlu1 %1667 }
 0x98f   : > { %2542 = vmatprep.subr.bf16.mxu0 %v1668_v2 }
 0x990   : > { %2543 = vmatpush3.bf16.msra.mxu0 %v1668_v2 }
 0x991   : > { %v2911_v0 = vpop.eup %2910  ;;  %2552 = vmatprep.subr.bf16.mxu0 %v2782_v52 }
 0x992   : > { %v2913_v59 = vpop.eup %2912  ;;  %v1656_v63 = vmul.f32 %v2911_v0, %v2899_v54  ;;  %v2697_v10 = vpop.permute.xlu1 %2696  ;;  %v2714_v0 = vunpack.i.h.bf16 %v2712_v7 }
 0x993   : > { %2545 = vmatmul.mubr.msk.bf16.vlgmr.msra.gmra.mrb[32].mxu0 %vm710_vm1, %v1658_v31  ;;  %v2915_v46 = vpop.eup %2914  ;;  %v1653_v60 = vmul.f32 %v2913_v59, %v3952_v38  ;;  %v2788_v38 = vld [vmem:[#allocation8 + $0x30] sm:$0xff]   ;;  %v2699_v9 = vunpack.i.h.bf16 %v2697_v10  ;;  %v2698_v55 = vunpack.i.l.bf16 %v2697_v10  ;;  %v2257_v10 = vld [vmem:[#allocation10] ss:$0 sm:$0xff] }
 0x994   : > { %v1655_v57 = vmul.f32 %v2915_v46, %v3948_v30  ;;  %2553 = vmatpush3.bf16.msra.mxu0 %v2782_v52  ;;  %v2787_v30 = vld [vmem:[#allocation8 + $0x28] sm:$0xff]  }
 0x995   : > { %v2917_v43 = vpop.eup %2916  ;;  %2554 = vmatprep.subr.bf16.mxu0 %v2783_v1  ;;  %v1849_v12 = vsel %vm620_vm0, %v3629_v15, %v2699_v9  ;;  %v1848_v8 = vsel %vm620_vm0, %v3625_v13, %v2698_v55  ;;  %v2713_v15 = vunpack.i.l.bf16 %v2712_v7  ;;  %v2918_v9 = vld [vmem:[%s3411_s7 + $0x10] sm:$0xff] }
 0x996   : > { %v1654_v62 = vmul.f32 %v2917_v43, %v2901_v21  ;;  %v1660_v32 = vpack.c.bf16 %v1656_v63, %v1655_v57  ;;  %v2707_v23 = vpop.permute.xlu1 %2706 }
 0x997   : > { %v2709_v53 = vunpack.i.h.bf16 %v2707_v23 }
 0x998   : > { %v1659_v27 = vpack.c.bf16 %v1654_v62, %v1653_v60  ;;  %2555 = vmatpush3.bf16.msra.mxu0 %v2783_v1 }
 0x999   : > { %2556 = vmatprep.subr.bf16.mxu0 %v2784_v34  ;;  %v1857_v14 = vsel %vm710_vm1, %v1849_v12, %v2709_v53  ;;  %v2919_v53 = vld [vmem:[%s3411_s7 + $0x18] sm:$0xff] }
 0x99a   : > { %2548 = vmatprep.mubr.msk.bf16.mxu0 %vm710_vm1, %v1659_v27  ;;  %v2717_v3 = vpop.permute.xlu1 %2716 }
 0x99b   : > { %2549 = vmatmul.mubr.msk.bf16.gmra.mrb[36].mxu0 %vm710_vm1, %v1660_v32  ;;  %v2719_v62 = vunpack.i.h.bf16 %v2717_v3  ;;  %v2718_v57 = vunpack.i.l.bf16 %v2717_v3 }
 0x99c   : > { %2557 = vmatpush3.bf16.msra.mxu0 %v2784_v34 }
 0x99d   : > { %2558 = vmatprep.subr.bf16.mxu0 %v2785_v5 }
 0x9a0   : > { %2559 = vmatpush3.bf16.msra.mxu0 %v2785_v5 }
 0x9a1   : > { %2560 = vmatprep.subr.bf16.mxu0 %v2786_v44 }
 0x9a4   : > { %2561 = vmatpush3.bf16.msra.mxu0 %v2786_v44  ;;  %v1851_v44 = vsel %vm620_vm0, %v3639_v20, %v2714_v0 }
 0x9a5   : > { %2562 = vmatprep.subr.bf16.mxu0 %v2787_v30 }
 0x9a8   : > { %2563 = vmatpush3.bf16.msra.mxu0 %v2787_v30  ;;  %v1850_v30 = vsel %vm620_vm0, %v3635_v18, %v2713_v15  ;;  %v2924_v15 = vld [vmem:[%s3411_s7 + $0x20] sm:$0xff] }
 0x9a9   : > { %2564 = vmatprep.subr.bf16.mxu0 %v2788_v38 }
 0x9ac   : > { %2565 = vmatpush3.bf16.msra.mxu0 %v2788_v38 }
 0x9ad   : > { %2566 = vmatprep.subr.bf16.mxu0 %v2789_v36 }
 0x9b0   : > { %2567 = vmatpush3.bf16.msra.mxu0 %v2789_v36  ;;  %v1853_v36 = vsel %vm620_vm0, %v3637_v19, %v2719_v62 }
 0xa66   : > { %v2546_v11 = vpop.f32.mrb[32].mxu0 }
 0xa67   : > { %v1719_v42 = vpop.f32.mrb[33].mxu0 }
 0xa68   : > { %v2547_v29 = vpop.f32.mrb[34].mxu0 }
 0xa69   : > { %v2720_v33 = vpack.i.bf16 %v2547_v29, %v2546_v11  ;;  %v1722_v45 = vpop.f32.mrb[35].mxu0  ;;  %v1852_v11 = vsel %vm620_vm0, %v3633_v17, %v2718_v57 }
 0xa6a   : > { %v2725_v37 = vpack.i.bf16 %v1722_v45, %v1719_v42 }
 0xa6b   : > { %2721 = vrot.lane.b32.xlu1 %v2720_v33, %s3156_s24 }
 0xa6c   : > { %2726 = vrot.lane.b32.xlu0 %v2725_v37, %s3156_s24 }
 0xa6e   : > { %v2550_v54 = vpop.f32.mrb[36].mxu0 }
 0xa6f   : > { %2736 = vrot.lane.b32.xlu1 %v2735_v50, %s3157_s26  ;;  %v1735_v4 = vpop.f32.mrb[37].mxu0  ;;  %v2703_v50 = vunpack.i.l.bf16 %v2702_v41 }
 0xa70   : > { %2731 = vrot.lane.b32.xlu0 %v2730_v61, %s3157_s26  ;;  %v2551_v21 = vpop.f32.mrb[38].mxu0  ;;  %v2708_v61 = vunpack.i.l.bf16 %v2707_v23 }
 0xa71   : > { %v2745_v49 = vpack.i.bf16 %v2551_v21, %v2550_v54  ;;  %v1738_v26 = vpop.f32.mrb[39].mxu0  ;;  %v1854_v35 = vsel %vm710_vm1, %v1846_v58, %v2703_v50  ;;  %v2920_v58 = vld [vmem:[%s3411_s7] sm:$0xff] }
 0xa72   : > { %v2740_v22 = vpack.i.bf16 %v1738_v26, %v1735_v4  ;;  %v1856_v2 = vsel %vm710_vm1, %v1848_v8, %v2708_v61 }
 0xa73   : > { %2746 = vrot.lane.b32.xlu1 %v2745_v49, %s3156_s24 }
 0xa74   : > { %2741 = vrot.lane.b32.xlu0 %v2740_v22, %s3156_s24 }
 0xadd   : > { %v2722_v28 = vpop.permute.xlu1 %2721 }
 0xade   : > { %v2724_v56 = vunpack.i.h.bf16 %v2722_v28  ;;  %v2723_v47 = vunpack.i.l.bf16 %v2722_v28  ;;  %v2727_v25 = vpop.permute.xlu0 %2726 }
 0xadf   : > { %v2729_v40 = vunpack.i.h.bf16 %v2727_v25  ;;  %v2728_v31 = vunpack.i.l.bf16 %v2727_v25 }
 0xae0   : > { %v1865_v59 = vsel %vm1862_vm2, %v1856_v2, %v2723_v47  ;;  %v1866_v46 = vsel %vm1862_vm2, %v1857_v14, %v2724_v56 }
 0xae1   : > { %v1872_v43 = vpack.c.bf16 %v1866_v46, %v1865_v59  ;;  %v2737_v63 = vpop.permute.xlu1 %2736  ;;  %v1863_v13 = vsel %vm1862_vm2, %v1854_v35, %v2728_v31  ;;  %v1864_v60 = vsel %vm1862_vm2, %v1855_v16, %v2729_v40  ;;  %v2922_v16 = vld [vmem:[%s3411_s7 + $0x30] sm:$0xff]  ;;  %v2923_v59 = vld [vmem:[%s3411_s7 + $0x38] sm:$0xff] }
 0xae2   : > { %v2732_v27 = vpop.permute.xlu0 %2731  ;;  %v1871_v32 = vpack.c.bf16 %v1864_v60, %v1863_v13  ;;  %v2739_v52 = vunpack.i.h.bf16 %v2737_v63  ;;  %v2738_v1 = vunpack.i.l.bf16 %v2737_v63  ;;  %v2925_v63 = vld [vmem:[%s3411_s7 + $0x28] sm:$0xff] }
 0xae3   : > { %v2734_v34 = vunpack.i.h.bf16 %v2732_v27  ;;  %v2733_v5 = vunpack.i.l.bf16 %v2732_v27 }
 0xae4   : > { %2568 = vmatprep.mubr.bf16.mxu0 %v1871_v32  ;;  %v1860_v45 = vsel %vm710_vm1, %v1852_v11, %v2738_v1  ;;  %v1861_v37 = vsel %vm710_vm1, %v1853_v36, %v2739_v52 }
 0xae5   : > { %v2747_v38 = vpop.permute.xlu1 %2746  ;;  %2569 = vmatmul.mubr.bf16.vlgmr.msra.gmra.mrb[40].mxu0 %v1872_v43  ;;  %v1859_v4 = vsel %vm710_vm1, %v1851_v44, %v2734_v34  ;;  %v1858_v18 = vsel %vm710_vm1, %v1850_v30, %v2733_v5 }
 0xae6   : > { %v2749_v42 = vunpack.i.h.bf16 %v2747_v38  ;;  %v2748_v29 = vunpack.i.l.bf16 %v2747_v38  ;;  %v2742_v33 = vpop.permute.xlu0 %2741 }
 0xae7   : > { %v2744_v54 = vunpack.i.h.bf16 %v2742_v33  ;;  %v2743_v20 = vunpack.i.l.bf16 %v2742_v33 }
 0xae8   : > { %v1869_v21 = vsel %vm1862_vm2, %v1860_v45, %v2748_v29  ;;  %v1870_v19 = vsel %vm1862_vm2, %v1861_v37, %v2749_v42 }
 0xae9   : > { %v1867_v17 = vsel %vm1862_vm2, %v1858_v18, %v2743_v20  ;;  %v1868_v49 = vsel %vm1862_vm2, %v1859_v4, %v2744_v54  ;;  %v1874_v26 = vpack.c.bf16 %v1870_v19, %v1869_v21 }
 0xaea   : > { %v1873_v22 = vpack.c.bf16 %v1868_v49, %v1867_v17 }
 0xaec   : > { %2572 = vmatprep.mubr.bf16.mxu0 %v1873_v22 }
 0xaed   : > { %2573 = vmatmul.mubr.bf16.gmra.mrb[44].mxu0 %v1874_v26 }
 0xbb8   : > { %v2570_v51 = vpop.f32.mrb[40].mxu0 }
 0xbb9   : > { %v1989_v23 = vadd.f32 %v2570_v51, %v2257_v10  ;;  %v1980_v41 = vpop.f32.mrb[41].mxu0 }
 0xbba   : > { %v1981_v48 = vadd.f32 %v2257_v10, %v1980_v41  ;;  %v2571_v39 = vpop.f32.mrb[42].mxu0 }
 0xbbb   : > { %v1992_v50 = vadd.f32 %v2571_v39, %v2257_v10  ;;  %v1983_v3 = vpop.f32.mrb[43].mxu0  ;;  %v2013_v55 = vadd.f32 %v2918_v9, %v1989_v23 }
 0xbbc   : > { %v1984_v7 = vadd.f32 %v2257_v10, %v1983_v3  ;;  %v2011_v24 = vadd.f32 %v2920_v58, %v1981_v48 }
 0xbbd   : > { %v2014_v61 = vadd.f32 %v2919_v53, %v1992_v50 }
 0xbbe   : > { %v2012_v35 = vadd.f32 %v2921_v6, %v1984_v7 }
 0xbbf   : > { %v2297_v28 = vpack.c.bf16 %v2014_v61, %v2013_v55 }
 0xbc0   : > { %v2292_v12 = vpack.c.bf16 %v2012_v35, %v2011_v24  ;;  %v2574_v8 = vpop.f32.mrb[44].mxu0 }
 0xbc1   : > { %2309 = vst [vmem:[%s296_s27 + $0x8] sm:$0xff] %v2297_v28   ;;  %v2005_v56 = vadd.f32 %v2574_v8, %v2257_v10  ;;  %v1996_v47 = vpop.f32.mrb[45].mxu0 }
 0xbc2   : > { %2293 = vst [vmem:[%s296_s27] sm:$0xff] %v2292_v12   ;;  %v1997_v25 = vadd.f32 %v2257_v10, %v1996_v47  ;;  %v2575_v2 = vpop.f32.mrb[46].mxu0 }
 0xbc3   : > { %v2008_v14 = vadd.f32 %v2575_v2, %v2257_v10  ;;  %v1999_v40 = vpop.f32.mrb[47].mxu0  ;;  %v2017_v0 = vadd.f32 %v2922_v16, %v2005_v56 }
 0xbc4   : > { %v2000_v31 = vadd.f32 %v2257_v10, %v1999_v40  ;;  %v2015_v43 = vadd.f32 %v2924_v15, %v1997_v25 }
 0xbc5   : > { %v2018_v46 = vadd.f32 %v2923_v59, %v2008_v14 }
 0xbc6   : > { %v2016_v13 = vadd.f32 %v2925_v63, %v2000_v31 }
 0xbc7   : > { %v2307_v60 = vpack.c.bf16 %v2018_v46, %v2017_v0 }
 0xbc8   : > { %v2302_v62 = vpack.c.bf16 %v2016_v13, %v2015_v43 }
 0xbc9   : > { %2311 = vst [vmem:[%s296_s27 + $0x18] sm:$0xff] %v2307_v60  }
 0xbca   : > { %2310 = vst [vmem:[%s296_s27 + $0x10] sm:$0xff] %v2302_v62  }
 0xbcb   : > { %3081 = shalt.err (!%p3078_p13)
}
 0xbcc   : > { %s3082_s7 = scalar_lea.hbm %s4058_s11, 512  ;;  %s3086_s13 = scalar_lea.hbm %s4109_s5, 1024 }
 0xbcd   : > { %p3083_p9 = scmp.ne.s32.totalorder %s4058_s11, %s3082_s7  ;;  %p3087_p6 = scmp.lt.u32.totalorder %s4058_s11, %s4109_s5 }
 0xbce   : > { %p3088_p10 = scmp.lt.u32.totalorder %s3086_s13, %s3082_s7  ;;  %p3090_p4 = scmp.lt.u32.totalorder %s3082_s7, %s4058_s11 }
 0xbcf   : > { %p3084_p0 = pnand %p3083_p9, %p3358_p8 }
 0xbd0   : > { %p3089_p3 = por %p3088_p10, %p3087_p6 }
 0xbd1   : > { %p3085_p11 = pneg %p3084_p0 }
 0xbd2   : > { %p3091_p5 = por %p3090_p4, %p3089_p3 }
 0xbd4   : > { %p3092_p7 = pnand %p3091_p5, %p3085_p11 }
 0xbd6   : > { %3095 = shalt.err (!%p3092_p7)
}
 0xbd7   : > { %s3160_s8 = smov 4  }
 0xbd8   : > { %2610 = dma.vmem_to_hbm [thread:$0]  (%p3358_p8), %s4053_s28, 512, %s4058_s11, %s2060_s6, %s3157_s26, %s3157_s26, %s3160_s8  }
 0xbd9 PF: > { %s2088_s9 = sand.u32 1, %s3130_s18   ;;  %p4127_p12 = scmp.ne.s32.totalorder %s4114_s25, 0 }
 0xbda   : > { %p4128_p2 = scmp.ge.s32.totalorder %s3142_s21, 2  ;;  %s2089_s22 = scalar_lea.sflag [#allocation4], %s2088_s9 }
 0xbdc   : > { %p2630_p1 = pnand %p4128_p2, %p4127_p12 }
 0xbde   : > { %3125 = dma.done.wait (!%p2630_p1), %s2089_s22, 512  }
 0xbdf   : > { %3127 = vsyncadd (!%p2630_p1), %s2089_s22, 4294966784  ;;  %p20_p13 = scmp.ge.s32.totalorder %s3345_s12, 4   ;;  %s4129_s18 = smov %s3134_s19 }
 0xbe0   : > { %s4130_s19 = smov %s3138_s20  ;;  %s4131_s20 = smov %s3354_s16 }
 0xbe1   : > { %s4132_s21 = smov %s3345_s12  ;;  %22 = sbr.rel (!%p20_p13) target bundleno = 7 (0x7), region = 101 }
 0xbe8   :  { %2094 = vsyncpa [#allocation3], 1 }
 0xbe9   :  { %2096 = vsyncpa [#allocation3 + $0x1], 1 }
 0xbea   :  { %2097 = vsyncpa [#allocation6], 1 }
 0xbeb   :  { %2098 = vsyncpa [#allocation9], 1 }
 0xbec   :  { %2099 = vsyncpa [#allocation4], 1 }
 0xbed   :  { %2101 = vsyncpa [#allocation4 + $0x1], 1 }

</bundles_post_ra>
